<compile_context>
chip_gen: v7x
topology: tpu7x:2x2x1
jax: 0.10.0
libtpu: 0.0.40
codegen_flags: <defaults>
</compile_context>

<pallas_src>
import math
import functools

import jax
import jax.numpy as jnp
from jax.experimental import pallas as pl
from jax.experimental.pallas import tpu as pltpu


def _round_up(x, m):
    return ((x + m - 1) // m) * m


def _pick_tile(dim, align, tmax):
    """Tile size (multiple of `align`, <= tmax) and the padded extent."""
    aligned = _round_up(dim, align)
    t = min(tmax, aligned)
    if aligned % t != 0:
        t = align
    return t, _round_up(dim, t)


# ---------------------------------------------------------------------------
# Pallas kernels
# ---------------------------------------------------------------------------

def _matmul_bias_kernel(a_ref, b_ref, bias_ref, o_ref, acc_ref, *, activation):
    """Tiled GEMM: bf16 MXU inputs, f32 accumulator, fused bias/act epilogue."""
    @pl.when(pl.program_id(2) == 0)
    def _():
        acc_ref[...] = jnp.zeros_like(acc_ref)

    acc_ref[...] += jnp.dot(a_ref[...], b_ref[...],
                            preferred_element_type=jnp.float32)

    @pl.when(pl.program_id(2) == pl.num_programs(2) - 1)
    def _():
        y = acc_ref[...] + bias_ref[...]
        if activation == "relu":
            y = jnp.maximum(y, 0.0)
        elif activation == "tanh":
            y = jnp.tanh(y)
        o_ref[...] = y


def matmul_bias(a, b, bias, activation=None, tm_max=256, tn_max=256, tk_max=256):
    """y = act(a @ b + bias).  a:[M,K] b:[K,N] bias:[N].  f32 in / f32 out."""
    M, K = a.shape
    K2, N = b.shape
    assert K == K2

    tm = min(tm_max, _round_up(M, 8))
    Mp = _round_up(M, tm)
    tk, Kp = _pick_tile(K, 128, tk_max)
    tn, Np = _pick_tile(N, 128, tn_max)

    a_p = jnp.pad(a, ((0, Mp - M), (0, Kp - K))).astype(jnp.bfloat16)
    b_p = jnp.pad(b, ((0, Kp - K), (0, Np - N))).astype(jnp.bfloat16)
    bias_p = jnp.pad(bias.astype(jnp.float32), (0, Np - N)).reshape(1, Np)

    grid = (Mp // tm, Np // tn, Kp // tk)
    out = pl.pallas_call(
        functools.partial(_matmul_bias_kernel, activation=activation),
        grid_spec=pltpu.PrefetchScalarGridSpec(
            num_scalar_prefetch=0,
            grid=grid,
            in_specs=[
                pl.BlockSpec((tm, tk), lambda i, j, k: (i, k)),
                pl.BlockSpec((tk, tn), lambda i, j, k: (k, j)),
                pl.BlockSpec((1, tn), lambda i, j, k: (0, j)),
            ],
            out_specs=pl.BlockSpec((tm, tn), lambda i, j, k: (i, j)),
            scratch_shapes=[pltpu.VMEM((tm, tn), jnp.float32)],
        ),
        out_shape=jax.ShapeDtypeStruct((Mp, Np), jnp.float32),
        compiler_params=pltpu.CompilerParams(
            dimension_semantics=("parallel", "parallel", "arbitrary"),
            vmem_limit_bytes=48 * 1024 * 1024,
        ),
    )(a_p, b_p, bias_p)
    return out[:M, :N]


def _make_instnorm_kernel(relu, add_skip):
    def kernel(*refs):
        if add_skip:
            x_ref, skip_ref, o_ref = refs
        else:
            x_ref, o_ref = refs
        x = x_ref[...]                                              # (1, HW, Cblk) f32
        mean = jnp.mean(x, axis=1, keepdims=True)
        var = jnp.mean((x - mean) ** 2, axis=1, keepdims=True)      # biased, as PyTorch
        y = (x - mean) * jax.lax.rsqrt(var + 1e-5)
        if relu:
            y = jnp.maximum(y, 0.0)
        if add_skip:
            y = y + skip_ref[...]
        o_ref[...] = y
    return kernel


def instance_norm(x_nhwc, relu=False, skip=None):
    """InstanceNorm2d(affine=False) with optional fused ReLU / residual add."""
    N, H, W, C = x_nhwc.shape
    HW = H * W
    cblk = 128 if C % 128 == 0 else C
    xr = x_nhwc.reshape(N, HW, C)

    spec = pl.BlockSpec((1, HW, cblk), lambda n, c: (n, 0, c))
    args = [xr]
    in_specs = [spec]
    if skip is not None:
        args.append(skip.reshape(N, HW, C))
        in_specs.append(spec)

    y = pl.pallas_call(
        _make_instnorm_kernel(relu, skip is not None),
        grid_spec=pltpu.PrefetchScalarGridSpec(
            num_scalar_prefetch=0,
            grid=(N, C // cblk),
            in_specs=in_specs,
            out_specs=spec,
        ),
        out_shape=jax.ShapeDtypeStruct((N, HW, C), jnp.float32),
        compiler_params=pltpu.CompilerParams(
            dimension_semantics=("parallel", "parallel")),
    )(*args)
    return y.reshape(N, H, W, C)


# ---------------------------------------------------------------------------
# Plain-JAX glue: padding, patch extraction, conv / conv-transpose wrappers
# ---------------------------------------------------------------------------

def reflect_pad(x, p):  # NHWC
    return jnp.pad(x, ((0, 0), (p, p), (p, p), (0, 0)), mode="reflect")


def zero_pad(x, lo, hi):
    return jnp.pad(x, ((0, 0), (lo, hi), (lo, hi), (0, 0)))


def im2col(x, kh, kw, stride):
    """x: (N, H, W, C) -> patches (N*Ho*Wo, kh*kw*C), tap order (ki, kj, c)."""
    N, H, W, C = x.shape
    Ho = (H - kh) // stride + 1
    Wo = (W - kw) // stride + 1
    taps = []
    for i in range(kh):
        for j in range(kw):
            taps.append(x[:, i:i + Ho * stride:stride, j:j + Wo * stride:stride, :])
    patches = jnp.concatenate(taps, axis=-1)          # (N, Ho, Wo, kh*kw*C)
    return patches.reshape(N * Ho * Wo, kh * kw * C), (N, Ho, Wo)


def conv2d(x, w, b, stride=1, pad=0, pad_mode="zero", activation=None):
    """PyTorch-semantics Conv2d. w: (Cout, Cin, kh, kw), x: NHWC."""
    Cout, Cin, kh, kw = w.shape
    if pad > 0:
        x = reflect_pad(x, pad) if pad_mode == "reflect" else zero_pad(x, pad, pad)
    a, (N, Ho, Wo) = im2col(x, kh, kw, stride)
    wg = jnp.transpose(w, (2, 3, 1, 0)).reshape(kh * kw * Cin, Cout)
    y = matmul_bias(a, wg, b, activation=activation)
    return y.reshape(N, Ho, Wo, Cout)


def conv_transpose2d(x, w, b):
    """PyTorch ConvTranspose2d(k=3, stride=2, padding=1, output_padding=1).

    Sub-pixel decomposition: out[2m+dy, 2n+dx] = sum_{di,dj in {0,1}}
        x[m+di, n+dj] . w[:, :, dy+1-2*di, dx+1-2*dj]   (zero if index not in [0,3))
    realized as one GEMM with K = 4*Cin taps and N = 4*Cout phase columns.
    """
    Cin, Cout, kh, kw = w.shape
    assert (kh, kw) == (3, 3)
    N, H, W, C = x.shape
    assert C == Cin

    # 2x2 neighbourhood taps of x, zero-padded one pixel on the high side.
    xp = jnp.pad(x, ((0, 0), (0, 1), (0, 1), (0, 0)))
    taps = jnp.concatenate(
        [xp[:, di:di + H, dj:dj + W, :] for di in (0, 1) for dj in (0, 1)],
        axis=-1)                                   # (N, H, W, 4*Cin), order (di, dj, c)
    a = taps.reshape(N * H * W, 4 * Cin)

    # Phase weights: (di, dj, Cin, dy, dx, Cout) -> (4*Cin, 4*Cout).
    wg = jnp.zeros((2, 2, Cin, 2, 2, Cout), jnp.float32)
    for dy in (0, 1):
        for dx in (0, 1):
            for di in (0, 1):
                for dj in (0, 1):
                    ki = dy + 1 - 2 * di
                    kj = dx + 1 - 2 * dj
                    if 0 <= ki < 3 and 0 <= kj < 3:
                        wg = wg.at[di, dj, :, dy, dx, :].set(w[:, :, ki, kj])
    wg = wg.reshape(4 * Cin, 4 * Cout)
    bg = jnp.tile(b, 4)                            # bias per output phase

    y = matmul_bias(a, wg, bg)                     # (N*H*W, 4*Cout)
    y = y.reshape(N, H, W, 2, 2, Cout)
    y = jnp.transpose(y, (0, 1, 3, 2, 4, 5)).reshape(N, 2 * H, 2 * W, Cout)
    return y


# ---------------------------------------------------------------------------
# Generator: deterministic parameter init + forward pass
# ---------------------------------------------------------------------------

def _conv_params(key, cout, cin, k):
    k1, k2 = jax.random.split(key)
    s = 1.0 / math.sqrt(cin * k * k)
    w = jax.random.uniform(k1, (cout, cin, k, k), jnp.float32, -s, s)
    b = jax.random.uniform(k2, (cout,), jnp.float32, -s, s)
    return w, b


def _convT_params(key, cin, cout, k):
    k1, k2 = jax.random.split(key)
    s = 1.0 / math.sqrt(cout * k * k)
    w = jax.random.uniform(k1, (cin, cout, k, k), jnp.float32, -s, s)
    b = jax.random.uniform(k2, (cout,), jnp.float32, -s, s)
    return w, b


def init_generator_params(key, inp=3, out=3, res_blocks=6):
    keys = jax.random.split(key, 6 + 2 * res_blocks)
    params = {
        "c1": _conv_params(keys[0], 64, inp, 7),
        "c2": _conv_params(keys[1], 128, 64, 3),
        "c3": _conv_params(keys[2], 256, 128, 3),
        "t1": _convT_params(keys[3], 256, 128, 3),
        "t2": _convT_params(keys[4], 128, 64, 3),
        "c_out": _conv_params(keys[5], out, 64, 7),
    }
    for i in range(res_blocks):
        params[f"res{i}_a"] = _conv_params(keys[6 + 2 * i], 256, 256, 3)
        params[f"res{i}_b"] = _conv_params(keys[7 + 2 * i], 256, 256, 3)
    return params


def resnet_block(x, wa, ba, wb, bb):
    h = conv2d(x, wa, ba, stride=1, pad=1, pad_mode="reflect")
    h = instance_norm(h, relu=True)
    h = conv2d(h, wb, bb, stride=1, pad=1, pad_mode="reflect")
    return instance_norm(h, relu=False, skip=x)          # residual add fused in


def generator_forward(params, x_nchw, res_blocks):
    x = jnp.transpose(x_nchw, (0, 2, 3, 1)).astype(jnp.float32)   # NCHW -> NHWC

    # downsampling head
    h = conv2d(x, *params["c1"], stride=1, pad=3, pad_mode="reflect")
    h = instance_norm(h, relu=True)
    h = conv2d(h, *params["c2"], stride=2, pad=1)
    h = instance_norm(h, relu=True)
    h = conv2d(h, *params["c3"], stride=2, pad=1)
    h = instance_norm(h, relu=True)

    # resnet trunk
    for i in range(res_blocks):
        wa, ba = params[f"res{i}_a"]
        wb, bb = params[f"res{i}_b"]
        h = resnet_block(h, wa, ba, wb, bb)

    # upsampling tail
    h = conv_transpose2d(h, *params["t1"])
    h = instance_norm(h, relu=True)
    h = conv_transpose2d(h, *params["t2"])
    h = instance_norm(h, relu=True)
    # final conv with tanh fused into the GEMM epilogue
    h = conv2d(h, *params["c_out"], stride=1, pad=3, pad_mode="reflect",
               activation="tanh")

    return jnp.transpose(h, (0, 3, 1, 2))                         # NHWC -> NCHW


# ---------------------------------------------------------------------------

if __name__ == "__main__":
    RES_BLOCKS = 2   # module requires >= 1; kept small for a quick synthetic run
    key = jax.random.PRNGKey(0)
    pkey, xkey = jax.random.split(key)

    params = init_generator_params(pkey, inp=3, out=3, res_blocks=RES_BLOCKS)
    x = jax.random.normal(xkey, (2, 3, 16, 16), jnp.float32)       # NCHW input

    fwd = jax.jit(functools.partial(generator_forward, res_blocks=RES_BLOCKS))
    y = fwd(params, x)
    y = jax.block_until_ready(y)

    assert y.shape == (2, 3, 16, 16), y.shape
    assert bool(jnp.all(jnp.isfinite(y)))
    assert bool(jnp.all(jnp.abs(y) <= 1.0 + 1e-6))                 # tanh range
    print("KERNEL_OK")
</pallas_src>

<mosaic_0001>
module attributes {stable_mosaic.version = 11 : i64} {
  func.func @_matmul_bias_kernel(%arg0: i32, %arg1: i32, %arg2: i32, %arg3: memref<256x256xbf16, #tpu.memory_space<vmem>>, %arg4: memref<256x128xbf16, #tpu.memory_space<vmem>>, %arg5: memref<1x128xf32, #tpu.memory_space<vmem>>, %arg6: memref<256x128xf32, #tpu.memory_space<vmem>>, %arg7: memref<256x128xf32, #tpu.memory_space<vmem>>) attributes {dimension_semantics = [#tpu.dimension_semantics<parallel>, #tpu.dimension_semantics<parallel>, #tpu.dimension_semantics<arbitrary>], iteration_bounds = array<i64: 2, 1, 1>, scalar_prefetch = 0 : i64, scratch_operands = 1 : i64, tpu.core_type = #tpu.core_type<tc>, window_params = [{transform_indices = @transform_0, window_bounds = array<i64: 256, 256>}, {transform_indices = @transform_1, window_bounds = array<i64: 256, 128>}, {transform_indices = @transform_2, window_bounds = array<i64: 1, 128>}, {transform_indices = @transform_3, window_bounds = array<i64: 256, 128>}]} {
    %c0_i32 = arith.constant 0 : i32
    %0 = arith.cmpi eq, %arg2, %c0_i32 : i32
    %1 = arith.extui %0 : i1 to i32
    %c0_i32_0 = arith.constant 0 : i32
    %2 = arith.cmpi ne, %1, %c0_i32_0 : i32
    scf.if %2 {
      %cst_10 = arith.constant 0.000000e+00 : f32
      %12 = vector.broadcast %cst_10 : f32 to vector<256x128xf32>
      %c0_11 = arith.constant 0 : index
      %c0_12 = arith.constant 0 : index
      %13 = vector.load %arg7[%c0_11, %c0_12] : memref<256x128xf32, #tpu.memory_space<vmem>>, vector<256x128xf32>
      tpu.vector_store %arg7[%c0_11, %c0_12], %12 {strides = array<i32>} : memref<256x128xf32, #tpu.memory_space<vmem>>, vector<256x128xf32>,
    } else {
    }
    %c0 = arith.constant 0 : index
    %c0_1 = arith.constant 0 : index
    %3 = vector.load %arg7[%c0, %c0_1] : memref<256x128xf32, #tpu.memory_space<vmem>>, vector<256x128xf32>
    %c0_2 = arith.constant 0 : index
    %c0_3 = arith.constant 0 : index
    %4 = vector.load %arg3[%c0_2, %c0_3] : memref<256x256xbf16, #tpu.memory_space<vmem>>, vector<256x256xbf16>
    %c0_4 = arith.constant 0 : index
    %c0_5 = arith.constant 0 : index
    %5 = vector.load %arg4[%c0_4, %c0_5] : memref<256x128xbf16, #tpu.memory_space<vmem>>, vector<256x128xbf16>
    %cst = arith.constant dense<0.000000e+00> : vector<256x128xf32>
    %6 = tpu.matmul %4, %5, %cst {dimension_numbers = #tpu.dot_dimension_numbers<[1], [0], [0], [1], [0, 0, 1, 1], [], []>} : vector<256x256xbf16>, vector<256x128xbf16>, vector<256x128xf32> -> vector<256x128xf32>
    %7 = arith.addf %3, %6 : vector<256x128xf32>
    %c0_6 = arith.constant 0 : index
    %c0_7 = arith.constant 0 : index
    %8 = vector.load %arg7[%c0_6, %c0_7] : memref<256x128xf32, #tpu.memory_space<vmem>>, vector<256x128xf32>
    tpu.vector_store %arg7[%c0_6, %c0_7], %7 {strides = array<i32>} : memref<256x128xf32, #tpu.memory_space<vmem>>, vector<256x128xf32>,
    %c0_i32_8 = arith.constant 0 : i32
    %9 = arith.cmpi eq, %arg2, %c0_i32_8 : i32
    %10 = arith.extui %9 : i1 to i32
    %c0_i32_9 = arith.constant 0 : i32
    %11 = arith.cmpi ne, %10, %c0_i32_9 : i32
    scf.if %11 {
      %c0_10 = arith.constant 0 : index
      %c0_11 = arith.constant 0 : index
      %12 = vector.load %arg7[%c0_10, %c0_11] : memref<256x128xf32, #tpu.memory_space<vmem>>, vector<256x128xf32>
      %c0_12 = arith.constant 0 : index
      %c0_13 = arith.constant 0 : index
      %13 = vector.load %arg5[%c0_12, %c0_13] : memref<1x128xf32, #tpu.memory_space<vmem>>, vector<1x128xf32>
      %14 = vector.broadcast %13 : vector<1x128xf32> to vector<256x128xf32>
      %15 = arith.addf %12, %14 : vector<256x128xf32>
      %c0_14 = arith.constant 0 : index
      %c0_15 = arith.constant 0 : index
      %16 = vector.load %arg6[%c0_14, %c0_15] : memref<256x128xf32, #tpu.memory_space<vmem>>, vector<256x128xf32>
      tpu.vector_store %arg6[%c0_14, %c0_15], %15 {strides = array<i32>} : memref<256x128xf32, #tpu.memory_space<vmem>>, vector<256x128xf32>,
    } else {
    }
    return
  }
  func.func @transform_0(%arg0: i32, %arg1: i32, %arg2: i32) -> (i32, i32) {
    %c0_i32 = arith.constant 0 : i32
    return %arg0, %arg2 : i32, i32
  }
  func.func @transform_1(%arg0: i32, %arg1: i32, %arg2: i32) -> (i32, i32) {
    %c0_i32 = arith.constant 0 : i32
    return %arg2, %arg1 : i32, i32
  }
  func.func @transform_2(%arg0: i32, %arg1: i32, %arg2: i32) -> (i32, i32) {
    %c0_i32 = arith.constant 0 : i32
    %c0_i32_0 = arith.constant 0 : i32
    return %c0_i32, %arg1 : i32, i32
  }
  func.func @transform_3(%arg0: i32, %arg1: i32, %arg2: i32) -> (i32, i32) {
    %c0_i32 = arith.constant 0 : i32
    return %arg0, %arg1 : i32, i32
  }
}

module attributes {stable_mosaic.version = 11 : i64} {
  func.func @kernel(%arg0: i32, %arg1: i32, %arg2: memref<1x256x64xf32, #tpu.memory_space<vmem>>, %arg3: memref<1x256x64xf32, #tpu.memory_space<vmem>>) attributes {dimension_semantics = [#tpu.dimension_semantics<parallel>, #tpu.dimension_semantics<parallel>], iteration_bounds = array<i64: 2, 1>, scalar_prefetch = 0 : i64, scratch_operands = 0 : i64, tpu.core_type = #tpu.core_type<tc>, window_params = [{transform_indices = @transform_0, window_bounds = array<i64: 1, 256, 64>}, {transform_indices = @transform_1, window_bounds = array<i64: 1, 256, 64>}]} {
    %c0 = arith.constant 0 : index
    %c0_0 = arith.constant 0 : index
    %c0_1 = arith.constant 0 : index
    %0 = vector.load %arg2[%c0, %c0_0, %c0_1] : memref<1x256x64xf32, #tpu.memory_space<vmem>>, vector<1x256x64xf32>
    %cst = arith.constant dense<0.000000e+00> : vector<1x64xf32>
    %1 = vector.multi_reduction <add>, %0, %cst [1] : vector<1x256x64xf32> to vector<1x64xf32>
    %2 = vector.shape_cast %1 : vector<1x64xf32> to vector<1x1x64xf32>
    %cst_2 = arith.constant 2.560000e+02 : f32
    %3 = vector.broadcast %cst_2 : f32 to vector<1x1x64xf32>
    %4 = arith.divf %2, %3 : vector<1x1x64xf32>
    %5 = vector.broadcast %4 : vector<1x1x64xf32> to vector<1x256x64xf32>
    %6 = arith.subf %0, %5 : vector<1x256x64xf32>
    %7 = arith.mulf %6, %6 : vector<1x256x64xf32>
    %cst_3 = arith.constant dense<0.000000e+00> : vector<1x64xf32>
    %8 = vector.multi_reduction <add>, %7, %cst_3 [1] : vector<1x256x64xf32> to vector<1x64xf32>
    %9 = vector.shape_cast %8 : vector<1x64xf32> to vector<1x1x64xf32>
    %cst_4 = arith.constant 2.560000e+02 : f32
    %10 = vector.broadcast %cst_4 : f32 to vector<1x1x64xf32>
    %11 = arith.divf %9, %10 : vector<1x1x64xf32>
    %12 = vector.broadcast %4 : vector<1x1x64xf32> to vector<1x256x64xf32>
    %13 = arith.subf %0, %12 : vector<1x256x64xf32>
    %cst_5 = arith.constant 9.99999974E-6 : f32
    %14 = vector.broadcast %cst_5 : f32 to vector<1x1x64xf32>
    %15 = arith.addf %11, %14 : vector<1x1x64xf32>
    %16 = math.rsqrt %15 : vector<1x1x64xf32>
    %17 = vector.broadcast %16 : vector<1x1x64xf32> to vector<1x256x64xf32>
    %18 = arith.mulf %13, %17 : vector<1x256x64xf32>
    %cst_6 = arith.constant 0.000000e+00 : f32
    %19 = vector.broadcast %cst_6 : f32 to vector<1x256x64xf32>
    %20 = arith.maximumf %18, %19 : vector<1x256x64xf32>
    %c0_7 = arith.constant 0 : index
    %c0_8 = arith.constant 0 : index
    %c0_9 = arith.constant 0 : index
    %21 = vector.load %arg3[%c0_7, %c0_8, %c0_9] : memref<1x256x64xf32, #tpu.memory_space<vmem>>, vector<1x256x64xf32>
    tpu.vector_store %arg3[%c0_7, %c0_8, %c0_9], %20 {strides = array<i32>} : memref<1x256x64xf32, #tpu.memory_space<vmem>>, vector<1x256x64xf32>,
    return
  }
  func.func @transform_0(%arg0: i32, %arg1: i32) -> (i32, i32, i32) {
    %c0_i32 = arith.constant 0 : i32
    %c0_i32_0 = arith.constant 0 : i32
    return %arg0, %c0_i32, %arg1 : i32, i32, i32
  }
  func.func @transform_1(%arg0: i32, %arg1: i32) -> (i32, i32, i32) {
    %c0_i32 = arith.constant 0 : i32
    %c0_i32_0 = arith.constant 0 : i32
    return %arg0, %c0_i32, %arg1 : i32, i32, i32
  }
}

module attributes {stable_mosaic.version = 11 : i64} {
  func.func @_matmul_bias_kernel(%arg0: i32, %arg1: i32, %arg2: i32, %arg3: memref<128x128xbf16, #tpu.memory_space<vmem>>, %arg4: memref<128x128xbf16, #tpu.memory_space<vmem>>, %arg5: memref<1x128xf32, #tpu.memory_space<vmem>>, %arg6: memref<128x128xf32, #tpu.memory_space<vmem>>, %arg7: memref<128x128xf32, #tpu.memory_space<vmem>>) attributes {dimension_semantics = [#tpu.dimension_semantics<parallel>, #tpu.dimension_semantics<parallel>, #tpu.dimension_semantics<arbitrary>], iteration_bounds = array<i64: 1, 1, 5>, scalar_prefetch = 0 : i64, scratch_operands = 1 : i64, tpu.core_type = #tpu.core_type<tc>, window_params = [{transform_indices = @transform_0, window_bounds = array<i64: 128, 128>}, {transform_indices = @transform_1, window_bounds = array<i64: 128, 128>}, {transform_indices = @transform_2, window_bounds = array<i64: 1, 128>}, {transform_indices = @transform_3, window_bounds = array<i64: 128, 128>}]} {
    %c0_i32 = arith.constant 0 : i32
    %0 = arith.cmpi eq, %arg2, %c0_i32 : i32
    %1 = arith.extui %0 : i1 to i32
    %c0_i32_0 = arith.constant 0 : i32
    %2 = arith.cmpi ne, %1, %c0_i32_0 : i32
    scf.if %2 {
      %cst_9 = arith.constant 0.000000e+00 : f32
      %12 = vector.broadcast %cst_9 : f32 to vector<128x128xf32>
      %c0_10 = arith.constant 0 : index
      %c0_11 = arith.constant 0 : index
      %13 = vector.load %arg7[%c0_10, %c0_11] : memref<128x128xf32, #tpu.memory_space<vmem>>, vector<128x128xf32>
      tpu.vector_store %arg7[%c0_10, %c0_11], %12 {strides = array<i32>} : memref<128x128xf32, #tpu.memory_space<vmem>>, vector<128x128xf32>,
    } else {
    }
    %c0 = arith.constant 0 : index
    %c0_1 = arith.constant 0 : index
    %3 = vector.load %arg7[%c0, %c0_1] : memref<128x128xf32, #tpu.memory_space<vmem>>, vector<128x128xf32>
    %c0_2 = arith.constant 0 : index
    %c0_3 = arith.constant 0 : index
    %4 = vector.load %arg3[%c0_2, %c0_3] : memref<128x128xbf16, #tpu.memory_space<vmem>>, vector<128x128xbf16>
    %c0_4 = arith.constant 0 : index
    %c0_5 = arith.constant 0 : index
    %5 = vector.load %arg4[%c0_4, %c0_5] : memref<128x128xbf16, #tpu.memory_space<vmem>>, vector<128x128xbf16>
    %cst = arith.constant dense<0.000000e+00> : vector<128x128xf32>
    %6 = tpu.matmul %4, %5, %cst {dimension_numbers = #tpu.dot_dimension_numbers<[1], [0], [0], [1], [0, 0, 1, 1], [], []>} : vector<128x128xbf16>, vector<128x128xbf16>, vector<128x128xf32> -> vector<128x128xf32>
    %7 = arith.addf %3, %6 : vector<128x128xf32>
    %c0_6 = arith.constant 0 : index
    %c0_7 = arith.constant 0 : index
    %8 = vector.load %arg7[%c0_6, %c0_7] : memref<128x128xf32, #tpu.memory_space<vmem>>, vector<128x128xf32>
    tpu.vector_store %arg7[%c0_6, %c0_7], %7 {strides = array<i32>} : memref<128x128xf32, #tpu.memory_space<vmem>>, vector<128x128xf32>,
    %c4_i32 = arith.constant 4 : i32
    %9 = arith.cmpi eq, %arg2, %c4_i32 : i32
    %10 = arith.extui %9 : i1 to i32
    %c0_i32_8 = arith.constant 0 : i32
    %11 = arith.cmpi ne, %10, %c0_i32_8 : i32
    scf.if %11 {
      %c0_9 = arith.constant 0 : index
      %c0_10 = arith.constant 0 : index
      %12 = vector.load %arg7[%c0_9, %c0_10] : memref<128x128xf32, #tpu.memory_space<vmem>>, vector<128x128xf32>
      %c0_11 = arith.constant 0 : index
      %c0_12 = arith.constant 0 : index
      %13 = vector.load %arg5[%c0_11, %c0_12] : memref<1x128xf32, #tpu.memory_space<vmem>>, vector<1x128xf32>
      %14 = vector.broadcast %13 : vector<1x128xf32> to vector<128x128xf32>
      %15 = arith.addf %12, %14 : vector<128x128xf32>
      %c0_13 = arith.constant 0 : index
      %c0_14 = arith.constant 0 : index
      %16 = vector.load %arg6[%c0_13, %c0_14] : memref<128x128xf32, #tpu.memory_space<vmem>>, vector<128x128xf32>
      tpu.vector_store %arg6[%c0_13, %c0_14], %15 {strides = array<i32>} : memref<128x128xf32, #tpu.memory_space<vmem>>, vector<128x128xf32>,
    } else {
    }
    return
  }
  func.func @transform_0(%arg0: i32, %arg1: i32, %arg2: i32) -> (i32, i32) {
    %c0_i32 = arith.constant 0 : i32
    return %arg0, %arg2 : i32, i32
  }
  func.func @transform_1(%arg0: i32, %arg1: i32, %arg2: i32) -> (i32, i32) {
    %c0_i32 = arith.constant 0 : i32
    return %arg2, %arg1 : i32, i32
  }
  func.func @transform_2(%arg0: i32, %arg1: i32, %arg2: i32) -> (i32, i32) {
    %c0_i32 = arith.constant 0 : i32
    %c0_i32_0 = arith.constant 0 : i32
    return %c0_i32, %arg1 : i32, i32
  }
  func.func @transform_3(%arg0: i32, %arg1: i32, %arg2: i32) -> (i32, i32) {
    %c0_i32 = arith.constant 0 : i32
    return %arg0, %arg1 : i32, i32
  }
}

module attributes {stable_mosaic.version = 11 : i64} {
  func.func @kernel(%arg0: i32, %arg1: i32, %arg2: memref<1x64x128xf32, #tpu.memory_space<vmem>>, %arg3: memref<1x64x128xf32, #tpu.memory_space<vmem>>) attributes {dimension_semantics = [#tpu.dimension_semantics<parallel>, #tpu.dimension_semantics<parallel>], iteration_bounds = array<i64: 2, 1>, scalar_prefetch = 0 : i64, scratch_operands = 0 : i64, tpu.core_type = #tpu.core_type<tc>, window_params = [{transform_indices = @transform_0, window_bounds = array<i64: 1, 64, 128>}, {transform_indices = @transform_1, window_bounds = array<i64: 1, 64, 128>}]} {
    %c0 = arith.constant 0 : index
    %c0_0 = arith.constant 0 : index
    %c0_1 = arith.constant 0 : index
    %0 = vector.load %arg2[%c0, %c0_0, %c0_1] : memref<1x64x128xf32, #tpu.memory_space<vmem>>, vector<1x64x128xf32>
    %cst = arith.constant dense<0.000000e+00> : vector<1x128xf32>
    %1 = vector.multi_reduction <add>, %0, %cst [1] : vector<1x64x128xf32> to vector<1x128xf32>
    %2 = vector.shape_cast %1 : vector<1x128xf32> to vector<1x1x128xf32>
    %cst_2 = arith.constant 6.400000e+01 : f32
    %3 = vector.broadcast %cst_2 : f32 to vector<1x1x128xf32>
    %4 = arith.divf %2, %3 : vector<1x1x128xf32>
    %5 = vector.broadcast %4 : vector<1x1x128xf32> to vector<1x64x128xf32>
    %6 = arith.subf %0, %5 : vector<1x64x128xf32>
    %7 = arith.mulf %6, %6 : vector<1x64x128xf32>
    %cst_3 = arith.constant dense<0.000000e+00> : vector<1x128xf32>
    %8 = vector.multi_reduction <add>, %7, %cst_3 [1] : vector<1x64x128xf32> to vector<1x128xf32>
    %9 = vector.shape_cast %8 : vector<1x128xf32> to vector<1x1x128xf32>
    %cst_4 = arith.constant 6.400000e+01 : f32
    %10 = vector.broadcast %cst_4 : f32 to vector<1x1x128xf32>
    %11 = arith.divf %9, %10 : vector<1x1x128xf32>
    %12 = vector.broadcast %4 : vector<1x1x128xf32> to vector<1x64x128xf32>
    %13 = arith.subf %0, %12 : vector<1x64x128xf32>
    %cst_5 = arith.constant 9.99999974E-6 : f32
    %14 = vector.broadcast %cst_5 : f32 to vector<1x1x128xf32>
    %15 = arith.addf %11, %14 : vector<1x1x128xf32>
    %16 = math.rsqrt %15 : vector<1x1x128xf32>
    %17 = vector.broadcast %16 : vector<1x1x128xf32> to vector<1x64x128xf32>
    %18 = arith.mulf %13, %17 : vector<1x64x128xf32>
    %cst_6 = arith.constant 0.000000e+00 : f32
    %19 = vector.broadcast %cst_6 : f32 to vector<1x64x128xf32>
    %20 = arith.maximumf %18, %19 : vector<1x64x128xf32>
    %c0_7 = arith.constant 0 : index
    %c0_8 = arith.constant 0 : index
    %c0_9 = arith.constant 0 : index
    %21 = vector.load %arg3[%c0_7, %c0_8, %c0_9] : memref<1x64x128xf32, #tpu.memory_space<vmem>>, vector<1x64x128xf32>
    tpu.vector_store %arg3[%c0_7, %c0_8, %c0_9], %20 {strides = array<i32>} : memref<1x64x128xf32, #tpu.memory_space<vmem>>, vector<1x64x128xf32>,
    return
  }
  func.func @transform_0(%arg0: i32, %arg1: i32) -> (i32, i32, i32) {
    %c0_i32 = arith.constant 0 : i32
    %c0_i32_0 = arith.constant 0 : i32
    return %arg0, %c0_i32, %arg1 : i32, i32, i32
  }
  func.func @transform_1(%arg0: i32, %arg1: i32) -> (i32, i32, i32) {
    %c0_i32 = arith.constant 0 : i32
    %c0_i32_0 = arith.constant 0 : i32
    return %arg0, %c0_i32, %arg1 : i32, i32, i32
  }
}

module attributes {stable_mosaic.version = 11 : i64} {
  func.func @_matmul_bias_kernel(%arg0: i32, %arg1: i32, %arg2: i32, %arg3: memref<32x128xbf16, #tpu.memory_space<vmem>>, %arg4: memref<128x256xbf16, #tpu.memory_space<vmem>>, %arg5: memref<1x256xf32, #tpu.memory_space<vmem>>, %arg6: memref<32x256xf32, #tpu.memory_space<vmem>>, %arg7: memref<32x256xf32, #tpu.memory_space<vmem>>) attributes {dimension_semantics = [#tpu.dimension_semantics<parallel>, #tpu.dimension_semantics<parallel>, #tpu.dimension_semantics<arbitrary>], iteration_bounds = array<i64: 1, 1, 9>, scalar_prefetch = 0 : i64, scratch_operands = 1 : i64, tpu.core_type = #tpu.core_type<tc>, window_params = [{transform_indices = @transform_0, window_bounds = array<i64: 32, 128>}, {transform_indices = @transform_1, window_bounds = array<i64: 128, 256>}, {transform_indices = @transform_2, window_bounds = array<i64: 1, 256>}, {transform_indices = @transform_3, window_bounds = array<i64: 32, 256>}]} {
    %c0_i32 = arith.constant 0 : i32
    %0 = arith.cmpi eq, %arg2, %c0_i32 : i32
    %1 = arith.extui %0 : i1 to i32
    %c0_i32_0 = arith.constant 0 : i32
    %2 = arith.cmpi ne, %1, %c0_i32_0 : i32
    scf.if %2 {
      %cst_9 = arith.constant 0.000000e+00 : f32
      %12 = vector.broadcast %cst_9 : f32 to vector<32x256xf32>
      %c0_10 = arith.constant 0 : index
      %c0_11 = arith.constant 0 : index
      %13 = vector.load %arg7[%c0_10, %c0_11] : memref<32x256xf32, #tpu.memory_space<vmem>>, vector<32x256xf32>
      tpu.vector_store %arg7[%c0_10, %c0_11], %12 {strides = array<i32>} : memref<32x256xf32, #tpu.memory_space<vmem>>, vector<32x256xf32>,
    } else {
    }
    %c0 = arith.constant 0 : index
    %c0_1 = arith.constant 0 : index
    %3 = vector.load %arg7[%c0, %c0_1] : memref<32x256xf32, #tpu.memory_space<vmem>>, vector<32x256xf32>
    %c0_2 = arith.constant 0 : index
    %c0_3 = arith.constant 0 : index
    %4 = vector.load %arg3[%c0_2, %c0_3] : memref<32x128xbf16, #tpu.memory_space<vmem>>, vector<32x128xbf16>
    %c0_4 = arith.constant 0 : index
    %c0_5 = arith.constant 0 : index
    %5 = vector.load %arg4[%c0_4, %c0_5] : memref<128x256xbf16, #tpu.memory_space<vmem>>, vector<128x256xbf16>
    %cst = arith.constant dense<0.000000e+00> : vector<32x256xf32>
    %6 = tpu.matmul %4, %5, %cst {dimension_numbers = #tpu.dot_dimension_numbers<[1], [0], [0], [1], [0, 0, 1, 1], [], []>} : vector<32x128xbf16>, vector<128x256xbf16>, vector<32x256xf32> -> vector<32x256xf32>
    %7 = arith.addf %3, %6 : vector<32x256xf32>
    %c0_6 = arith.constant 0 : index
    %c0_7 = arith.constant 0 : index
    %8 = vector.load %arg7[%c0_6, %c0_7] : memref<32x256xf32, #tpu.memory_space<vmem>>, vector<32x256xf32>
    tpu.vector_store %arg7[%c0_6, %c0_7], %7 {strides = array<i32>} : memref<32x256xf32, #tpu.memory_space<vmem>>, vector<32x256xf32>,
    %c8_i32 = arith.constant 8 : i32
    %9 = arith.cmpi eq, %arg2, %c8_i32 : i32
    %10 = arith.extui %9 : i1 to i32
    %c0_i32_8 = arith.constant 0 : i32
    %11 = arith.cmpi ne, %10, %c0_i32_8 : i32
    scf.if %11 {
      %c0_9 = arith.constant 0 : index
      %c0_10 = arith.constant 0 : index
      %12 = vector.load %arg7[%c0_9, %c0_10] : memref<32x256xf32, #tpu.memory_space<vmem>>, vector<32x256xf32>
      %c0_11 = arith.constant 0 : index
      %c0_12 = arith.constant 0 : index
      %13 = vector.load %arg5[%c0_11, %c0_12] : memref<1x256xf32, #tpu.memory_space<vmem>>, vector<1x256xf32>
      %14 = vector.broadcast %13 : vector<1x256xf32> to vector<32x256xf32>
      %15 = arith.addf %12, %14 : vector<32x256xf32>
      %c0_13 = arith.constant 0 : index
      %c0_14 = arith.constant 0 : index
      %16 = vector.load %arg6[%c0_13, %c0_14] : memref<32x256xf32, #tpu.memory_space<vmem>>, vector<32x256xf32>
      tpu.vector_store %arg6[%c0_13, %c0_14], %15 {strides = array<i32>} : memref<32x256xf32, #tpu.memory_space<vmem>>, vector<32x256xf32>,
    } else {
    }
    return
  }
  func.func @transform_0(%arg0: i32, %arg1: i32, %arg2: i32) -> (i32, i32) {
    %c0_i32 = arith.constant 0 : i32
    return %arg0, %arg2 : i32, i32
  }
  func.func @transform_1(%arg0: i32, %arg1: i32, %arg2: i32) -> (i32, i32) {
    %c0_i32 = arith.constant 0 : i32
    return %arg2, %arg1 : i32, i32
  }
  func.func @transform_2(%arg0: i32, %arg1: i32, %arg2: i32) -> (i32, i32) {
    %c0_i32 = arith.constant 0 : i32
    %c0_i32_0 = arith.constant 0 : i32
    return %c0_i32, %arg1 : i32, i32
  }
  func.func @transform_3(%arg0: i32, %arg1: i32, %arg2: i32) -> (i32, i32) {
    %c0_i32 = arith.constant 0 : i32
    return %arg0, %arg1 : i32, i32
  }
}

module attributes {stable_mosaic.version = 11 : i64} {
  func.func @kernel(%arg0: i32, %arg1: i32, %arg2: memref<1x16x128xf32, #tpu.memory_space<vmem>>, %arg3: memref<1x16x128xf32, #tpu.memory_space<vmem>>) attributes {dimension_semantics = [#tpu.dimension_semantics<parallel>, #tpu.dimension_semantics<parallel>], iteration_bounds = array<i64: 2, 2>, scalar_prefetch = 0 : i64, scratch_operands = 0 : i64, tpu.core_type = #tpu.core_type<tc>, window_params = [{transform_indices = @transform_0, window_bounds = array<i64: 1, 16, 128>}, {transform_indices = @transform_1, window_bounds = array<i64: 1, 16, 128>}]} {
    %c0 = arith.constant 0 : index
    %c0_0 = arith.constant 0 : index
    %c0_1 = arith.constant 0 : index
    %0 = vector.load %arg2[%c0, %c0_0, %c0_1] : memref<1x16x128xf32, #tpu.memory_space<vmem>>, vector<1x16x128xf32>
    %cst = arith.constant dense<0.000000e+00> : vector<1x128xf32>
    %1 = vector.multi_reduction <add>, %0, %cst [1] : vector<1x16x128xf32> to vector<1x128xf32>
    %2 = vector.shape_cast %1 : vector<1x128xf32> to vector<1x1x128xf32>
    %cst_2 = arith.constant 1.600000e+01 : f32
    %3 = vector.broadcast %cst_2 : f32 to vector<1x1x128xf32>
    %4 = arith.divf %2, %3 : vector<1x1x128xf32>
    %5 = vector.broadcast %4 : vector<1x1x128xf32> to vector<1x16x128xf32>
    %6 = arith.subf %0, %5 : vector<1x16x128xf32>
    %7 = arith.mulf %6, %6 : vector<1x16x128xf32>
    %cst_3 = arith.constant dense<0.000000e+00> : vector<1x128xf32>
    %8 = vector.multi_reduction <add>, %7, %cst_3 [1] : vector<1x16x128xf32> to vector<1x128xf32>
    %9 = vector.shape_cast %8 : vector<1x128xf32> to vector<1x1x128xf32>
    %cst_4 = arith.constant 1.600000e+01 : f32
    %10 = vector.broadcast %cst_4 : f32 to vector<1x1x128xf32>
    %11 = arith.divf %9, %10 : vector<1x1x128xf32>
    %12 = vector.broadcast %4 : vector<1x1x128xf32> to vector<1x16x128xf32>
    %13 = arith.subf %0, %12 : vector<1x16x128xf32>
    %cst_5 = arith.constant 9.99999974E-6 : f32
    %14 = vector.broadcast %cst_5 : f32 to vector<1x1x128xf32>
    %15 = arith.addf %11, %14 : vector<1x1x128xf32>
    %16 = math.rsqrt %15 : vector<1x1x128xf32>
    %17 = vector.broadcast %16 : vector<1x1x128xf32> to vector<1x16x128xf32>
    %18 = arith.mulf %13, %17 : vector<1x16x128xf32>
    %cst_6 = arith.constant 0.000000e+00 : f32
    %19 = vector.broadcast %cst_6 : f32 to vector<1x16x128xf32>
    %20 = arith.maximumf %18, %19 : vector<1x16x128xf32>
    %c0_7 = arith.constant 0 : index
    %c0_8 = arith.constant 0 : index
    %c0_9 = arith.constant 0 : index
    %21 = vector.load %arg3[%c0_7, %c0_8, %c0_9] : memref<1x16x128xf32, #tpu.memory_space<vmem>>, vector<1x16x128xf32>
    tpu.vector_store %arg3[%c0_7, %c0_8, %c0_9], %20 {strides = array<i32>} : memref<1x16x128xf32, #tpu.memory_space<vmem>>, vector<1x16x128xf32>,
    return
  }
  func.func @transform_0(%arg0: i32, %arg1: i32) -> (i32, i32, i32) {
    %c0_i32 = arith.constant 0 : i32
    %c0_i32_0 = arith.constant 0 : i32
    return %arg0, %c0_i32, %arg1 : i32, i32, i32
  }
  func.func @transform_1(%arg0: i32, %arg1: i32) -> (i32, i32, i32) {
    %c0_i32 = arith.constant 0 : i32
    %c0_i32_0 = arith.constant 0 : i32
    return %arg0, %c0_i32, %arg1 : i32, i32, i32
  }
}

module attributes {stable_mosaic.version = 11 : i64} {
  func.func @_matmul_bias_kernel(%arg0: i32, %arg1: i32, %arg2: i32, %arg3: memref<32x256xbf16, #tpu.memory_space<vmem>>, %arg4: memref<256x256xbf16, #tpu.memory_space<vmem>>, %arg5: memref<1x256xf32, #tpu.memory_space<vmem>>, %arg6: memref<32x256xf32, #tpu.memory_space<vmem>>, %arg7: memref<32x256xf32, #tpu.memory_space<vmem>>) attributes {dimension_semantics = [#tpu.dimension_semantics<parallel>, #tpu.dimension_semantics<parallel>, #tpu.dimension_semantics<arbitrary>], iteration_bounds = array<i64: 1, 1, 9>, scalar_prefetch = 0 : i64, scratch_operands = 1 : i64, tpu.core_type = #tpu.core_type<tc>, window_params = [{transform_indices = @transform_0, window_bounds = array<i64: 32, 256>}, {transform_indices = @transform_1, window_bounds = array<i64: 256, 256>}, {transform_indices = @transform_2, window_bounds = array<i64: 1, 256>}, {transform_indices = @transform_3, window_bounds = array<i64: 32, 256>}]} {
    %c0_i32 = arith.constant 0 : i32
    %0 = arith.cmpi eq, %arg2, %c0_i32 : i32
    %1 = arith.extui %0 : i1 to i32
    %c0_i32_0 = arith.constant 0 : i32
    %2 = arith.cmpi ne, %1, %c0_i32_0 : i32
    scf.if %2 {
      %cst_9 = arith.constant 0.000000e+00 : f32
      %12 = vector.broadcast %cst_9 : f32 to vector<32x256xf32>
      %c0_10 = arith.constant 0 : index
      %c0_11 = arith.constant 0 : index
      %13 = vector.load %arg7[%c0_10, %c0_11] : memref<32x256xf32, #tpu.memory_space<vmem>>, vector<32x256xf32>
      tpu.vector_store %arg7[%c0_10, %c0_11], %12 {strides = array<i32>} : memref<32x256xf32, #tpu.memory_space<vmem>>, vector<32x256xf32>,
    } else {
    }
    %c0 = arith.constant 0 : index
    %c0_1 = arith.constant 0 : index
    %3 = vector.load %arg7[%c0, %c0_1] : memref<32x256xf32, #tpu.memory_space<vmem>>, vector<32x256xf32>
    %c0_2 = arith.constant 0 : index
    %c0_3 = arith.constant 0 : index
    %4 = vector.load %arg3[%c0_2, %c0_3] : memref<32x256xbf16, #tpu.memory_space<vmem>>, vector<32x256xbf16>
    %c0_4 = arith.constant 0 : index
    %c0_5 = arith.constant 0 : index
    %5 = vector.load %arg4[%c0_4, %c0_5] : memref<256x256xbf16, #tpu.memory_space<vmem>>, vector<256x256xbf16>
    %cst = arith.constant dense<0.000000e+00> : vector<32x256xf32>
    %6 = tpu.matmul %4, %5, %cst {dimension_numbers = #tpu.dot_dimension_numbers<[1], [0], [0], [1], [0, 0, 1, 1], [], []>} : vector<32x256xbf16>, vector<256x256xbf16>, vector<32x256xf32> -> vector<32x256xf32>
    %7 = arith.addf %3, %6 : vector<32x256xf32>
    %c0_6 = arith.constant 0 : index
    %c0_7 = arith.constant 0 : index
    %8 = vector.load %arg7[%c0_6, %c0_7] : memref<32x256xf32, #tpu.memory_space<vmem>>, vector<32x256xf32>
    tpu.vector_store %arg7[%c0_6, %c0_7], %7 {strides = array<i32>} : memref<32x256xf32, #tpu.memory_space<vmem>>, vector<32x256xf32>,
    %c8_i32 = arith.constant 8 : i32
    %9 = arith.cmpi eq, %arg2, %c8_i32 : i32
    %10 = arith.extui %9 : i1 to i32
    %c0_i32_8 = arith.constant 0 : i32
    %11 = arith.cmpi ne, %10, %c0_i32_8 : i32
    scf.if %11 {
      %c0_9 = arith.constant 0 : index
      %c0_10 = arith.constant 0 : index
      %12 = vector.load %arg7[%c0_9, %c0_10] : memref<32x256xf32, #tpu.memory_space<vmem>>, vector<32x256xf32>
      %c0_11 = arith.constant 0 : index
      %c0_12 = arith.constant 0 : index
      %13 = vector.load %arg5[%c0_11, %c0_12] : memref<1x256xf32, #tpu.memory_space<vmem>>, vector<1x256xf32>
      %14 = vector.broadcast %13 : vector<1x256xf32> to vector<32x256xf32>
      %15 = arith.addf %12, %14 : vector<32x256xf32>
      %c0_13 = arith.constant 0 : index
      %c0_14 = arith.constant 0 : index
      %16 = vector.load %arg6[%c0_13, %c0_14] : memref<32x256xf32, #tpu.memory_space<vmem>>, vector<32x256xf32>
      tpu.vector_store %arg6[%c0_13, %c0_14], %15 {strides = array<i32>} : memref<32x256xf32, #tpu.memory_space<vmem>>, vector<32x256xf32>,
    } else {
    }
    return
  }
  func.func @transform_0(%arg0: i32, %arg1: i32, %arg2: i32) -> (i32, i32) {
    %c0_i32 = arith.constant 0 : i32
    return %arg0, %arg2 : i32, i32
  }
  func.func @transform_1(%arg0: i32, %arg1: i32, %arg2: i32) -> (i32, i32) {
    %c0_i32 = arith.constant 0 : i32
    return %arg2, %arg1 : i32, i32
  }
  func.func @transform_2(%arg0: i32, %arg1: i32, %arg2: i32) -> (i32, i32) {
    %c0_i32 = arith.constant 0 : i32
    %c0_i32_0 = arith.constant 0 : i32
    return %c0_i32, %arg1 : i32, i32
  }
  func.func @transform_3(%arg0: i32, %arg1: i32, %arg2: i32) -> (i32, i32) {
    %c0_i32 = arith.constant 0 : i32
    return %arg0, %arg1 : i32, i32
  }
}

module attributes {stable_mosaic.version = 11 : i64} {
  func.func @kernel(%arg0: i32, %arg1: i32, %arg2: memref<1x16x128xf32, #tpu.memory_space<vmem>>, %arg3: memref<1x16x128xf32, #tpu.memory_space<vmem>>, %arg4: memref<1x16x128xf32, #tpu.memory_space<vmem>>) attributes {dimension_semantics = [#tpu.dimension_semantics<parallel>, #tpu.dimension_semantics<parallel>], iteration_bounds = array<i64: 2, 2>, scalar_prefetch = 0 : i64, scratch_operands = 0 : i64, tpu.core_type = #tpu.core_type<tc>, window_params = [{transform_indices = @transform_0, window_bounds = array<i64: 1, 16, 128>}, {transform_indices = @transform_1, window_bounds = array<i64: 1, 16, 128>}, {transform_indices = @transform_2, window_bounds = array<i64: 1, 16, 128>}]} {
    %c0 = arith.constant 0 : index
    %c0_0 = arith.constant 0 : index
    %c0_1 = arith.constant 0 : index
    %0 = vector.load %arg2[%c0, %c0_0, %c0_1] : memref<1x16x128xf32, #tpu.memory_space<vmem>>, vector<1x16x128xf32>
    %cst = arith.constant dense<0.000000e+00> : vector<1x128xf32>
    %1 = vector.multi_reduction <add>, %0, %cst [1] : vector<1x16x128xf32> to vector<1x128xf32>
    %2 = vector.shape_cast %1 : vector<1x128xf32> to vector<1x1x128xf32>
    %cst_2 = arith.constant 1.600000e+01 : f32
    %3 = vector.broadcast %cst_2 : f32 to vector<1x1x128xf32>
    %4 = arith.divf %2, %3 : vector<1x1x128xf32>
    %5 = vector.broadcast %4 : vector<1x1x128xf32> to vector<1x16x128xf32>
    %6 = arith.subf %0, %5 : vector<1x16x128xf32>
    %7 = arith.mulf %6, %6 : vector<1x16x128xf32>
    %cst_3 = arith.constant dense<0.000000e+00> : vector<1x128xf32>
    %8 = vector.multi_reduction <add>, %7, %cst_3 [1] : vector<1x16x128xf32> to vector<1x128xf32>
    %9 = vector.shape_cast %8 : vector<1x128xf32> to vector<1x1x128xf32>
    %cst_4 = arith.constant 1.600000e+01 : f32
    %10 = vector.broadcast %cst_4 : f32 to vector<1x1x128xf32>
    %11 = arith.divf %9, %10 : vector<1x1x128xf32>
    %12 = vector.broadcast %4 : vector<1x1x128xf32> to vector<1x16x128xf32>
    %13 = arith.subf %0, %12 : vector<1x16x128xf32>
    %cst_5 = arith.constant 9.99999974E-6 : f32
    %14 = vector.broadcast %cst_5 : f32 to vector<1x1x128xf32>
    %15 = arith.addf %11, %14 : vector<1x1x128xf32>
    %16 = math.rsqrt %15 : vector<1x1x128xf32>
    %17 = vector.broadcast %16 : vector<1x1x128xf32> to vector<1x16x128xf32>
    %18 = arith.mulf %13, %17 : vector<1x16x128xf32>
    %c0_6 = arith.constant 0 : index
    %c0_7 = arith.constant 0 : index
    %c0_8 = arith.constant 0 : index
    %19 = vector.load %arg3[%c0_6, %c0_7, %c0_8] : memref<1x16x128xf32, #tpu.memory_space<vmem>>, vector<1x16x128xf32>
    %20 = arith.addf %18, %19 : vector<1x16x128xf32>
    %c0_9 = arith.constant 0 : index
    %c0_10 = arith.constant 0 : index
    %c0_11 = arith.constant 0 : index
    %21 = vector.load %arg4[%c0_9, %c0_10, %c0_11] : memref<1x16x128xf32, #tpu.memory_space<vmem>>, vector<1x16x128xf32>
    tpu.vector_store %arg4[%c0_9, %c0_10, %c0_11], %20 {strides = array<i32>} : memref<1x16x128xf32, #tpu.memory_space<vmem>>, vector<1x16x128xf32>,
    return
  }
  func.func @transform_0(%arg0: i32, %arg1: i32) -> (i32, i32, i32) {
    %c0_i32 = arith.constant 0 : i32
    %c0_i32_0 = arith.constant 0 : i32
    return %arg0, %c0_i32, %arg1 : i32, i32, i32
  }
  func.func @transform_1(%arg0: i32, %arg1: i32) -> (i32, i32, i32) {
    %c0_i32 = arith.constant 0 : i32
    %c0_i32_0 = arith.constant 0 : i32
    return %arg0, %c0_i32, %arg1 : i32, i32, i32
  }
  func.func @transform_2(%arg0: i32, %arg1: i32) -> (i32, i32, i32) {
    %c0_i32 = arith.constant 0 : i32
    %c0_i32_0 = arith.constant 0 : i32
    return %arg0, %c0_i32, %arg1 : i32, i32, i32
  }
}

module attributes {stable_mosaic.version = 11 : i64} {
  func.func @_matmul_bias_kernel(%arg0: i32, %arg1: i32, %arg2: i32, %arg3: memref<32x256xbf16, #tpu.memory_space<vmem>>, %arg4: memref<256x256xbf16, #tpu.memory_space<vmem>>, %arg5: memref<1x256xf32, #tpu.memory_space<vmem>>, %arg6: memref<32x256xf32, #tpu.memory_space<vmem>>, %arg7: memref<32x256xf32, #tpu.memory_space<vmem>>) attributes {dimension_semantics = [#tpu.dimension_semantics<parallel>, #tpu.dimension_semantics<parallel>, #tpu.dimension_semantics<arbitrary>], iteration_bounds = array<i64: 1, 2, 4>, scalar_prefetch = 0 : i64, scratch_operands = 1 : i64, tpu.core_type = #tpu.core_type<tc>, window_params = [{transform_indices = @transform_0, window_bounds = array<i64: 32, 256>}, {transform_indices = @transform_1, window_bounds = array<i64: 256, 256>}, {transform_indices = @transform_2, window_bounds = array<i64: 1, 256>}, {transform_indices = @transform_3, window_bounds = array<i64: 32, 256>}]} {
    %c0_i32 = arith.constant 0 : i32
    %0 = arith.cmpi eq, %arg2, %c0_i32 : i32
    %1 = arith.extui %0 : i1 to i32
    %c0_i32_0 = arith.constant 0 : i32
    %2 = arith.cmpi ne, %1, %c0_i32_0 : i32
    scf.if %2 {
      %cst_9 = arith.constant 0.000000e+00 : f32
      %12 = vector.broadcast %cst_9 : f32 to vector<32x256xf32>
      %c0_10 = arith.constant 0 : index
      %c0_11 = arith.constant 0 : index
      %13 = vector.load %arg7[%c0_10, %c0_11] : memref<32x256xf32, #tpu.memory_space<vmem>>, vector<32x256xf32>
      tpu.vector_store %arg7[%c0_10, %c0_11], %12 {strides = array<i32>} : memref<32x256xf32, #tpu.memory_space<vmem>>, vector<32x256xf32>,
    } else {
    }
    %c0 = arith.constant 0 : index
    %c0_1 = arith.constant 0 : index
    %3 = vector.load %arg7[%c0, %c0_1] : memref<32x256xf32, #tpu.memory_space<vmem>>, vector<32x256xf32>
    %c0_2 = arith.constant 0 : index
    %c0_3 = arith.constant 0 : index
    %4 = vector.load %arg3[%c0_2, %c0_3] : memref<32x256xbf16, #tpu.memory_space<vmem>>, vector<32x256xbf16>
    %c0_4 = arith.constant 0 : index
    %c0_5 = arith.constant 0 : index
    %5 = vector.load %arg4[%c0_4, %c0_5] : memref<256x256xbf16, #tpu.memory_space<vmem>>, vector<256x256xbf16>
    %cst = arith.constant dense<0.000000e+00> : vector<32x256xf32>
    %6 = tpu.matmul %4, %5, %cst {dimension_numbers = #tpu.dot_dimension_numbers<[1], [0], [0], [1], [0, 0, 1, 1], [], []>} : vector<32x256xbf16>, vector<256x256xbf16>, vector<32x256xf32> -> vector<32x256xf32>
    %7 = arith.addf %3, %6 : vector<32x256xf32>
    %c0_6 = arith.constant 0 : index
    %c0_7 = arith.constant 0 : index
    %8 = vector.load %arg7[%c0_6, %c0_7] : memref<32x256xf32, #tpu.memory_space<vmem>>, vector<32x256xf32>
    tpu.vector_store %arg7[%c0_6, %c0_7], %7 {strides = array<i32>} : memref<32x256xf32, #tpu.memory_space<vmem>>, vector<32x256xf32>,
    %c3_i32 = arith.constant 3 : i32
    %9 = arith.cmpi eq, %arg2, %c3_i32 : i32
    %10 = arith.extui %9 : i1 to i32
    %c0_i32_8 = arith.constant 0 : i32
    %11 = arith.cmpi ne, %10, %c0_i32_8 : i32
    scf.if %11 {
      %c0_9 = arith.constant 0 : index
      %c0_10 = arith.constant 0 : index
      %12 = vector.load %arg7[%c0_9, %c0_10] : memref<32x256xf32, #tpu.memory_space<vmem>>, vector<32x256xf32>
      %c0_11 = arith.constant 0 : index
      %c0_12 = arith.constant 0 : index
      %13 = vector.load %arg5[%c0_11, %c0_12] : memref<1x256xf32, #tpu.memory_space<vmem>>, vector<1x256xf32>
      %14 = vector.broadcast %13 : vector<1x256xf32> to vector<32x256xf32>
      %15 = arith.addf %12, %14 : vector<32x256xf32>
      %c0_13 = arith.constant 0 : index
      %c0_14 = arith.constant 0 : index
      %16 = vector.load %arg6[%c0_13, %c0_14] : memref<32x256xf32, #tpu.memory_space<vmem>>, vector<32x256xf32>
      tpu.vector_store %arg6[%c0_13, %c0_14], %15 {strides = array<i32>} : memref<32x256xf32, #tpu.memory_space<vmem>>, vector<32x256xf32>,
    } else {
    }
    return
  }
  func.func @transform_0(%arg0: i32, %arg1: i32, %arg2: i32) -> (i32, i32) {
    %c0_i32 = arith.constant 0 : i32
    return %arg0, %arg2 : i32, i32
  }
  func.func @transform_1(%arg0: i32, %arg1: i32, %arg2: i32) -> (i32, i32) {
    %c0_i32 = arith.constant 0 : i32
    return %arg2, %arg1 : i32, i32
  }
  func.func @transform_2(%arg0: i32, %arg1: i32, %arg2: i32) -> (i32, i32) {
    %c0_i32 = arith.constant 0 : i32
    %c0_i32_0 = arith.constant 0 : i32
    return %c0_i32, %arg1 : i32, i32
  }
  func.func @transform_3(%arg0: i32, %arg1: i32, %arg2: i32) -> (i32, i32) {
    %c0_i32 = arith.constant 0 : i32
    return %arg0, %arg1 : i32, i32
  }
}

module attributes {stable_mosaic.version = 11 : i64} {
  func.func @_matmul_bias_kernel(%arg0: i32, %arg1: i32, %arg2: i32, %arg3: memref<128x256xbf16, #tpu.memory_space<vmem>>, %arg4: memref<256x256xbf16, #tpu.memory_space<vmem>>, %arg5: memref<1x256xf32, #tpu.memory_space<vmem>>, %arg6: memref<128x256xf32, #tpu.memory_space<vmem>>, %arg7: memref<128x256xf32, #tpu.memory_space<vmem>>) attributes {dimension_semantics = [#tpu.dimension_semantics<parallel>, #tpu.dimension_semantics<parallel>, #tpu.dimension_semantics<arbitrary>], iteration_bounds = array<i64: 1, 1, 2>, scalar_prefetch = 0 : i64, scratch_operands = 1 : i64, tpu.core_type = #tpu.core_type<tc>, window_params = [{transform_indices = @transform_0, window_bounds = array<i64: 128, 256>}, {transform_indices = @transform_1, window_bounds = array<i64: 256, 256>}, {transform_indices = @transform_2, window_bounds = array<i64: 1, 256>}, {transform_indices = @transform_3, window_bounds = array<i64: 128, 256>}]} {
    %c0_i32 = arith.constant 0 : i32
    %0 = arith.cmpi eq, %arg2, %c0_i32 : i32
    %1 = arith.extui %0 : i1 to i32
    %c0_i32_0 = arith.constant 0 : i32
    %2 = arith.cmpi ne, %1, %c0_i32_0 : i32
    scf.if %2 {
      %cst_9 = arith.constant 0.000000e+00 : f32
      %12 = vector.broadcast %cst_9 : f32 to vector<128x256xf32>
      %c0_10 = arith.constant 0 : index
      %c0_11 = arith.constant 0 : index
      %13 = vector.load %arg7[%c0_10, %c0_11] : memref<128x256xf32, #tpu.memory_space<vmem>>, vector<128x256xf32>
      tpu.vector_store %arg7[%c0_10, %c0_11], %12 {strides = array<i32>} : memref<128x256xf32, #tpu.memory_space<vmem>>, vector<128x256xf32>,
    } else {
    }
    %c0 = arith.constant 0 : index
    %c0_1 = arith.constant 0 : index
    %3 = vector.load %arg7[%c0, %c0_1] : memref<128x256xf32, #tpu.memory_space<vmem>>, vector<128x256xf32>
    %c0_2 = arith.constant 0 : index
    %c0_3 = arith.constant 0 : index
    %4 = vector.load %arg3[%c0_2, %c0_3] : memref<128x256xbf16, #tpu.memory_space<vmem>>, vector<128x256xbf16>
    %c0_4 = arith.constant 0 : index
    %c0_5 = arith.constant 0 : index
    %5 = vector.load %arg4[%c0_4, %c0_5] : memref<256x256xbf16, #tpu.memory_space<vmem>>, vector<256x256xbf16>
    %cst = arith.constant dense<0.000000e+00> : vector<128x256xf32>
    %6 = tpu.matmul %4, %5, %cst {dimension_numbers = #tpu.dot_dimension_numbers<[1], [0], [0], [1], [0, 0, 1, 1], [], []>} : vector<128x256xbf16>, vector<256x256xbf16>, vector<128x256xf32> -> vector<128x256xf32>
    %7 = arith.addf %3, %6 : vector<128x256xf32>
    %c0_6 = arith.constant 0 : index
    %c0_7 = arith.constant 0 : index
    %8 = vector.load %arg7[%c0_6, %c0_7] : memref<128x256xf32, #tpu.memory_space<vmem>>, vector<128x256xf32>
    tpu.vector_store %arg7[%c0_6, %c0_7], %7 {strides = array<i32>} : memref<128x256xf32, #tpu.memory_space<vmem>>, vector<128x256xf32>,
    %c1_i32 = arith.constant 1 : i32
    %9 = arith.cmpi eq, %arg2, %c1_i32 : i32
    %10 = arith.extui %9 : i1 to i32
    %c0_i32_8 = arith.constant 0 : i32
    %11 = arith.cmpi ne, %10, %c0_i32_8 : i32
    scf.if %11 {
      %c0_9 = arith.constant 0 : index
      %c0_10 = arith.constant 0 : index
      %12 = vector.load %arg7[%c0_9, %c0_10] : memref<128x256xf32, #tpu.memory_space<vmem>>, vector<128x256xf32>
      %c0_11 = arith.constant 0 : index
      %c0_12 = arith.constant 0 : index
      %13 = vector.load %arg5[%c0_11, %c0_12] : memref<1x256xf32, #tpu.memory_space<vmem>>, vector<1x256xf32>
      %14 = vector.broadcast %13 : vector<1x256xf32> to vector<128x256xf32>
      %15 = arith.addf %12, %14 : vector<128x256xf32>
      %c0_13 = arith.constant 0 : index
      %c0_14 = arith.constant 0 : index
      %16 = vector.load %arg6[%c0_13, %c0_14] : memref<128x256xf32, #tpu.memory_space<vmem>>, vector<128x256xf32>
      tpu.vector_store %arg6[%c0_13, %c0_14], %15 {strides = array<i32>} : memref<128x256xf32, #tpu.memory_space<vmem>>, vector<128x256xf32>,
    } else {
    }
    return
  }
  func.func @transform_0(%arg0: i32, %arg1: i32, %arg2: i32) -> (i32, i32) {
    %c0_i32 = arith.constant 0 : i32
    return %arg0, %arg2 : i32, i32
  }
  func.func @transform_1(%arg0: i32, %arg1: i32, %arg2: i32) -> (i32, i32) {
    %c0_i32 = arith.constant 0 : i32
    return %arg2, %arg1 : i32, i32
  }
  func.func @transform_2(%arg0: i32, %arg1: i32, %arg2: i32) -> (i32, i32) {
    %c0_i32 = arith.constant 0 : i32
    %c0_i32_0 = arith.constant 0 : i32
    return %c0_i32, %arg1 : i32, i32
  }
  func.func @transform_3(%arg0: i32, %arg1: i32, %arg2: i32) -> (i32, i32) {
    %c0_i32 = arith.constant 0 : i32
    return %arg0, %arg1 : i32, i32
  }
}

module attributes {stable_mosaic.version = 11 : i64} {
  func.func @_matmul_bias_kernel(%arg0: i32, %arg1: i32, %arg2: i32, %arg3: memref<256x128xbf16, #tpu.memory_space<vmem>>, %arg4: memref<128x128xbf16, #tpu.memory_space<vmem>>, %arg5: memref<1x128xf32, #tpu.memory_space<vmem>>, %arg6: memref<256x128xf32, #tpu.memory_space<vmem>>, %arg7: memref<256x128xf32, #tpu.memory_space<vmem>>) attributes {dimension_semantics = [#tpu.dimension_semantics<parallel>, #tpu.dimension_semantics<parallel>, #tpu.dimension_semantics<arbitrary>], iteration_bounds = array<i64: 2, 1, 25>, scalar_prefetch = 0 : i64, scratch_operands = 1 : i64, tpu.core_type = #tpu.core_type<tc>, window_params = [{transform_indices = @transform_0, window_bounds = array<i64: 256, 128>}, {transform_indices = @transform_1, window_bounds = array<i64: 128, 128>}, {transform_indices = @transform_2, window_bounds = array<i64: 1, 128>}, {transform_indices = @transform_3, window_bounds = array<i64: 256, 128>}]} {
    %c0_i32 = arith.constant 0 : i32
    %0 = arith.cmpi eq, %arg2, %c0_i32 : i32
    %1 = arith.extui %0 : i1 to i32
    %c0_i32_0 = arith.constant 0 : i32
    %2 = arith.cmpi ne, %1, %c0_i32_0 : i32
    scf.if %2 {
      %cst_9 = arith.constant 0.000000e+00 : f32
      %12 = vector.broadcast %cst_9 : f32 to vector<256x128xf32>
      %c0_10 = arith.constant 0 : index
      %c0_11 = arith.constant 0 : index
      %13 = vector.load %arg7[%c0_10, %c0_11] : memref<256x128xf32, #tpu.memory_space<vmem>>, vector<256x128xf32>
      tpu.vector_store %arg7[%c0_10, %c0_11], %12 {strides = array<i32>} : memref<256x128xf32, #tpu.memory_space<vmem>>, vector<256x128xf32>,
    } else {
    }
    %c0 = arith.constant 0 : index
    %c0_1 = arith.constant 0 : index
    %3 = vector.load %arg7[%c0, %c0_1] : memref<256x128xf32, #tpu.memory_space<vmem>>, vector<256x128xf32>
    %c0_2 = arith.constant 0 : index
    %c0_3 = arith.constant 0 : index
    %4 = vector.load %arg3[%c0_2, %c0_3] : memref<256x128xbf16, #tpu.memory_space<vmem>>, vector<256x128xbf16>
    %c0_4 = arith.constant 0 : index
    %c0_5 = arith.constant 0 : index
    %5 = vector.load %arg4[%c0_4, %c0_5] : memref<128x128xbf16, #tpu.memory_space<vmem>>, vector<128x128xbf16>
    %cst = arith.constant dense<0.000000e+00> : vector<256x128xf32>
    %6 = tpu.matmul %4, %5, %cst {dimension_numbers = #tpu.dot_dimension_numbers<[1], [0], [0], [1], [0, 0, 1, 1], [], []>} : vector<256x128xbf16>, vector<128x128xbf16>, vector<256x128xf32> -> vector<256x128xf32>
    %7 = arith.addf %3, %6 : vector<256x128xf32>
    %c0_6 = arith.constant 0 : index
    %c0_7 = arith.constant 0 : index
    %8 = vector.load %arg7[%c0_6, %c0_7] : memref<256x128xf32, #tpu.memory_space<vmem>>, vector<256x128xf32>
    tpu.vector_store %arg7[%c0_6, %c0_7], %7 {strides = array<i32>} : memref<256x128xf32, #tpu.memory_space<vmem>>, vector<256x128xf32>,
    %c24_i32 = arith.constant 24 : i32
    %9 = arith.cmpi eq, %arg2, %c24_i32 : i32
    %10 = arith.extui %9 : i1 to i32
    %c0_i32_8 = arith.constant 0 : i32
    %11 = arith.cmpi ne, %10, %c0_i32_8 : i32
    scf.if %11 {
      %c0_9 = arith.constant 0 : index
      %c0_10 = arith.constant 0 : index
      %12 = vector.load %arg7[%c0_9, %c0_10] : memref<256x128xf32, #tpu.memory_space<vmem>>, vector<256x128xf32>
      %c0_11 = arith.constant 0 : index
      %c0_12 = arith.constant 0 : index
      %13 = vector.load %arg5[%c0_11, %c0_12] : memref<1x128xf32, #tpu.memory_space<vmem>>, vector<1x128xf32>
      %14 = vector.broadcast %13 : vector<1x128xf32> to vector<256x128xf32>
      %15 = arith.addf %12, %14 : vector<256x128xf32>
      %16 = math.tanh %15 : vector<256x128xf32>
      %c0_13 = arith.constant 0 : index
      %c0_14 = arith.constant 0 : index
      %17 = vector.load %arg6[%c0_13, %c0_14] : memref<256x128xf32, #tpu.memory_space<vmem>>, vector<256x128xf32>
      tpu.vector_store %arg6[%c0_13, %c0_14], %16 {strides = array<i32>} : memref<256x128xf32, #tpu.memory_space<vmem>>, vector<256x128xf32>,
    } else {
    }
    return
  }
  func.func @transform_0(%arg0: i32, %arg1: i32, %arg2: i32) -> (i32, i32) {
    %c0_i32 = arith.constant 0 : i32
    return %arg0, %arg2 : i32, i32
  }
  func.func @transform_1(%arg0: i32, %arg1: i32, %arg2: i32) -> (i32, i32) {
    %c0_i32 = arith.constant 0 : i32
    return %arg2, %arg1 : i32, i32
  }
  func.func @transform_2(%arg0: i32, %arg1: i32, %arg2: i32) -> (i32, i32) {
    %c0_i32 = arith.constant 0 : i32
    %c0_i32_0 = arith.constant 0 : i32
    return %c0_i32, %arg1 : i32, i32
  }
  func.func @transform_3(%arg0: i32, %arg1: i32, %arg2: i32) -> (i32, i32) {
    %c0_i32 = arith.constant 0 : i32
    return %arg0, %arg1 : i32, i32
  }
}

</mosaic_0001>

<bundles_post_ra>
// kernel: generator_forward.20
= control target key start
LH: loop header
LB: loop body
LE: loop exit
PB: predicated region body
PF: predicated region fallthrough
CT: control target
= control target key end

     0   :  { %s640_s6 = smov 0   ;;  %s642_s7 = smov 0   ;;  %s1200_s0 = inlined_call_operand.vmem [shape: f32[2,256,64], index: 0, kind: input, shape index: {}]   ;;  %s1201_s1 = inlined_call_operand.vmem [shape: f32[2,256,64], index: 1, kind: output, shape index: {}]  }
   0x1   :  { %s644_s8 = smov 0  }
   0x2 LB: > { %s23_s9 = sadd.s32 1, %s624_s7  ;;  %p571_p0 = scmp.ge.s32.totalorder %s628_s8, 1  ;;  %s628_s8 = sphi %s644_s8, %s11_s8   ;;  %s624_s7 = sphi %s642_s7, %s1203_s7   ;;  %s620_s6 = sphi %s640_s6, %s1202_s6  }
   0x3   : > { %p25_p1 = scmp.ge.s32.totalorder %s23_s9, 2  ;;  %p106_p2 = scmp.lt.s32.totalorder %s628_s8, 3 }
   0x5   : > { %s1205_s9 = smov (%p25_p1, %s23_s9), 0  ;;  %p107_p3 = pnand %p571_p0, %p106_p2 }
   0x6   : > { %p132_p4 = scmp.lt.s32.totalorder (!%p107_p3), %s620_s6, 1  ;;  %vm180_vm0 = vcmask (!%p107_p3), 523264  }
   0x7   : > { %110 = sbr.rel (%p107_p3) target bundleno = 210 (0xd2), region = 24 }
   0xe   : > { %s1207_s6 = smov (!%p132_p4, %s620_s6), 1 }
   0xf   : > { %s578_s10 = sshll.u32 %s1207_s6, 8 }
  0x10   : > { %s666_s13 = scalar_lea.vmem %s1200_s0, %s578_s10  ;;  %s1069_s16 = scalar_lea.vmem %s1201_s1, %s578_s10 }
  0x11   : > { %v669_v0 = vld [vmem:[%s666_s13] sm:$0xff]  ;;  %v672_v1 = vld [vmem:[%s666_s13 + $0x8] sm:$0xff]  ;;  %v675_v2 = vld [vmem:[%s666_s13 + $0x10] sm:$0xff] }
  0x12   : > { %v678_v3 = vld [vmem:[%s666_s13 + $0x18] sm:$0xff]  ;;  %v181_v4 = vsel %vm180_vm0, %v669_v0, 0.0  ;;  %v182_v5 = vsel %vm180_vm0, %v672_v1, 0.0  ;;  %v184_v6 = vsel %vm180_vm0, %v675_v2, 0.0  ;;  %v687_v7 = vld [vmem:[%s666_s13 + $0x20] sm:$0xff]  ;;  %v692_v10 = vld [vmem:[%s666_s13 + $0x28] sm:$0xff] }
  0x13   : > { %v183_v8 = vadd.f32 %v182_v5, %v181_v4  ;;  %v186_v9 = vsel %vm180_vm0, %v678_v3, 0.0  ;;  %v188_v12 = vsel %vm180_vm0, %v687_v7, 0.0  ;;  %v697_v13 = vld [vmem:[%s666_s13 + $0x30] sm:$0xff]  ;;  %v190_v15 = vsel %vm180_vm0, %v692_v10, 0.0  ;;  %v702_v16 = vld [vmem:[%s666_s13 + $0x38] sm:$0xff]  ;;  %v707_v19 = vld [vmem:[%s666_s13 + $0x40] sm:$0xff] }
  0x14   : > { %v192_v18 = vsel %vm180_vm0, %v697_v13, 0.0  ;;  %v194_v21 = vsel %vm180_vm0, %v702_v16, 0.0  ;;  %v712_v22 = vld [vmem:[%s666_s13 + $0x48] sm:$0xff]  ;;  %v196_v24 = vsel %vm180_vm0, %v707_v19, 0.0  ;;  %v717_v25 = vld [vmem:[%s666_s13 + $0x50] sm:$0xff]  ;;  %v722_v28 = vld [vmem:[%s666_s13 + $0x58] sm:$0xff] }
  0x15   : > { %v185_v11 = vadd.f32 %v184_v6, %v183_v8  ;;  %v198_v27 = vsel %vm180_vm0, %v712_v22, 0.0  ;;  %v200_v30 = vsel %vm180_vm0, %v717_v25, 0.0  ;;  %v727_v31 = vld [vmem:[%s666_s13 + $0x60] sm:$0xff]  ;;  %v202_v33 = vsel %vm180_vm0, %v722_v28, 0.0  ;;  %v732_v34 = vld [vmem:[%s666_s13 + $0x68] sm:$0xff]  ;;  %v737_v37 = vld [vmem:[%s666_s13 + $0x70] sm:$0xff] }
  0x16   : > { %v204_v36 = vsel %vm180_vm0, %v727_v31, 0.0  ;;  %v206_v39 = vsel %vm180_vm0, %v732_v34, 0.0  ;;  %v742_v40 = vld [vmem:[%s666_s13 + $0x78] sm:$0xff]  ;;  %v208_v42 = vsel %vm180_vm0, %v737_v37, 0.0  ;;  %v747_v43 = vld [vmem:[%s666_s13 + $0x80] sm:$0xff]  ;;  %v752_v46 = vld [vmem:[%s666_s13 + $0x88] sm:$0xff] }
  0x17   : > { %v187_v14 = vadd.f32 %v186_v9, %v185_v11  ;;  %v210_v45 = vsel %vm180_vm0, %v742_v40, 0.0  ;;  %v212_v48 = vsel %vm180_vm0, %v747_v43, 0.0  ;;  %v757_v49 = vld [vmem:[%s666_s13 + $0x90] sm:$0xff]  ;;  %v214_v51 = vsel %vm180_vm0, %v752_v46, 0.0  ;;  %v762_v52 = vld [vmem:[%s666_s13 + $0x98] sm:$0xff]  ;;  %v767_v55 = vld [vmem:[%s666_s13 + $0xa0] sm:$0xff] }
  0x18   : > { %v216_v54 = vsel %vm180_vm0, %v757_v49, 0.0  ;;  %v218_v57 = vsel %vm180_vm0, %v762_v52, 0.0  ;;  %v772_v58 = vld [vmem:[%s666_s13 + $0xa8] sm:$0xff]  ;;  %v220_v60 = vsel %vm180_vm0, %v767_v55, 0.0  ;;  %v777_v61 = vld [vmem:[%s666_s13 + $0xb0] sm:$0xff]  ;;  %v782_v4 = vld [vmem:[%s666_s13 + $0xb8] sm:$0xff] }
  0x19   : > { %v189_v17 = vadd.f32 %v188_v12, %v187_v14  ;;  %v222_v63 = vsel %vm180_vm0, %v772_v58, 0.0  ;;  %v224_v6 = vsel %vm180_vm0, %v777_v61, 0.0  ;;  %v787_v8 = vld [vmem:[%s666_s13 + $0xc0] sm:$0xff]  ;;  %v226_v11 = vsel %vm180_vm0, %v782_v4, 0.0  ;;  %v792_v12 = vld [vmem:[%s666_s13 + $0xc8] sm:$0xff] }
  0x1b   : > { %v191_v20 = vadd.f32 %v190_v15, %v189_v17  ;;  %v228_v15 = vsel %vm180_vm0, %v787_v8, 0.0  ;;  %v797_v17 = vld [vmem:[%s666_s13 + $0xd0] sm:$0xff] }
  0x1d   : > { %v193_v23 = vadd.f32 %v192_v18, %v191_v20  ;;  %v230_v20 = vsel %vm180_vm0, %v792_v12, 0.0 }
  0x1f   : > { %v195_v26 = vadd.f32 %v194_v21, %v193_v23  ;;  %v802_v21 = vld [vmem:[%s666_s13 + $0xd8] sm:$0xff] }
  0x21   : > { %v197_v29 = vadd.f32 %v196_v24, %v195_v26  ;;  %v232_v24 = vsel %vm180_vm0, %v797_v17, 0.0  ;;  %v807_v26 = vld [vmem:[%s666_s13 + $0xe0] sm:$0xff] }
  0x23   : > { %v199_v32 = vadd.f32 %v198_v27, %v197_v29  ;;  %v234_v29 = vsel %vm180_vm0, %v802_v21, 0.0 }
  0x25   : > { %v201_v35 = vadd.f32 %v200_v30, %v199_v32  ;;  %v812_v30 = vld [vmem:[%s666_s13 + $0xe8] sm:$0xff] }
  0x27   : > { %v203_v38 = vadd.f32 %v202_v33, %v201_v35  ;;  %v236_v33 = vsel %vm180_vm0, %v807_v26, 0.0  ;;  %v817_v35 = vld [vmem:[%s666_s13 + $0xf0] sm:$0xff] }
  0x29   : > { %v205_v41 = vadd.f32 %v204_v36, %v203_v38  ;;  %v238_v38 = vsel %vm180_vm0, %v812_v30, 0.0 }
  0x2b   : > { %v207_v44 = vadd.f32 %v206_v39, %v205_v41  ;;  %v822_v39 = vld [vmem:[%s666_s13 + $0xf8] sm:$0xff] }
  0x2d   : > { %v209_v47 = vadd.f32 %v208_v42, %v207_v44  ;;  %v240_v42 = vsel %vm180_vm0, %v817_v35, 0.0 }
  0x2f   : > { %v211_v50 = vadd.f32 %v210_v45, %v209_v47  ;;  %v242_v45 = vsel %vm180_vm0, %v822_v39, 0.0 }
  0x31   : > { %v213_v53 = vadd.f32 %v212_v48, %v211_v50 }
  0x33   : > { %v215_v56 = vadd.f32 %v214_v51, %v213_v53 }
  0x35   : > { %v217_v59 = vadd.f32 %v216_v54, %v215_v56 }
  0x37   : > { %v219_v62 = vadd.f32 %v218_v57, %v217_v59 }
  0x39   : > { %v221_v5 = vadd.f32 %v220_v60, %v219_v62 }
  0x3b   : > { %v223_v9 = vadd.f32 %v222_v63, %v221_v5 }
  0x3d   : > { %v225_v14 = vadd.f32 %v224_v6, %v223_v9 }
  0x3f   : > { %v227_v18 = vadd.f32 %v226_v11, %v225_v14 }
  0x41   : > { %v229_v23 = vadd.f32 %v228_v15, %v227_v18 }
  0x43   : > { %v231_v27 = vadd.f32 %v230_v20, %v229_v23 }
  0x45   : > { %v233_v32 = vadd.f32 %v232_v24, %v231_v27 }
  0x47   : > { %v235_v36 = vadd.f32 %v234_v29, %v233_v32 }
  0x49   : > { %v237_v41 = vadd.f32 %v236_v33, %v235_v36 }
  0x4b   : > { %v239_v44 = vadd.f32 %v238_v38, %v237_v41 }
  0x4d   : > { %v241_v47 = vadd.f32 %v240_v42, %v239_v44 }
  0x4f   : > { %v243_v48 = vadd.f32 %v242_v45, %v241_v47 }
  0x51   : > { %v244_v50 = vrot.slane %v243_v48, 4 }
  0x53   : > { %v245_v51 = vadd.f32 %v244_v50, %v243_v48 }
  0x55   : > { %v246_v53 = vrot.slane %v245_v51, 2 }
  0x57   : > { %v247_v54 = vadd.f32 %v246_v53, %v245_v51 }
  0x59   : > { %v248_v56 = vrot.slane %v247_v54, 1 }
  0x5b   : > { %v249_v57 = vadd.f32 %v248_v56, %v247_v54 }
  0x5d   : > { %v828_v59 = vmul.f32 0.00390625, %v249_v57 }
  0x5f   : > { %v832_v60 = vsub.f32 %v669_v0, %v828_v59  ;;  %v836_v62 = vsub.f32 %v672_v1, %v828_v59  ;;  %v840_v63 = vsub.f32 %v675_v2, %v828_v59  ;;  %v844_v5 = vsub.f32 %v678_v3, %v828_v59 }
  0x60   : > { %v848_v6 = vsub.f32 %v687_v7, %v828_v59  ;;  %v858_v2 = vsub.f32 %v692_v10, %v828_v59  ;;  %v864_v7 = vsub.f32 %v697_v13, %v828_v59  ;;  %v873_v10 = vsub.f32 %v702_v16, %v828_v59 }
  0x61   : > { %v284_v0 = vmul.f32 %v832_v60, %v832_v60  ;;  %v285_v9 = vmul.f32 %v836_v62, %v836_v62  ;;  %v286_v1 = vmul.f32 %v840_v63, %v840_v63  ;;  %v287_v3 = vmul.f32 %v844_v5, %v844_v5 }
  0x62   : > { %v288_v11 = vmul.f32 %v848_v6, %v848_v6  ;;  %v289_v23 = vmul.f32 %v858_v2, %v858_v2  ;;  %v880_v27 = vsub.f32 %v707_v19, %v828_v59  ;;  %v290_v29 = vmul.f32 %v864_v7, %v864_v7 }
  0x63   : > { %v316_v14 = vsel %vm180_vm0, %v284_v0, 0.0  ;;  %v317_v15 = vsel %vm180_vm0, %v285_v9, 0.0  ;;  %v319_v18 = vsel %vm180_vm0, %v286_v1, 0.0  ;;  %v321_v13 = vsel %vm180_vm0, %v287_v3, 0.0 }
  0x64   : > { %v318_v20 = vadd.f32 %v317_v15, %v316_v14  ;;  %v323_v32 = vsel %vm180_vm0, %v288_v11, 0.0  ;;  %v887_v16 = vsub.f32 %v712_v22, %v828_v59  ;;  %v291_v36 = vmul.f32 %v873_v10, %v873_v10 }
  0x65   : > { %v325_v38 = vsel %vm180_vm0, %v289_v23, 0.0  ;;  %v894_v19 = vsub.f32 %v717_v25, %v828_v59  ;;  %v292_v42 = vmul.f32 %v880_v27, %v880_v27  ;;  %v327_v44 = vsel %vm180_vm0, %v290_v29, 0.0 }
  0x66   : > { %v320_v24 = vadd.f32 %v319_v18, %v318_v20  ;;  %v901_v22 = vsub.f32 %v722_v28, %v828_v59  ;;  %v293_v47 = vmul.f32 %v887_v16, %v887_v16  ;;  %v329_v48 = vsel %vm180_vm0, %v291_v36, 0.0 }
  0x67   : > { %v908_v25 = vsub.f32 %v727_v31, %v828_v59  ;;  %v294_v51 = vmul.f32 %v894_v19, %v894_v19  ;;  %v331_v53 = vsel %vm180_vm0, %v292_v42, 0.0  ;;  %v915_v28 = vsub.f32 %v732_v34, %v828_v59 }
  0x68   : > { %v322_v33 = vadd.f32 %v321_v13, %v320_v24  ;;  %v295_v56 = vmul.f32 %v901_v22, %v901_v22  ;;  %v333_v57 = vsel %vm180_vm0, %v293_v47, 0.0  ;;  %v922_v31 = vsub.f32 %v737_v37, %v828_v59 }
  0x69   : > { %v296_v9 = vmul.f32 %v908_v25, %v908_v25  ;;  %v335_v1 = vsel %vm180_vm0, %v294_v51, 0.0  ;;  %v929_v34 = vsub.f32 %v742_v40, %v828_v59  ;;  %v297_v11 = vmul.f32 %v915_v28, %v915_v28 }
  0x6a   : > { %v324_v41 = vadd.f32 %v323_v32, %v322_v33  ;;  %v337_v14 = vsel %vm180_vm0, %v295_v56, 0.0  ;;  %v936_v37 = vsub.f32 %v747_v43, %v828_v59  ;;  %v298_v18 = vmul.f32 %v922_v31, %v922_v31 }
  0x6b   : > { %v339_v20 = vsel %vm180_vm0, %v296_v9, 0.0  ;;  %v943_v40 = vsub.f32 %v752_v46, %v828_v59  ;;  %v299_v13 = vmul.f32 %v929_v34, %v929_v34  ;;  %v341_v24 = vsel %vm180_vm0, %v297_v11, 0.0 }
  0x6c   : > { %v326_v45 = vadd.f32 %v325_v38, %v324_v41  ;;  %v950_v43 = vsub.f32 %v757_v49, %v828_v59  ;;  %v300_v32 = vmul.f32 %v936_v37, %v936_v37  ;;  %v343_v33 = vsel %vm180_vm0, %v298_v18, 0.0 }
  0x6d   : > { %v957_v46 = vsub.f32 %v762_v52, %v828_v59  ;;  %v301_v38 = vmul.f32 %v943_v40, %v943_v40  ;;  %v345_v41 = vsel %vm180_vm0, %v299_v13, 0.0  ;;  %v964_v49 = vsub.f32 %v767_v55, %v828_v59 }
  0x6e   : > { %v328_v50 = vadd.f32 %v327_v44, %v326_v45  ;;  %v302_v44 = vmul.f32 %v950_v43, %v950_v43  ;;  %v347_v45 = vsel %vm180_vm0, %v300_v32, 0.0  ;;  %v971_v52 = vsub.f32 %v772_v58, %v828_v59 }
  0x6f   : > { %v978_v55 = vsub.f32 %v777_v61, %v828_v59  ;;  %v985_v58 = vsub.f32 %v782_v4, %v828_v59  ;;  %v992_v61 = vsub.f32 %v787_v8, %v828_v59  ;;  %v999_v4 = vsub.f32 %v792_v12, %v828_v59 }
  0x70   : > { %v330_v54 = vadd.f32 %v329_v48, %v328_v50  ;;  %v303_v48 = vmul.f32 %v957_v46, %v957_v46  ;;  %v349_v50 = vsel %vm180_vm0, %v301_v38, 0.0  ;;  %v1006_v8 = vsub.f32 %v797_v17, %v828_v59 }
  0x71   : > { %v1013_v12 = vsub.f32 %v802_v21, %v828_v59  ;;  %v1020_v17 = vsub.f32 %v807_v26, %v828_v59  ;;  %v1027_v21 = vsub.f32 %v812_v30, %v828_v59  ;;  %v1034_v26 = vsub.f32 %v817_v35, %v828_v59 }
  0x72   : > { %v332_v0 = vadd.f32 %v331_v53, %v330_v54  ;;  %v304_v53 = vmul.f32 %v964_v49, %v964_v49  ;;  %v351_v54 = vsel %vm180_vm0, %v302_v44, 0.0  ;;  %v1041_v30 = vsub.f32 %v822_v39, %v828_v59 }
  0x73   : > { %v314_v35 = vmul.f32 %v1034_v26, %v1034_v26 }
  0x74   : > { %v334_v3 = vadd.f32 %v333_v57, %v332_v0  ;;  %v305_v57 = vmul.f32 %v971_v52, %v971_v52  ;;  %v353_v0 = vsel %vm180_vm0, %v303_v48, 0.0 }
  0x75   : > { %v375_v39 = vsel %vm180_vm0, %v314_v35, 0.0 }
  0x76   : > { %v336_v15 = vadd.f32 %v335_v1, %v334_v3  ;;  %v306_v1 = vmul.f32 %v978_v55, %v978_v55  ;;  %v355_v3 = vsel %vm180_vm0, %v304_v53, 0.0 }
  0x78   : > { %v338_v23 = vadd.f32 %v337_v14, %v336_v15  ;;  %v307_v14 = vmul.f32 %v985_v58, %v985_v58  ;;  %v357_v15 = vsel %vm180_vm0, %v305_v57, 0.0  ;;  %v315_v57 = vmul.f32 %v1041_v30, %v1041_v30 }
  0x7a   : > { %v340_v29 = vadd.f32 %v339_v20, %v338_v23  ;;  %v308_v20 = vmul.f32 %v992_v61, %v992_v61  ;;  %v359_v23 = vsel %vm180_vm0, %v306_v1, 0.0  ;;  %v377_v1 = vsel %vm180_vm0, %v315_v57, 0.0 }
  0x7c   : > { %v342_v36 = vadd.f32 %v341_v24, %v340_v29  ;;  %v309_v24 = vmul.f32 %v999_v4, %v999_v4  ;;  %v361_v29 = vsel %vm180_vm0, %v307_v14, 0.0 }
  0x7e   : > { %v344_v42 = vadd.f32 %v343_v33, %v342_v36  ;;  %v310_v33 = vmul.f32 %v1006_v8, %v1006_v8  ;;  %v363_v36 = vsel %vm180_vm0, %v308_v20, 0.0 }
  0x80   : > { %v346_v47 = vadd.f32 %v345_v41, %v344_v42  ;;  %v311_v41 = vmul.f32 %v1013_v12, %v1013_v12  ;;  %v365_v42 = vsel %vm180_vm0, %v309_v24, 0.0 }
  0x82   : > { %v348_v51 = vadd.f32 %v347_v45, %v346_v47  ;;  %v312_v45 = vmul.f32 %v1020_v17, %v1020_v17  ;;  %v367_v47 = vsel %vm180_vm0, %v310_v33, 0.0 }
  0x84   : > { %v350_v56 = vadd.f32 %v349_v50, %v348_v51  ;;  %v313_v50 = vmul.f32 %v1027_v21, %v1027_v21  ;;  %v369_v51 = vsel %vm180_vm0, %v311_v41, 0.0 }
  0x86   : > { %v352_v9 = vadd.f32 %v351_v54, %v350_v56  ;;  %v371_v54 = vsel %vm180_vm0, %v312_v45, 0.0 }
  0x88   : > { %v354_v11 = vadd.f32 %v353_v0, %v352_v9  ;;  %v373_v0 = vsel %vm180_vm0, %v313_v50, 0.0 }
  0x8a   : > { %v356_v18 = vadd.f32 %v355_v3, %v354_v11 }
  0x8c   : > { %v358_v13 = vadd.f32 %v357_v15, %v356_v18 }
  0x8e   : > { %v360_v32 = vadd.f32 %v359_v23, %v358_v13 }
  0x90   : > { %v362_v38 = vadd.f32 %v361_v29, %v360_v32 }
  0x92   : > { %v364_v44 = vadd.f32 %v363_v36, %v362_v38 }
  0x94   : > { %v366_v48 = vadd.f32 %v365_v42, %v364_v44 }
  0x96   : > { %v368_v53 = vadd.f32 %v367_v47, %v366_v48 }
  0x98   : > { %v370_v56 = vadd.f32 %v369_v51, %v368_v53 }
  0x9a   : > { %v372_v9 = vadd.f32 %v371_v54, %v370_v56 }
  0x9c   : > { %v374_v59 = vadd.f32 %v373_v0, %v372_v9 }
  0x9e   : > { %v376_v3 = vadd.f32 %v375_v39, %v374_v59 }
  0xa0   : > { %v378_v11 = vadd.f32 %v377_v1, %v376_v3 }
  0xa2   : > { %v379_v14 = vrot.slane %v378_v11, 4 }
  0xa4   : > { %v380_v15 = vadd.f32 %v379_v14, %v378_v11 }
  0xa6   : > { %v381_v18 = vrot.slane %v380_v15, 2 }
  0xa8   : > { %v382_v20 = vadd.f32 %v381_v18, %v380_v15 }
  0xaa   : > { %v383_v23 = vrot.slane %v382_v20, 1 }
  0xac   : > { %v384_v13 = vadd.f32 %v383_v23, %v382_v20 }
  0xae   : > { %v385_v24 = vmul.f32 0.00390625, %v384_v13 }
  0xb0   : > { %v386_v29 = vadd.f32 1e-05, %v385_v24 }
  0xb2   : > { %604 = vrsqrt.f32 %v386_v29 }
  0xbc   : > { %v1054_v32 = vpop.eup %604 }
  0xbd   : > { %v388_v33 = vmul.f32 %v1054_v32, %v832_v60  ;;  %v389_v36 = vmul.f32 %v1054_v32, %v836_v62  ;;  %v390_v38 = vmul.f32 %v1054_v32, %v840_v63  ;;  %v391_v41 = vmul.f32 %v1054_v32, %v844_v5 }
  0xbe   : > { %v392_v60 = vmul.f32 %v1054_v32, %v848_v6  ;;  %v393_v62 = vmul.f32 %v1054_v32, %v858_v2  ;;  %v394_v63 = vmul.f32 %v1054_v32, %v864_v7  ;;  %v395_v5 = vmul.f32 %v1054_v32, %v873_v10 }
  0xbf   : > { %v420_v42 = vmax.f32 %v388_v33, 0.0  ;;  %v421_v44 = vmax.f32 %v389_v36, 0.0  ;;  %v422_v45 = vmax.f32 %v390_v38, 0.0  ;;  %v423_v47 = vmax.f32 %v391_v41, 0.0 }
  0xc0   : > { %v424_v48 = vmax.f32 %v392_v60, 0.0  ;;  %v425_v50 = vmax.f32 %v393_v62, 0.0  ;;  %v426_v6 = vmax.f32 %v394_v63, 0.0  ;;  %v427_v51 = vmax.f32 %v395_v5, 0.0 }
  0xc1   : > { %452 = vst.msk [vmem:[%s1069_s16] sm:$0xff] %vm180_vm0, %v420_v42  ;;  %453 = vst.msk [vmem:[%s1069_s16 + $0x8] sm:$0xff] %vm180_vm0, %v421_v44  ;;  %v396_v2 = vmul.f32 %v1054_v32, %v880_v27  ;;  %v397_v7 = vmul.f32 %v1054_v32, %v887_v16  ;;  %v398_v10 = vmul.f32 %v1054_v32, %v894_v19 }
  0xc2   : > { %454 = vst.msk [vmem:[%s1069_s16 + $0x10] sm:$0xff] %vm180_vm0, %v422_v45  ;;  %455 = vst.msk [vmem:[%s1069_s16 + $0x18] sm:$0xff] %vm180_vm0, %v423_v47  ;;  %v399_v53 = vmul.f32 %v1054_v32, %v901_v22  ;;  %v400_v27 = vmul.f32 %v1054_v32, %v908_v25  ;;  %v401_v16 = vmul.f32 %v1054_v32, %v915_v28 }
  0xc3   : > { %456 = vst.msk [vmem:[%s1069_s16 + $0x20] sm:$0xff] %vm180_vm0, %v424_v48  ;;  %457 = vst.msk [vmem:[%s1069_s16 + $0x28] sm:$0xff] %vm180_vm0, %v425_v50  ;;  %v402_v19 = vmul.f32 %v1054_v32, %v922_v31  ;;  %v403_v22 = vmul.f32 %v1054_v32, %v929_v34  ;;  %v428_v35 = vmax.f32 %v396_v2, 0.0  ;;  %v429_v54 = vmax.f32 %v397_v7, 0.0 }
  0xc4   : > { %458 = vst.msk [vmem:[%s1069_s16 + $0x30] sm:$0xff] %vm180_vm0, %v426_v6  ;;  %459 = vst.msk [vmem:[%s1069_s16 + $0x38] sm:$0xff] %vm180_vm0, %v427_v51  ;;  %v430_v56 = vmax.f32 %v398_v10, 0.0  ;;  %v431_v57 = vmax.f32 %v399_v53, 0.0  ;;  %v432_v0 = vmax.f32 %v400_v27, 0.0  ;;  %v433_v9 = vmax.f32 %v401_v16, 0.0 }
  0xc5   : > { %v434_v25 = vmax.f32 %v402_v19, 0.0  ;;  %v435_v39 = vmax.f32 %v403_v22, 0.0  ;;  %460 = vst.msk [vmem:[%s1069_s16 + $0x40] sm:$0xff] %vm180_vm0, %v428_v35  ;;  %461 = vst.msk [vmem:[%s1069_s16 + $0x48] sm:$0xff] %vm180_vm0, %v429_v54  ;;  %v404_v28 = vmul.f32 %v1054_v32, %v936_v37  ;;  %v405_v31 = vmul.f32 %v1054_v32, %v943_v40 }
  0xc6   : > { %462 = vst.msk [vmem:[%s1069_s16 + $0x50] sm:$0xff] %vm180_vm0, %v430_v56  ;;  %463 = vst.msk [vmem:[%s1069_s16 + $0x58] sm:$0xff] %vm180_vm0, %v431_v57  ;;  %v406_v34 = vmul.f32 %v1054_v32, %v950_v43  ;;  %v407_v59 = vmul.f32 %v1054_v32, %v957_v46  ;;  %v408_v37 = vmul.f32 %v1054_v32, %v964_v49 }
  0xc7   : > { %464 = vst.msk [vmem:[%s1069_s16 + $0x60] sm:$0xff] %vm180_vm0, %v432_v0  ;;  %465 = vst.msk [vmem:[%s1069_s16 + $0x68] sm:$0xff] %vm180_vm0, %v433_v9  ;;  %v409_v40 = vmul.f32 %v1054_v32, %v971_v52  ;;  %v410_v43 = vmul.f32 %v1054_v32, %v978_v55  ;;  %v411_v46 = vmul.f32 %v1054_v32, %v985_v58  ;;  %v436_v1 = vmax.f32 %v404_v28, 0.0 }
  0xc8   : > { %466 = vst.msk [vmem:[%s1069_s16 + $0x70] sm:$0xff] %vm180_vm0, %v434_v25  ;;  %467 = vst.msk [vmem:[%s1069_s16 + $0x78] sm:$0xff] %vm180_vm0, %v435_v39  ;;  %v437_v3 = vmax.f32 %v405_v31, 0.0  ;;  %v438_v11 = vmax.f32 %v406_v34, 0.0  ;;  %v439_v14 = vmax.f32 %v407_v59, 0.0  ;;  %v440_v15 = vmax.f32 %v408_v37, 0.0 }
  0xc9   : > { %v441_v18 = vmax.f32 %v409_v40, 0.0  ;;  %v442_v49 = vmax.f32 %v410_v43, 0.0  ;;  %v443_v20 = vmax.f32 %v411_v46, 0.0  ;;  %468 = vst.msk [vmem:[%s1069_s16 + $0x80] sm:$0xff] %vm180_vm0, %v436_v1  ;;  %v412_v52 = vmul.f32 %v1054_v32, %v992_v61 }
  0xca   : > { %469 = vst.msk [vmem:[%s1069_s16 + $0x88] sm:$0xff] %vm180_vm0, %v437_v3  ;;  %470 = vst.msk [vmem:[%s1069_s16 + $0x90] sm:$0xff] %vm180_vm0, %v438_v11  ;;  %v413_v55 = vmul.f32 %v1054_v32, %v999_v4  ;;  %v414_v58 = vmul.f32 %v1054_v32, %v1006_v8  ;;  %v415_v23 = vmul.f32 %v1054_v32, %v1013_v12 }
  0xcb   : > { %471 = vst.msk [vmem:[%s1069_s16 + $0x98] sm:$0xff] %vm180_vm0, %v439_v14  ;;  %472 = vst.msk [vmem:[%s1069_s16 + $0xa0] sm:$0xff] %vm180_vm0, %v440_v15  ;;  %v416_v61 = vmul.f32 %v1054_v32, %v1020_v17  ;;  %v417_v4 = vmul.f32 %v1054_v32, %v1027_v21  ;;  %v418_v8 = vmul.f32 %v1054_v32, %v1034_v26  ;;  %v444_v13 = vmax.f32 %v412_v52, 0.0 }
  0xcc   : > { %473 = vst.msk [vmem:[%s1069_s16 + $0xa8] sm:$0xff] %vm180_vm0, %v441_v18  ;;  %474 = vst.msk [vmem:[%s1069_s16 + $0xb0] sm:$0xff] %vm180_vm0, %v442_v49  ;;  %v419_v12 = vmul.f32 %v1054_v32, %v1041_v30  ;;  %v445_v24 = vmax.f32 %v413_v55, 0.0  ;;  %v446_v29 = vmax.f32 %v414_v58, 0.0  ;;  %v447_v33 = vmax.f32 %v415_v23, 0.0 }
  0xcd   : > { %475 = vst.msk [vmem:[%s1069_s16 + $0xb8] sm:$0xff] %vm180_vm0, %v443_v20  ;;  %v448_v36 = vmax.f32 %v416_v61, 0.0  ;;  %v449_v38 = vmax.f32 %v417_v4, 0.0  ;;  %v450_v17 = vmax.f32 %v418_v8, 0.0  ;;  %476 = vst.msk [vmem:[%s1069_s16 + $0xc0] sm:$0xff] %vm180_vm0, %v444_v13 }
  0xce   : > { %v451_v41 = vmax.f32 %v419_v12, 0.0  ;;  %477 = vst.msk [vmem:[%s1069_s16 + $0xc8] sm:$0xff] %vm180_vm0, %v445_v24  ;;  %478 = vst.msk [vmem:[%s1069_s16 + $0xd0] sm:$0xff] %vm180_vm0, %v446_v29 }
  0xcf   : > { %479 = vst.msk [vmem:[%s1069_s16 + $0xd8] sm:$0xff] %vm180_vm0, %v447_v33  ;;  %480 = vst.msk [vmem:[%s1069_s16 + $0xe0] sm:$0xff] %vm180_vm0, %v448_v36 }
  0xd0   : > { %481 = vst.msk [vmem:[%s1069_s16 + $0xe8] sm:$0xff] %vm180_vm0, %v449_v38  ;;  %482 = vst.msk [vmem:[%s1069_s16 + $0xf0] sm:$0xff] %vm180_vm0, %v450_v17 }
  0xd1   : > { %483 = vst.msk [vmem:[%s1069_s16 + $0xf8] sm:$0xff] %vm180_vm0, %v451_v41 }
  0xd2 PF: > { %s11_s8 = sadd.s32 1, %s628_s8   ;;  %s1202_s6 = smov %s624_s7 }
  0xd3   : > { %p8_p5 = scmp.ge.s32.totalorder %s11_s8, 4   ;;  %s1203_s7 = smov %s1205_s9 }
  0xd5   :  { %10 = sbr.rel (!%p8_p5) target bundleno = 2 (0x2), region = 54 }

// kernel: generator_forward.19
= control target key start
LH: loop header
LB: loop body
LE: loop exit
PB: predicated region body
PF: predicated region fallthrough
CT: control target
= control target key end

     0   :  { %s1425_s12 = smov 0   ;;  %s1427_s13 = smov 0   ;;  %s1618_s0 = inlined_call_operand.vmem [shape: bf16[512,256], index: 0, kind: input, shape index: {}]   ;;  %s1619_s1 = inlined_call_operand.vmem [shape: bf16[256,128], index: 1, kind: input, shape index: {}]   ;;  %s1620_s2 = inlined_call_operand.vmem [shape: f32[1,128], index: 2, kind: input, shape index: {}]   ;;  %s1621_s3 = inlined_call_operand.vmem [shape: f32[512,128], index: 3, kind: output, shape index: {}]  }
   0x1   :  { %s1429_s14 = smov 0  }
   0x2 LB: > { %s32_s15 = sadd.s32 1, %s1399_s13  ;;  %p1107_p0 = scmp.ge.s32.totalorder %s1403_s14, 1  ;;  %s1403_s14 = sphi %s1429_s14, %s13_s14   ;;  %s1399_s13 = sphi %s1427_s13, %s1623_s13   ;;  %s1395_s12 = sphi %s1425_s12, %s1622_s12  }
   0x3   : > { %p34_p1 = scmp.ge.s32.totalorder %s32_s15, 2  ;;  %p191_p2 = scmp.lt.s32.totalorder %s1403_s14, 3 }
   0x5   : > { %s1625_s15 = smov (%p34_p1, %s32_s15), 0  ;;  %p192_p3 = pnand %p1107_p0, %p191_p2 }
   0x6   : > { %v1317_v0 = vld [vmem:[%s1619_s1 + $0x40] sm:$0xff] (!%p192_p3)   ;;  %s1108_s18 = sshll.u32 (!%p192_p3), %s1395_s12, 5  ;;  %v1319_v2 = vld [vmem:[%s1619_s1 + $0x48] sm:$0xff] (!%p192_p3)   ;;  %v1321_v4 = vld [vmem:[%s1619_s1 + $0x50] sm:$0xff] (!%p192_p3)  }
   0x7   : > { %195 = sbr.rel (%p192_p3) target bundleno = 315 (0x13b), region = 32  ;;  %v1318_v1 = vld [vmem:[%s1619_s1] sm:$0xff] (!%p192_p3)   ;;  %1165 = vmatprep.subr.bf16.mxu0 (!%p192_p3), %v1317_v0  ;;  %1277 = vmatprep.subr.bf16.mxu1 (!%p192_p3), %v1317_v0  ;;  %v1320_v3 = vld [vmem:[%s1619_s1 + $0x8] sm:$0xff] (!%p192_p3)   ;;  %p236_p4 = scmp.lt.s32.totalorder (!%p192_p3), %s1108_s18, 63  ;;  %v1322_v5 = vld [vmem:[%s1619_s1 + $0x10] sm:$0xff] (!%p192_p3)  }
   0x8   : > { %1166 = vmatpush3.bf16.msra.mxu0 (!%p192_p3), %v1318_v1  ;;  %1285 = vmatpush3.bf16.msra.mxu1 (!%p192_p3), %v1318_v1  ;;  %v1323_v6 = vld [vmem:[%s1619_s1 + $0x58] sm:$0xff] (!%p192_p3)   ;;  %v1325_v8 = vld [vmem:[%s1619_s1 + $0x60] sm:$0xff] (!%p192_p3)   ;;  %v1327_v10 = vld [vmem:[%s1619_s1 + $0x68] sm:$0xff] (!%p192_p3)  }
   0x9   : > { %1167 = vmatprep.subr.bf16.mxu0 (!%p192_p3), %v1319_v2  ;;  %1278 = vmatprep.subr.bf16.mxu1 (!%p192_p3), %v1319_v2  ;;  %v1324_v7 = vld [vmem:[%s1619_s1 + $0x18] sm:$0xff] (!%p192_p3)   ;;  %v1326_v9 = vld [vmem:[%s1619_s1 + $0x20] sm:$0xff] (!%p192_p3)   ;;  %v1328_v13 = vld [vmem:[%s1619_s1 + $0x28] sm:$0xff] (!%p192_p3)  }
   0xa   : > { %v1329_v14 = vld [vmem:[%s1619_s1 + $0x70] sm:$0xff] (!%p192_p3)   ;;  %v1331_v16 = vld [vmem:[%s1619_s1 + $0x78] sm:$0xff] (!%p192_p3)   ;;  %v1536_v51 = vld [vmem:[%s1620_s2] ss:$0 sm:$0xff] (!%p192_p3) }
   0xb   : > { %v1330_v15 = vld [vmem:[%s1619_s1 + $0x30] sm:$0xff] (!%p192_p3)   ;;  %v1332_v17 = vld [vmem:[%s1619_s1 + $0x38] sm:$0xff] (!%p192_p3)  }
   0xc   : > { %1168 = vmatpush3.bf16.msra.mxu0 (!%p192_p3), %v1320_v3  ;;  %1286 = vmatpush3.bf16.msra.mxu1 (!%p192_p3), %v1320_v3 }
   0xd   : > { %1169 = vmatprep.subr.bf16.mxu0 (!%p192_p3), %v1321_v4  ;;  %1279 = vmatprep.subr.bf16.mxu1 (!%p192_p3), %v1321_v4 }
   0xe   : > { %s1627_s18 = smov (!%p236_p4, %s1108_s18), 63 }
   0xf   : > { %s1164_s6 = sshll.u32 %s1627_s18, 3 }
  0x10   : > { %1170 = vmatpush3.bf16.msra.mxu0 %v1322_v5  ;;  %1287 = vmatpush3.bf16.msra.mxu1 %v1322_v5  ;;  %s1478_s11 = scalar_lea.vmem %s1618_s0, %s1164_s6  ;;  %s1543_s8 = scalar_lea.vmem %s1621_s3, %s1164_s6 }
  0x11   : > { %1171 = vmatprep.subr.bf16.mxu0 %v1323_v6  ;;  %1280 = vmatprep.subr.bf16.mxu1 %v1323_v6  ;;  %v1335_v11 = vld [vmem:[%s1478_s11 + $0x4] ss:$8 sps:$4 sm:$0xff]   ;;  %v1333_v18 = vld [vmem:[%s1478_s11] ss:$8 sps:$4 sm:$0xff]   ;;  %v1339_v20 = vld [vmem:[%s1478_s11 + $0x14] ss:$8 sps:$4 sm:$0xff]  }
  0x12   : > { %v1338_v12 = vld [vmem:[%s1478_s11 + $0x84] ss:$8 sps:$4 sm:$0xff]   ;;  %688 = vmatprep.mubr.bf16.mxu0 %v1335_v11  ;;  %v1336_v19 = vld [vmem:[%s1478_s11 + $0x80] ss:$8 sps:$4 sm:$0xff]   ;;  %v1341_v21 = vld [vmem:[%s1478_s11 + $0x94] ss:$8 sps:$4 sm:$0xff]  }
  0x13   : > { %752 = vmatprep.mubr.bf16.mxu1 %v1338_v12  ;;  %v1343_v22 = vld [vmem:[%s1478_s11 + $0x10] ss:$8 sps:$4 sm:$0xff]   ;;  %v1345_v24 = vld [vmem:[%s1478_s11 + $0x24] ss:$8 sps:$4 sm:$0xff]   ;;  %v1349_v26 = vld [vmem:[%s1478_s11 + $0x20] ss:$8 sps:$4 sm:$0xff]  }
  0x14   : > { %1172 = vmatpush3.bf16.msra.mxu0 %v1324_v7  ;;  %1288 = vmatpush3.bf16.msra.mxu1 %v1324_v7  ;;  %v1344_v23 = vld [vmem:[%s1478_s11 + $0x90] ss:$8 sps:$4 sm:$0xff]   ;;  %v1347_v25 = vld [vmem:[%s1478_s11 + $0xa4] ss:$8 sps:$4 sm:$0xff]   ;;  %v1350_v27 = vld [vmem:[%s1478_s11 + $0xa0] ss:$8 sps:$4 sm:$0xff]  }
  0x15   : > { %1173 = vmatprep.subr.bf16.mxu0 %v1325_v8  ;;  %1281 = vmatprep.subr.bf16.mxu1 %v1325_v8  ;;  %v1351_v28 = vld [vmem:[%s1478_s11 + $0x34] ss:$8 sps:$4 sm:$0xff]   ;;  %v1355_v30 = vld [vmem:[%s1478_s11 + $0x30] ss:$8 sps:$4 sm:$0xff]   ;;  %v1357_v32 = vld [vmem:[%s1478_s11 + $0x44] ss:$8 sps:$4 sm:$0xff]  }
  0x16   : > { %v1353_v29 = vld [vmem:[%s1478_s11 + $0xb4] ss:$8 sps:$4 sm:$0xff]   ;;  %v1356_v31 = vld [vmem:[%s1478_s11 + $0xb0] ss:$8 sps:$4 sm:$0xff]   ;;  %v1359_v33 = vld [vmem:[%s1478_s11 + $0xc4] ss:$8 sps:$4 sm:$0xff]  }
  0x17   : > { %v1361_v34 = vld [vmem:[%s1478_s11 + $0x40] ss:$8 sps:$4 sm:$0xff]   ;;  %v1363_v36 = vld [vmem:[%s1478_s11 + $0x54] ss:$8 sps:$4 sm:$0xff]   ;;  %v1367_v38 = vld [vmem:[%s1478_s11 + $0x50] ss:$8 sps:$4 sm:$0xff]  }
  0x18   : > { %1174 = vmatpush3.bf16.msra.mxu0 %v1326_v9  ;;  %1289 = vmatpush3.bf16.msra.mxu1 %v1326_v9  ;;  %v1362_v35 = vld [vmem:[%s1478_s11 + $0xc0] ss:$8 sps:$4 sm:$0xff]   ;;  %v1365_v37 = vld [vmem:[%s1478_s11 + $0xd4] ss:$8 sps:$4 sm:$0xff]   ;;  %v1368_v39 = vld [vmem:[%s1478_s11 + $0xd0] ss:$8 sps:$4 sm:$0xff]  }
  0x19   : > { %1175 = vmatprep.subr.bf16.mxu0 %v1327_v10  ;;  %1282 = vmatprep.subr.bf16.mxu1 %v1327_v10  ;;  %v1369_v40 = vld [vmem:[%s1478_s11 + $0x64] ss:$8 sps:$4 sm:$0xff]   ;;  %v1373_v42 = vld [vmem:[%s1478_s11 + $0x60] ss:$8 sps:$4 sm:$0xff]   ;;  %v1375_v44 = vld [vmem:[%s1478_s11 + $0x74] ss:$8 sps:$4 sm:$0xff]  }
  0x1a   : > { %v1371_v41 = vld [vmem:[%s1478_s11 + $0xe4] ss:$8 sps:$4 sm:$0xff]   ;;  %v1374_v43 = vld [vmem:[%s1478_s11 + $0xe0] ss:$8 sps:$4 sm:$0xff]   ;;  %v1377_v45 = vld [vmem:[%s1478_s11 + $0xf4] ss:$8 sps:$4 sm:$0xff]  }
  0x1b   : > { %v1379_v46 = vld [vmem:[%s1478_s11 + $0x70] ss:$8 sps:$4 sm:$0xff]  }
  0x1c   : > { %1176 = vmatpush3.bf16.msra.mxu0 %v1328_v13  ;;  %1290 = vmatpush3.bf16.msra.mxu1 %v1328_v13  ;;  %v1380_v47 = vld [vmem:[%s1478_s11 + $0xf0] ss:$8 sps:$4 sm:$0xff]  }
  0x1d   : > { %1177 = vmatprep.subr.bf16.mxu0 %v1329_v14  ;;  %1283 = vmatprep.subr.bf16.mxu1 %v1329_v14 }
  0x20   : > { %1178 = vmatpush3.bf16.msra.mxu0 %v1330_v15  ;;  %1291 = vmatpush3.bf16.msra.mxu1 %v1330_v15 }
  0x21   : > { %1179 = vmatprep.subr.bf16.mxu0 %v1331_v16  ;;  %1284 = vmatprep.subr.bf16.mxu1 %v1331_v16 }
  0x24   : > { %1180 = vmatpush3.bf16.msra.mxu0 %v1332_v17  ;;  %1292 = vmatpush3.bf16.msra.mxu1 %v1332_v17 }
  0x27   : > { %689 = vmatmul.mubr.bf16.vlgmr.msra.gmra.mrb[0].mxu0 %v1333_v18  ;;  %753 = vmatmul.mubr.bf16.vlgmr.msra.gmra.mrb[0].mxu1 %v1336_v19 }
  0x28   : > { %696 = vmatprep.mubr.bf16.mxu0 %v1339_v20  ;;  %760 = vmatprep.mubr.bf16.mxu1 %v1341_v21 }
  0x2f   : > { %697 = vmatmul.mubr.bf16.gmra.mrb[4].mxu0 %v1343_v22  ;;  %761 = vmatmul.mubr.bf16.gmra.mrb[4].mxu1 %v1344_v23 }
  0x30   : > { %704 = vmatprep.mubr.bf16.mxu0 %v1345_v24  ;;  %768 = vmatprep.mubr.bf16.mxu1 %v1347_v25 }
  0x37   : > { %705 = vmatmul.mubr.bf16.gmra.mrb[8].mxu0 %v1349_v26  ;;  %769 = vmatmul.mubr.bf16.gmra.mrb[8].mxu1 %v1350_v27 }
  0x38   : > { %712 = vmatprep.mubr.bf16.mxu0 %v1351_v28  ;;  %776 = vmatprep.mubr.bf16.mxu1 %v1353_v29 }
  0x3f   : > { %713 = vmatmul.mubr.bf16.gmra.mrb[12].mxu0 %v1355_v30  ;;  %777 = vmatmul.mubr.bf16.gmra.mrb[12].mxu1 %v1356_v31 }
  0x40   : > { %720 = vmatprep.mubr.bf16.mxu0 %v1357_v32  ;;  %784 = vmatprep.mubr.bf16.mxu1 %v1359_v33 }
  0x47   : > { %721 = vmatmul.mubr.bf16.gmra.mrb[16].mxu0 %v1361_v34  ;;  %785 = vmatmul.mubr.bf16.gmra.mrb[16].mxu1 %v1362_v35 }
  0x48   : > { %728 = vmatprep.mubr.bf16.mxu0 %v1363_v36  ;;  %792 = vmatprep.mubr.bf16.mxu1 %v1365_v37 }
  0x4f   : > { %729 = vmatmul.mubr.bf16.gmra.mrb[20].mxu0 %v1367_v38  ;;  %793 = vmatmul.mubr.bf16.gmra.mrb[20].mxu1 %v1368_v39 }
  0x50   : > { %736 = vmatprep.mubr.bf16.mxu0 %v1369_v40  ;;  %800 = vmatprep.mubr.bf16.mxu1 %v1371_v41 }
  0x57   : > { %737 = vmatmul.mubr.bf16.gmra.mrb[24].mxu0 %v1373_v42  ;;  %801 = vmatmul.mubr.bf16.gmra.mrb[24].mxu1 %v1374_v43 }
  0x58   : > { %744 = vmatprep.mubr.bf16.mxu0 %v1375_v44  ;;  %808 = vmatprep.mubr.bf16.mxu1 %v1377_v45 }
  0x5f   : > { %745 = vmatmul.mubr.bf16.gmra.mrb[28].mxu0 %v1379_v46  ;;  %809 = vmatmul.mubr.bf16.gmra.mrb[28].mxu1 %v1380_v47 }
  0xfa   : > { %v1181_v48 = vpop.f32.mrb[0].mxu0  ;;  %v1229_v49 = vpop.f32.mrb[0].mxu1 }
  0xfb   : > { %v1182_v50 = vpop.f32.mrb[1].mxu0  ;;  %v1230_v52 = vpop.f32.mrb[1].mxu1 }
  0xfc   : > { %v1183_v53 = vadd.f32 %v1182_v50, %v1181_v48  ;;  %v1231_v54 = vadd.f32 %v1230_v52, %v1229_v49  ;;  %v1184_v55 = vpop.f32.mrb[2].mxu0  ;;  %v1232_v56 = vpop.f32.mrb[2].mxu1 }
  0xfd   : > { %v1185_v57 = vpop.f32.mrb[3].mxu0  ;;  %v1233_v58 = vpop.f32.mrb[3].mxu1 }
  0xfe   : > { %v923_v59 = vadd.f32 %v1183_v53, %v1536_v51  ;;  %v939_v60 = vadd.f32 %v1231_v54, %v1536_v51  ;;  %v1186_v61 = vadd.f32 %v1185_v57, %v1184_v55  ;;  %v1234_v62 = vadd.f32 %v1233_v58, %v1232_v56 }
 0x100   : > { %955 = vst [vmem:[%s1543_s8] sm:$0xff] %v923_v59  ;;  %971 = vst [vmem:[%s1543_s8 + $0x80] sm:$0xff] %v939_v60  ;;  %v924_v63 = vadd.f32 %v1186_v61, %v1536_v51  ;;  %v940_v0 = vadd.f32 %v1234_v62, %v1536_v51 }
 0x102   : > { %956 = vst [vmem:[%s1543_s8 + $0x8] sm:$0xff] %v924_v63  ;;  %972 = vst [vmem:[%s1543_s8 + $0x88] sm:$0xff] %v940_v0  ;;  %v1187_v1 = vpop.f32.mrb[4].mxu0  ;;  %v1235_v2 = vpop.f32.mrb[4].mxu1 }
 0x103   : > { %v1188_v3 = vpop.f32.mrb[5].mxu0  ;;  %v1236_v4 = vpop.f32.mrb[5].mxu1 }
 0x104   : > { %v1189_v5 = vadd.f32 %v1188_v3, %v1187_v1  ;;  %v1237_v6 = vadd.f32 %v1236_v4, %v1235_v2  ;;  %v1190_v7 = vpop.f32.mrb[6].mxu0  ;;  %v1238_v8 = vpop.f32.mrb[6].mxu1 }
 0x105   : > { %v1191_v9 = vpop.f32.mrb[7].mxu0  ;;  %v1239_v10 = vpop.f32.mrb[7].mxu1 }
 0x106   : > { %v925_v11 = vadd.f32 %v1189_v5, %v1536_v51  ;;  %v941_v12 = vadd.f32 %v1237_v6, %v1536_v51  ;;  %v1192_v13 = vadd.f32 %v1191_v9, %v1190_v7  ;;  %v1240_v14 = vadd.f32 %v1239_v10, %v1238_v8 }
 0x108   : > { %957 = vst [vmem:[%s1543_s8 + $0x10] sm:$0xff] %v925_v11  ;;  %973 = vst [vmem:[%s1543_s8 + $0x90] sm:$0xff] %v941_v12  ;;  %v926_v15 = vadd.f32 %v1192_v13, %v1536_v51  ;;  %v942_v16 = vadd.f32 %v1240_v14, %v1536_v51 }
 0x10a   : > { %958 = vst [vmem:[%s1543_s8 + $0x18] sm:$0xff] %v926_v15  ;;  %974 = vst [vmem:[%s1543_s8 + $0x98] sm:$0xff] %v942_v16  ;;  %v1193_v17 = vpop.f32.mrb[8].mxu0  ;;  %v1241_v18 = vpop.f32.mrb[8].mxu1 }
 0x10b   : > { %v1194_v19 = vpop.f32.mrb[9].mxu0  ;;  %v1242_v20 = vpop.f32.mrb[9].mxu1 }
 0x10c   : > { %v1195_v21 = vadd.f32 %v1194_v19, %v1193_v17  ;;  %v1243_v22 = vadd.f32 %v1242_v20, %v1241_v18  ;;  %v1196_v23 = vpop.f32.mrb[10].mxu0  ;;  %v1244_v24 = vpop.f32.mrb[10].mxu1 }
 0x10d   : > { %v1197_v25 = vpop.f32.mrb[11].mxu0  ;;  %v1245_v26 = vpop.f32.mrb[11].mxu1 }
 0x10e   : > { %v927_v27 = vadd.f32 %v1195_v21, %v1536_v51  ;;  %v943_v28 = vadd.f32 %v1243_v22, %v1536_v51  ;;  %v1198_v29 = vadd.f32 %v1197_v25, %v1196_v23  ;;  %v1246_v30 = vadd.f32 %v1245_v26, %v1244_v24 }
 0x110   : > { %959 = vst [vmem:[%s1543_s8 + $0x20] sm:$0xff] %v927_v27  ;;  %975 = vst [vmem:[%s1543_s8 + $0xa0] sm:$0xff] %v943_v28  ;;  %v928_v31 = vadd.f32 %v1198_v29, %v1536_v51  ;;  %v944_v32 = vadd.f32 %v1246_v30, %v1536_v51 }
 0x112   : > { %960 = vst [vmem:[%s1543_s8 + $0x28] sm:$0xff] %v928_v31  ;;  %976 = vst [vmem:[%s1543_s8 + $0xa8] sm:$0xff] %v944_v32  ;;  %v1199_v33 = vpop.f32.mrb[12].mxu0  ;;  %v1247_v34 = vpop.f32.mrb[12].mxu1 }
 0x113   : > { %v1200_v35 = vpop.f32.mrb[13].mxu0  ;;  %v1248_v36 = vpop.f32.mrb[13].mxu1 }
 0x114   : > { %v1201_v37 = vadd.f32 %v1200_v35, %v1199_v33  ;;  %v1249_v38 = vadd.f32 %v1248_v36, %v1247_v34  ;;  %v1202_v39 = vpop.f32.mrb[14].mxu0  ;;  %v1250_v40 = vpop.f32.mrb[14].mxu1 }
 0x115   : > { %v1203_v41 = vpop.f32.mrb[15].mxu0  ;;  %v1251_v42 = vpop.f32.mrb[15].mxu1 }
 0x116   : > { %v929_v43 = vadd.f32 %v1201_v37, %v1536_v51  ;;  %v945_v44 = vadd.f32 %v1249_v38, %v1536_v51  ;;  %v1204_v45 = vadd.f32 %v1203_v41, %v1202_v39  ;;  %v1252_v46 = vadd.f32 %v1251_v42, %v1250_v40 }
 0x118   : > { %961 = vst [vmem:[%s1543_s8 + $0x30] sm:$0xff] %v929_v43  ;;  %977 = vst [vmem:[%s1543_s8 + $0xb0] sm:$0xff] %v945_v44  ;;  %v930_v47 = vadd.f32 %v1204_v45, %v1536_v51  ;;  %v946_v48 = vadd.f32 %v1252_v46, %v1536_v51 }
 0x11a   : > { %962 = vst [vmem:[%s1543_s8 + $0x38] sm:$0xff] %v930_v47  ;;  %978 = vst [vmem:[%s1543_s8 + $0xb8] sm:$0xff] %v946_v48  ;;  %v1205_v49 = vpop.f32.mrb[16].mxu0  ;;  %v1253_v50 = vpop.f32.mrb[16].mxu1 }
 0x11b   : > { %v1206_v52 = vpop.f32.mrb[17].mxu0  ;;  %v1254_v53 = vpop.f32.mrb[17].mxu1 }
 0x11c   : > { %v1207_v54 = vadd.f32 %v1206_v52, %v1205_v49  ;;  %v1255_v55 = vadd.f32 %v1254_v53, %v1253_v50  ;;  %v1208_v56 = vpop.f32.mrb[18].mxu0  ;;  %v1256_v57 = vpop.f32.mrb[18].mxu1 }
 0x11d   : > { %v1209_v58 = vpop.f32.mrb[19].mxu0  ;;  %v1257_v59 = vpop.f32.mrb[19].mxu1 }
 0x11e   : > { %v931_v60 = vadd.f32 %v1207_v54, %v1536_v51  ;;  %v947_v61 = vadd.f32 %v1255_v55, %v1536_v51  ;;  %v1210_v62 = vadd.f32 %v1209_v58, %v1208_v56  ;;  %v1258_v63 = vadd.f32 %v1257_v59, %v1256_v57 }
 0x120   : > { %963 = vst [vmem:[%s1543_s8 + $0x40] sm:$0xff] %v931_v60  ;;  %979 = vst [vmem:[%s1543_s8 + $0xc0] sm:$0xff] %v947_v61  ;;  %v932_v0 = vadd.f32 %v1210_v62, %v1536_v51  ;;  %v948_v1 = vadd.f32 %v1258_v63, %v1536_v51 }
 0x122   : > { %964 = vst [vmem:[%s1543_s8 + $0x48] sm:$0xff] %v932_v0  ;;  %980 = vst [vmem:[%s1543_s8 + $0xc8] sm:$0xff] %v948_v1  ;;  %v1211_v2 = vpop.f32.mrb[20].mxu0  ;;  %v1259_v3 = vpop.f32.mrb[20].mxu1 }
 0x123   : > { %v1212_v4 = vpop.f32.mrb[21].mxu0  ;;  %v1260_v5 = vpop.f32.mrb[21].mxu1 }
 0x124   : > { %v1213_v6 = vadd.f32 %v1212_v4, %v1211_v2  ;;  %v1261_v7 = vadd.f32 %v1260_v5, %v1259_v3  ;;  %v1214_v8 = vpop.f32.mrb[22].mxu0  ;;  %v1262_v9 = vpop.f32.mrb[22].mxu1 }
 0x125   : > { %v1215_v10 = vpop.f32.mrb[23].mxu0  ;;  %v1263_v11 = vpop.f32.mrb[23].mxu1 }
 0x126   : > { %v933_v12 = vadd.f32 %v1213_v6, %v1536_v51  ;;  %v949_v13 = vadd.f32 %v1261_v7, %v1536_v51  ;;  %v1216_v14 = vadd.f32 %v1215_v10, %v1214_v8  ;;  %v1264_v15 = vadd.f32 %v1263_v11, %v1262_v9 }
 0x128   : > { %965 = vst [vmem:[%s1543_s8 + $0x50] sm:$0xff] %v933_v12  ;;  %981 = vst [vmem:[%s1543_s8 + $0xd0] sm:$0xff] %v949_v13  ;;  %v934_v16 = vadd.f32 %v1216_v14, %v1536_v51  ;;  %v950_v17 = vadd.f32 %v1264_v15, %v1536_v51 }
 0x12a   : > { %966 = vst [vmem:[%s1543_s8 + $0x58] sm:$0xff] %v934_v16  ;;  %982 = vst [vmem:[%s1543_s8 + $0xd8] sm:$0xff] %v950_v17  ;;  %v1217_v18 = vpop.f32.mrb[24].mxu0  ;;  %v1265_v19 = vpop.f32.mrb[24].mxu1 }
 0x12b   : > { %v1218_v20 = vpop.f32.mrb[25].mxu0  ;;  %v1266_v21 = vpop.f32.mrb[25].mxu1 }
 0x12c   : > { %v1219_v22 = vadd.f32 %v1218_v20, %v1217_v18  ;;  %v1267_v23 = vadd.f32 %v1266_v21, %v1265_v19  ;;  %v1220_v24 = vpop.f32.mrb[26].mxu0  ;;  %v1268_v25 = vpop.f32.mrb[26].mxu1 }
 0x12d   : > { %v1221_v26 = vpop.f32.mrb[27].mxu0  ;;  %v1269_v27 = vpop.f32.mrb[27].mxu1 }
 0x12e   : > { %v935_v28 = vadd.f32 %v1219_v22, %v1536_v51  ;;  %v951_v29 = vadd.f32 %v1267_v23, %v1536_v51  ;;  %v1222_v30 = vadd.f32 %v1221_v26, %v1220_v24  ;;  %v1270_v31 = vadd.f32 %v1269_v27, %v1268_v25 }
 0x130   : > { %967 = vst [vmem:[%s1543_s8 + $0x60] sm:$0xff] %v935_v28  ;;  %983 = vst [vmem:[%s1543_s8 + $0xe0] sm:$0xff] %v951_v29  ;;  %v936_v32 = vadd.f32 %v1222_v30, %v1536_v51  ;;  %v952_v33 = vadd.f32 %v1270_v31, %v1536_v51 }
 0x132   : > { %968 = vst [vmem:[%s1543_s8 + $0x68] sm:$0xff] %v936_v32  ;;  %984 = vst [vmem:[%s1543_s8 + $0xe8] sm:$0xff] %v952_v33  ;;  %v1223_v34 = vpop.f32.mrb[28].mxu0  ;;  %v1271_v35 = vpop.f32.mrb[28].mxu1 }
 0x133   : > { %v1224_v36 = vpop.f32.mrb[29].mxu0  ;;  %v1272_v37 = vpop.f32.mrb[29].mxu1 }
 0x134   : > { %v1225_v38 = vadd.f32 %v1224_v36, %v1223_v34  ;;  %v1273_v39 = vadd.f32 %v1272_v37, %v1271_v35  ;;  %v1226_v40 = vpop.f32.mrb[30].mxu0  ;;  %v1274_v41 = vpop.f32.mrb[30].mxu1 }
 0x135   : > { %v1227_v42 = vpop.f32.mrb[31].mxu0  ;;  %v1275_v43 = vpop.f32.mrb[31].mxu1 }
 0x136   : > { %v937_v44 = vadd.f32 %v1225_v38, %v1536_v51  ;;  %v953_v45 = vadd.f32 %v1273_v39, %v1536_v51  ;;  %v1228_v46 = vadd.f32 %v1227_v42, %v1226_v40  ;;  %v1276_v47 = vadd.f32 %v1275_v43, %v1274_v41 }
 0x138   : > { %969 = vst [vmem:[%s1543_s8 + $0x70] sm:$0xff] %v937_v44  ;;  %985 = vst [vmem:[%s1543_s8 + $0xf0] sm:$0xff] %v953_v45  ;;  %v938_v48 = vadd.f32 %v1228_v46, %v1536_v51  ;;  %v954_v49 = vadd.f32 %v1276_v47, %v1536_v51 }
 0x13a   : > { %970 = vst [vmem:[%s1543_s8 + $0x78] sm:$0xff] %v938_v48  ;;  %986 = vst [vmem:[%s1543_s8 + $0xf8] sm:$0xff] %v954_v49 }
 0x13b PF: > { %s13_s14 = sadd.s32 1, %s1403_s14   ;;  %s1622_s12 = smov %s1399_s13 }
 0x13c   : > { %p10_p5 = scmp.ge.s32.totalorder %s13_s14, 4   ;;  %s1623_s13 = smov %s1625_s15 }
 0x13e   :  { %12 = sbr.rel (!%p10_p5) target bundleno = 2 (0x2), region = 76 }

// kernel: generator_forward.21
= control target key start
LH: loop header
LB: loop body
LE: loop exit
PB: predicated region body
PF: predicated region fallthrough
CT: control target
= control target key end

     0   :  { %s1031_s12 = smov 0   ;;  %s1033_s13 = smov 0   ;;  %s1187_s0 = inlined_call_operand.vmem [shape: bf16[128,640], index: 0, kind: input, shape index: {}]   ;;  %s1188_s1 = inlined_call_operand.vmem [shape: bf16[640,128], index: 1, kind: input, shape index: {}]   ;;  %s1189_s2 = inlined_call_operand.vmem [shape: f32[1,128], index: 2, kind: input, shape index: {}]   ;;  %s1190_s3 = inlined_call_operand.vmem [shape: f32[128,128], index: 3, kind: output, shape index: {}]  }
   0x1   :  { %s1035_s14 = smov 0   ;;  %s1037_s15 = smov 0  }
   0x2   :  { %s1039_s16 = smov 0  }
   0x3 LB: > { %s25_s17 = sadd.s32 1, %s1004_s15  ;;  %p48_p1 = scmp.ne.s32.totalorder %s996_s13, %s992_s12  ;;  %s1008_s16 = sphi %s1039_s16, %s13_s16   ;;  %s1004_s15 = sphi %s1037_s15, %s1194_s15   ;;  %s1000_s14 = sphi %s1035_s14, %s1193_s14   ;;  %s996_s13 = sphi %s1033_s13, %s1192_s13   ;;  %s992_s12 = sphi %s1031_s12, %s1191_s12  }
   0x4   : > { %p26_p0 = scmp.ge.s32.totalorder %s25_s17, 5  ;;  %p49_p2 = scmp.eq.s32.totalorder %s1008_s16, 0 }
   0x5   : > { %s41_s19 = sadd.s32 1, %s996_s13  ;;  %p819_p5 = scmp.ge.s32.totalorder %s1008_s16, 5 }
   0x6   : > { %s1196_s17 = smov (%p26_p0, %s25_s17), 0  ;;  %p50_p3 = por %p49_p2, %p48_p1 }
   0x7   : > { %s37_s18 = ssub.s32 %s1004_s15, %s1196_s17  ;;  %162 = sbr.rel (%p819_p5) target bundleno = 28 (0x1c), region = 20 }
   0x8   : > { %p39_p4 = scmp.eq.s32.totalorder %s37_s18, 0 }
   0xa   : > { %s1066_s20 = scalar_select %p39_p4, %s996_s13, %s41_s19  }
   0xe   : > { %165 = sbr.rel (!%p50_p3) target bundleno = 28 (0x1c), region = 24  ;;  %s167_s21 = sand.u32 (%p50_p3), 1, %s996_s13  }
   0xf   : > { %s821_s22 = sshll.u32 (%p50_p3), %s1004_s15, 2  ;;  %s820_s23 = sshll.u32 (%p50_p3), %s167_s21, 6 }
  0x10   : > { %s1074_s26 = scalar_lea.vmem (%p50_p3), %s1187_s0, %s821_s22  ;;  %s169_s27 = scalar_lea.vmem (%p50_p3), [#allocation3], %s820_s23 }
  0x11   : > { %v190_v0 = vld [vmem:[%s1074_s26] sm:$0xf] (%p50_p3)  ;;  %v192_v1 = vld [vmem:[%s1074_s26 + $0x14] sm:$0xf] (%p50_p3)  ;;  %v194_v2 = vld [vmem:[%s1074_s26 + $0x28] sm:$0xf] (%p50_p3) }
  0x12   : > { %191 = vst [vmem:[%s169_s27] sm:$0xf] (%p50_p3), %v190_v0  ;;  %193 = vst [vmem:[%s169_s27 + $0x4] sm:$0xf] (%p50_p3), %v192_v1  ;;  %v196_v3 = vld [vmem:[%s1074_s26 + $0x3c] sm:$0xf] (%p50_p3) }
  0x13   : > { %v198_v4 = vld [vmem:[%s1074_s26 + $0x50] sm:$0xf] (%p50_p3)  ;;  %195 = vst [vmem:[%s169_s27 + $0x8] sm:$0xf] (%p50_p3), %v194_v2  ;;  %197 = vst [vmem:[%s169_s27 + $0xc] sm:$0xf] (%p50_p3), %v196_v3 }
  0x14   : > { %199 = vst [vmem:[%s169_s27 + $0x10] sm:$0xf] (%p50_p3), %v198_v4  ;;  %v200_v5 = vld [vmem:[%s1074_s26 + $0x64] sm:$0xf] (%p50_p3)  ;;  %v202_v6 = vld [vmem:[%s1074_s26 + $0x78] sm:$0xf] (%p50_p3) }
  0x15   : > { %v204_v7 = vld [vmem:[%s1074_s26 + $0x8c] sm:$0xf]  ;;  %201 = vst [vmem:[%s169_s27 + $0x14] sm:$0xf] %v200_v5  ;;  %203 = vst [vmem:[%s169_s27 + $0x18] sm:$0xf] %v202_v6 }
  0x16   : > { %205 = vst [vmem:[%s169_s27 + $0x1c] sm:$0xf] %v204_v7  ;;  %v206_v8 = vld [vmem:[%s1074_s26 + $0xa0] sm:$0xf]  ;;  %v208_v9 = vld [vmem:[%s1074_s26 + $0xb4] sm:$0xf] }
  0x17   : > { %v210_v10 = vld [vmem:[%s1074_s26 + $0xc8] sm:$0xf]  ;;  %207 = vst [vmem:[%s169_s27 + $0x20] sm:$0xf] %v206_v8  ;;  %209 = vst [vmem:[%s169_s27 + $0x24] sm:$0xf] %v208_v9 }
  0x18   : > { %211 = vst [vmem:[%s169_s27 + $0x28] sm:$0xf] %v210_v10  ;;  %v212_v11 = vld [vmem:[%s1074_s26 + $0xdc] sm:$0xf]  ;;  %v214_v12 = vld [vmem:[%s1074_s26 + $0xf0] sm:$0xf] }
  0x19   : > { %v216_v13 = vld [vmem:[%s1074_s26 + $0x104] sm:$0xf]  ;;  %213 = vst [vmem:[%s169_s27 + $0x2c] sm:$0xf] %v212_v11  ;;  %215 = vst [vmem:[%s169_s27 + $0x30] sm:$0xf] %v214_v12 }
  0x1a   : > { %217 = vst [vmem:[%s169_s27 + $0x34] sm:$0xf] %v216_v13  ;;  %v218_v14 = vld [vmem:[%s1074_s26 + $0x118] sm:$0xf]  ;;  %v220_v15 = vld [vmem:[%s1074_s26 + $0x12c] sm:$0xf] }
  0x1b   : > { %219 = vst [vmem:[%s169_s27 + $0x38] sm:$0xf] %v218_v14  ;;  %221 = vst [vmem:[%s169_s27 + $0x3c] sm:$0xf] %v220_v15 }
  0x1c PF: > { %p822_p6 = scmp.ge.s32.totalorder %s1008_s16, 1  ;;  %p287_p7 = scmp.lt.s32.totalorder %s1008_s16, 6 }
  0x1e   : > { %p288_p8 = pnand %p822_p6, %p287_p7 }
  0x1f   : > { %s294_s28 = sand.u32 (!%p288_p8), 1, %s992_s12   ;;  %s824_s29 = sshll.u32 (!%p288_p8), %s1000_s14, 4 }
  0x20   : > { %291 = sbr.rel (%p288_p8) target bundleno = 319 (0x13f), region = 69  ;;  %s823_s30 = sshll.u32 (!%p288_p8), %s294_s28, 6 }
  0x21   : > { %p333_p9 = scmp.lt.s32.totalorder (!%p288_p8), %s824_s29, 79  ;;  %s1101_s8 = scalar_lea.vmem (!%p288_p8), [#allocation3], %s823_s30 }
  0x22   : > { %p826_p10 = scmp.ne.s32.totalorder (!%p288_p8), %s1000_s14, 0 }
  0x27   : > { %s1198_s29 = smov (!%p333_p9, %s824_s29), 79  ;;  %357 = sbr.rel (%p826_p10) target bundleno = 49 (0x31), region = 77 }
  0x28   : > { %s825_s4 = sshll.u32 %s1198_s29, 2  ;;  %v1010_v16 = vmov (!%p826_p10), 0.0  }
  0x29   : > { %s1099_s7 = scalar_lea.vmem %s1188_s1, %s825_s4  ;;  %358 = vst [vmem:[#allocation2] sm:$0xff] (!%p826_p10), %v1010_v16  ;;  %359 = vst [vmem:[#allocation2 + $0x8] sm:$0xff] (!%p826_p10), %v1010_v16 }
  0x2a   : > { %360 = vst [vmem:[#allocation2 + $0x10] sm:$0xff] (!%p826_p10), %v1010_v16  ;;  %361 = vst [vmem:[#allocation2 + $0x18] sm:$0xff] (!%p826_p10), %v1010_v16 }
  0x2b   : > { %362 = vst [vmem:[#allocation2 + $0x20] sm:$0xff] (!%p826_p10), %v1010_v16  ;;  %363 = vst [vmem:[#allocation2 + $0x28] sm:$0xff] (!%p826_p10), %v1010_v16 }
  0x2c   : > { %364 = vst [vmem:[#allocation2 + $0x30] sm:$0xff] (!%p826_p10), %v1010_v16  ;;  %365 = vst [vmem:[#allocation2 + $0x38] sm:$0xff] (!%p826_p10), %v1010_v16 }
  0x2d   : > { %366 = vst [vmem:[#allocation2 + $0x40] sm:$0xff] (!%p826_p10), %v1010_v16  ;;  %367 = vst [vmem:[#allocation2 + $0x48] sm:$0xff] (!%p826_p10), %v1010_v16 }
  0x2e   : > { %368 = vst [vmem:[#allocation2 + $0x50] sm:$0xff] %v1010_v16  ;;  %369 = vst [vmem:[#allocation2 + $0x58] sm:$0xff] %v1010_v16 }
  0x2f   : > { %370 = vst [vmem:[#allocation2 + $0x60] sm:$0xff] %v1010_v16  ;;  %371 = vst [vmem:[#allocation2 + $0x68] sm:$0xff] %v1010_v16 }
  0x30   : > { %372 = vst [vmem:[#allocation2 + $0x70] sm:$0xff] %v1010_v16  ;;  %373 = vst [vmem:[#allocation2 + $0x78] sm:$0xff] %v1010_v16 }
  0x31 PF: > { %v954_v17 = vld [vmem:[%s1099_s7] sm:$0xff]   ;;  %v955_v18 = vld [vmem:[%s1099_s7 + $0x8] sm:$0xff]   ;;  %v956_v19 = vld [vmem:[%s1099_s7 + $0x10] sm:$0xff]   ;;  %p843_p11 = scmp.ne.s32.totalorder %s1000_s14, 4 }
  0x32   : > { %865 = vmatprep.subr.bf16.mxu0 %v954_v17  ;;  %897 = vmatprep.subr.bf16.mxu1 %v954_v17  ;;  %v957_v20 = vld [vmem:[%s1099_s7 + $0x18] sm:$0xff]   ;;  %v962_v21 = vld [vmem:[%s1101_s8] sm:$0xff]   ;;  %v959_v24 = vld [vmem:[%s1099_s7 + $0x28] sm:$0xff]  }
  0x33   : > { %866 = vmatpush3.bf16.msra.mxu0 %v954_v17  ;;  %905 = vmatpush3.bf16.msra.mxu1 %v954_v17  ;;  %v963_v22 = vld [vmem:[%s1101_s8 + $0x20] sm:$0xff]   ;;  %v960_v25 = vld [vmem:[%s1099_s7 + $0x30] sm:$0xff]   ;;  %v961_v26 = vld [vmem:[%s1099_s7 + $0x38] sm:$0xff]  }
  0x34   : > { %867 = vmatprep.subr.bf16.mxu0 %v955_v18  ;;  %898 = vmatprep.subr.bf16.mxu1 %v955_v18  ;;  %v958_v23 = vld [vmem:[%s1099_s7 + $0x20] sm:$0xff]   ;;  %v964_v27 = vld [vmem:[%s1101_s8 + $0x8] sm:$0xff]   ;;  %v966_v29 = vld [vmem:[%s1101_s8 + $0x10] sm:$0xff]  }
  0x35   : > { %881 = vmatprep.mubr.bf16.mxu0 %v962_v21  ;;  %889 = vmatprep.mubr.bf16.mxu1 %v963_v22  ;;  %v965_v28 = vld [vmem:[%s1101_s8 + $0x28] sm:$0xff]   ;;  %v967_v30 = vld [vmem:[%s1101_s8 + $0x30] sm:$0xff]   ;;  %v968_v31 = vld [vmem:[%s1101_s8 + $0x18] sm:$0xff]  }
  0x36   : > { %v969_v32 = vld [vmem:[%s1101_s8 + $0x38] sm:$0xff]   ;;  %v376_v33 = vld [vmem:[#allocation2 + $0x10] sm:$0xff]  ;;  %v374_v35 = vld [vmem:[#allocation2] sm:$0xff] }
  0x37   : > { %868 = vmatpush3.bf16.msra.mxu0 %v955_v18  ;;  %906 = vmatpush3.bf16.msra.mxu1 %v955_v18  ;;  %v384_v34 = vld [vmem:[#allocation2 + $0x50] sm:$0xff]  ;;  %v382_v36 = vld [vmem:[#allocation2 + $0x40] sm:$0xff]  ;;  %v377_v39 = vld [vmem:[#allocation2 + $0x18] sm:$0xff] }
  0x38   : > { %869 = vmatprep.subr.bf16.mxu0 %v956_v19  ;;  %899 = vmatprep.subr.bf16.mxu1 %v956_v19  ;;  %v385_v40 = vld [vmem:[#allocation2 + $0x58] sm:$0xff]  ;;  %v375_v45 = vld [vmem:[#allocation2 + $0x8] sm:$0xff]  ;;  %v380_v57 = vld [vmem:[#allocation2 + $0x30] sm:$0xff] }
  0x39   : > { %v383_v46 = vld [vmem:[#allocation2 + $0x48] sm:$0xff]  ;;  %v388_v58 = vld [vmem:[#allocation2 + $0x70] sm:$0xff]  ;;  %v378_v59 = vld [vmem:[#allocation2 + $0x20] sm:$0xff] }
  0x3a   : > { %v386_v60 = vld [vmem:[#allocation2 + $0x60] sm:$0xff]  ;;  %v381_v63 = vld [vmem:[#allocation2 + $0x38] sm:$0xff]  ;;  %v379_v5 = vld [vmem:[#allocation2 + $0x28] sm:$0xff] }
  0x3b   : > { %870 = vmatpush3.bf16.msra.mxu0 %v956_v19  ;;  %907 = vmatpush3.bf16.msra.mxu1 %v956_v19  ;;  %v389_v0 = vld [vmem:[#allocation2 + $0x78] sm:$0xff]  ;;  %v387_v6 = vld [vmem:[#allocation2 + $0x68] sm:$0xff]  ;;  %v844_v18 = vld [vmem:[%s1189_s2] ss:$0 sm:$0xff] (!%p843_p11) }
  0x3c   : > { %871 = vmatprep.subr.bf16.mxu0 %v957_v20  ;;  %900 = vmatprep.subr.bf16.mxu1 %v957_v20 }
  0x3f   : > { %872 = vmatpush3.bf16.msra.mxu0 %v957_v20  ;;  %908 = vmatpush3.bf16.msra.mxu1 %v957_v20 }
  0x40   : > { %873 = vmatprep.subr.bf16.mxu0 %v958_v23  ;;  %901 = vmatprep.subr.bf16.mxu1 %v958_v23 }
  0x43   : > { %874 = vmatpush3.bf16.msra.mxu0 %v958_v23  ;;  %909 = vmatpush3.bf16.msra.mxu1 %v958_v23 }
  0x44   : > { %875 = vmatprep.subr.bf16.mxu0 %v959_v24  ;;  %902 = vmatprep.subr.bf16.mxu1 %v959_v24 }
  0x47   : > { %876 = vmatpush3.bf16.msra.mxu0 %v959_v24  ;;  %910 = vmatpush3.bf16.msra.mxu1 %v959_v24 }
  0x48   : > { %877 = vmatprep.subr.bf16.mxu0 %v960_v25  ;;  %903 = vmatprep.subr.bf16.mxu1 %v960_v25 }
  0x4b   : > { %878 = vmatpush3.bf16.msra.mxu0 %v960_v25  ;;  %911 = vmatpush3.bf16.msra.mxu1 %v960_v25 }
  0x4c   : > { %879 = vmatprep.subr.bf16.mxu0 %v961_v26  ;;  %904 = vmatprep.subr.bf16.mxu1 %v961_v26 }
  0x4f   : > { %880 = vmatpush3.bf16.msra.mxu0 %v961_v26  ;;  %912 = vmatpush3.bf16.msra.mxu1 %v961_v26 }
  0x52   : > { %882 = vmatmul.mubr.bf16.vlgmr.msra.gmra.mrb[0].mxu0 %v964_v27  ;;  %890 = vmatmul.mubr.bf16.vlgmr.msra.gmra.mrb[0].mxu1 %v965_v28 }
  0x53   : > { %885 = vmatprep.mubr.bf16.mxu0 %v966_v29  ;;  %893 = vmatprep.mubr.bf16.mxu1 %v967_v30 }
  0x5a   : > { %886 = vmatmul.mubr.bf16.gmra.mrb[4].mxu0 %v968_v31  ;;  %894 = vmatmul.mubr.bf16.gmra.mrb[4].mxu1 %v969_v32 }
 0x125   : > { %v883_v37 = vpop.f32.mrb[0].mxu0  ;;  %v891_v38 = vpop.f32.mrb[0].mxu1 }
 0x126   : > { %v617_v41 = vadd.f32 %v883_v37, %v376_v33  ;;  %v625_v42 = vadd.f32 %v891_v38, %v384_v34  ;;  %v552_v43 = vpop.f32.mrb[1].mxu0  ;;  %v584_v44 = vpop.f32.mrb[1].mxu1 }
 0x127   : > { %v615_v47 = vadd.f32 %v552_v43, %v374_v35  ;;  %v623_v48 = vadd.f32 %v584_v44, %v382_v36  ;;  %v884_v49 = vpop.f32.mrb[2].mxu0  ;;  %v892_v50 = vpop.f32.mrb[2].mxu1 }
 0x128   : > { %633 = vst [vmem:[#allocation2 + $0x10] sm:$0xff] %v617_v41  ;;  %641 = vst [vmem:[#allocation2 + $0x50] sm:$0xff] %v625_v42  ;;  %v618_v51 = vadd.f32 %v884_v49, %v377_v39  ;;  %v626_v52 = vadd.f32 %v892_v50, %v385_v40  ;;  %v555_v53 = vpop.f32.mrb[3].mxu0  ;;  %v587_v54 = vpop.f32.mrb[3].mxu1 }
 0x129   : > { %631 = vst [vmem:[#allocation2] sm:$0xff] %v615_v47  ;;  %639 = vst [vmem:[#allocation2 + $0x40] sm:$0xff] %v623_v48  ;;  %v616_v55 = vadd.f32 %v555_v53, %v375_v45  ;;  %v624_v56 = vadd.f32 %v587_v54, %v383_v46 }
 0x12a   : > { %634 = vst [vmem:[#allocation2 + $0x18] sm:$0xff] %v618_v51  ;;  %642 = vst [vmem:[#allocation2 + $0x58] sm:$0xff] %v626_v52 }
 0x12b   : > { %632 = vst [vmem:[#allocation2 + $0x8] sm:$0xff] %v616_v55  ;;  %640 = vst [vmem:[#allocation2 + $0x48] sm:$0xff] %v624_v56 }
 0x12d   : > { %v887_v61 = vpop.f32.mrb[4].mxu0  ;;  %v895_v62 = vpop.f32.mrb[4].mxu1  ;;  %650 = sbr.rel (%p843_p11) target bundleno = 319 (0x13f), region = 81 }
 0x12e   : > { %v621_v1 = vadd.f32 %v887_v61, %v380_v57  ;;  %v629_v2 = vadd.f32 %v895_v62, %v388_v58  ;;  %v568_v3 = vpop.f32.mrb[5].mxu0  ;;  %v600_v4 = vpop.f32.mrb[5].mxu1 }
 0x12f   : > { %v619_v7 = vadd.f32 %v568_v3, %v378_v59  ;;  %v627_v8 = vadd.f32 %v600_v4, %v386_v60  ;;  %v888_v9 = vpop.f32.mrb[6].mxu0  ;;  %v896_v10 = vpop.f32.mrb[6].mxu1  ;;  %v653_v22 = vld [vmem:[#allocation2 + $0x10] sm:$0xff] (!%p843_p11) }
 0x130   : > { %637 = vst [vmem:[#allocation2 + $0x30] sm:$0xff] %v621_v1  ;;  %645 = vst [vmem:[#allocation2 + $0x70] sm:$0xff] %v629_v2  ;;  %v622_v11 = vadd.f32 %v888_v9, %v381_v63  ;;  %v630_v12 = vadd.f32 %v896_v10, %v389_v0  ;;  %v571_v13 = vpop.f32.mrb[7].mxu0  ;;  %v603_v14 = vpop.f32.mrb[7].mxu1  ;;  %v651_v17 = vld [vmem:[#allocation2] sm:$0xff] (!%p843_p11)  ;;  %v676_v25 = vadd.f32 (!%p843_p11), %v844_v18, %v653_v22  ;;  %v661_v36 = vld [vmem:[#allocation2 + $0x50] sm:$0xff] (!%p843_p11) }
 0x131   : > { %635 = vst [vmem:[#allocation2 + $0x20] sm:$0xff] %v619_v7  ;;  %643 = vst [vmem:[#allocation2 + $0x60] sm:$0xff] %v627_v8  ;;  %v620_v15 = vadd.f32 %v571_v13, %v379_v5  ;;  %v628_v16 = vadd.f32 %v603_v14, %v387_v6  ;;  %v674_v20 = vadd.f32 (!%p843_p11), %v844_v18, %v651_v17  ;;  %v654_v23 = vld [vmem:[#allocation2 + $0x18] sm:$0xff] (!%p843_p11)  ;;  %v659_v34 = vld [vmem:[#allocation2 + $0x40] sm:$0xff] (!%p843_p11) }
 0x132   : > { %638 = vst [vmem:[#allocation2 + $0x38] sm:$0xff] %v622_v11  ;;  %646 = vst [vmem:[#allocation2 + $0x78] sm:$0xff] %v630_v12  ;;  %v652_v19 = vld [vmem:[#allocation2 + $0x8] sm:$0xff] (!%p843_p11)  ;;  %v677_v26 = vadd.f32 (!%p843_p11), %v844_v18, %v654_v23  ;;  %v682_v37 = vadd.f32 (!%p843_p11), %v844_v18, %v659_v34  ;;  %v684_v39 = vadd.f32 (!%p843_p11), %v844_v18, %v661_v36  ;;  %v662_v40 = vld [vmem:[#allocation2 + $0x58] sm:$0xff] (!%p843_p11) }
 0x133   : > { %636 = vst [vmem:[#allocation2 + $0x28] sm:$0xff] %v620_v15  ;;  %644 = vst [vmem:[#allocation2 + $0x68] sm:$0xff] %v628_v16  ;;  %v675_v21 = vadd.f32 (!%p843_p11), %v844_v18, %v652_v19  ;;  %v660_v35 = vld [vmem:[#allocation2 + $0x48] sm:$0xff] (!%p843_p11)  ;;  %v685_v43 = vadd.f32 (!%p843_p11), %v844_v18, %v662_v40 }
 0x134   : > { %690 = vst [vmem:[%s1190_s3] sm:$0xff] %v674_v20  ;;  %692 = vst [vmem:[%s1190_s3 + $0x10] sm:$0xff] %v676_v25  ;;  %v683_v38 = vadd.f32 %v844_v18, %v660_v35 }
 0x135   : > { %691 = vst [vmem:[%s1190_s3 + $0x8] sm:$0xff] %v675_v21  ;;  %693 = vst [vmem:[%s1190_s3 + $0x18] sm:$0xff] %v677_v26 }
 0x136   : > { %698 = vst [vmem:[%s1190_s3 + $0x40] sm:$0xff] %v682_v37  ;;  %699 = vst [vmem:[%s1190_s3 + $0x48] sm:$0xff] %v683_v38 }
 0x137   : > { %v657_v29 = vld [vmem:[#allocation2 + $0x30] sm:$0xff]  ;;  %700 = vst [vmem:[%s1190_s3 + $0x50] sm:$0xff] %v684_v39  ;;  %701 = vst [vmem:[%s1190_s3 + $0x58] sm:$0xff] %v685_v43 }
 0x138   : > { %v655_v24 = vld [vmem:[#allocation2 + $0x20] sm:$0xff]  ;;  %v680_v32 = vadd.f32 %v844_v18, %v657_v29  ;;  %v665_v46 = vld [vmem:[#allocation2 + $0x70] sm:$0xff] }
 0x139   : > { %v678_v27 = vadd.f32 %v844_v18, %v655_v24  ;;  %v658_v30 = vld [vmem:[#allocation2 + $0x38] sm:$0xff]  ;;  %v663_v41 = vld [vmem:[#allocation2 + $0x60] sm:$0xff]  ;;  %v688_v48 = vadd.f32 %v844_v18, %v665_v46 }
 0x13a   : > { %v656_v28 = vld [vmem:[#allocation2 + $0x28] sm:$0xff]  ;;  %v681_v33 = vadd.f32 %v844_v18, %v658_v30  ;;  %696 = vst [vmem:[%s1190_s3 + $0x30] sm:$0xff] %v680_v32  ;;  %v686_v44 = vadd.f32 %v844_v18, %v663_v41  ;;  %v666_v47 = vld [vmem:[#allocation2 + $0x78] sm:$0xff] }
 0x13b   : > { %v679_v31 = vadd.f32 %v844_v18, %v656_v28  ;;  %694 = vst [vmem:[%s1190_s3 + $0x20] sm:$0xff] %v678_v27  ;;  %v664_v42 = vld [vmem:[#allocation2 + $0x68] sm:$0xff]  ;;  %v689_v49 = vadd.f32 %v844_v18, %v666_v47  ;;  %704 = vst [vmem:[%s1190_s3 + $0x70] sm:$0xff] %v688_v48 }
 0x13c   : > { %697 = vst [vmem:[%s1190_s3 + $0x38] sm:$0xff] %v681_v33  ;;  %v687_v45 = vadd.f32 %v844_v18, %v664_v42  ;;  %702 = vst [vmem:[%s1190_s3 + $0x60] sm:$0xff] %v686_v44 }
 0x13d   : > { %695 = vst [vmem:[%s1190_s3 + $0x28] sm:$0xff] %v679_v31  ;;  %705 = vst [vmem:[%s1190_s3 + $0x78] sm:$0xff] %v689_v49 }
 0x13e   : > { %703 = vst [vmem:[%s1190_s3 + $0x68] sm:$0xff] %v687_v45 }
 0x13f PF: > { %s13_s16 = sadd.s32 1, %s1008_s16   ;;  %s1191_s12 = smov %s996_s13 }
 0x140   : > { %p10_p12 = scmp.ge.s32.totalorder %s13_s16, 7   ;;  %s1192_s13 = smov %s1066_s20 }
 0x141   : > { %s1193_s14 = smov %s1004_s15  ;;  %s1194_s15 = smov %s1196_s17 }
 0x142   :  { %12 = sbr.rel (!%p10_p12) target bundleno = 3 (0x3), region = 122 }

// kernel: generator_forward.22
= control target key start
LH: loop header
LB: loop body
LE: loop exit
PB: predicated region body
PF: predicated region fallthrough
CT: control target
= control target key end

     0   :  { %s383_s6 = smov 0   ;;  %s385_s7 = smov 0   ;;  %s423_s0 = inlined_call_operand.vmem [shape: f32[2,64,128], index: 0, kind: input, shape index: {}]   ;;  %s424_s1 = inlined_call_operand.vmem [shape: f32[2,64,128], index: 1, kind: output, shape index: {}]  }
   0x1   :  { %s387_s8 = smov 0  }
   0x2 LB: > { %s23_s9 = sadd.s32 1, %s367_s7  ;;  %p314_p0 = scmp.ge.s32.totalorder %s371_s8, 1  ;;  %s371_s8 = sphi %s387_s8, %s11_s8   ;;  %s367_s7 = sphi %s385_s7, %s426_s7   ;;  %s363_s6 = sphi %s383_s6, %s425_s6  }
   0x3   : > { %p25_p1 = scmp.ge.s32.totalorder %s23_s9, 2  ;;  %p106_p2 = scmp.lt.s32.totalorder %s371_s8, 3 }
   0x5   : > { %s428_s9 = smov (%p25_p1, %s23_s9), 0  ;;  %p107_p3 = pnand %p314_p0, %p106_p2 }
   0x6   : > { %p132_p4 = scmp.lt.s32.totalorder (!%p107_p3), %s363_s6, 1 }
   0x7   : > { %110 = sbr.rel (%p107_p3) target bundleno = 99 (0x63), region = 24 }
   0xe   : > { %s430_s6 = smov (!%p132_p4, %s363_s6), 1 }
   0xf   : > { %s321_s10 = sshll.u32 %s430_s6, 6 }
  0x10   : > { %s139_s13 = scalar_lea.vmem %s423_s0, %s321_s10  ;;  %s147_s16 = scalar_lea.vmem %s424_s1, %s321_s10 }
  0x11   : > { %v148_v0 = vld [vmem:[%s139_s13] sm:$0xff]  ;;  %v149_v1 = vld [vmem:[%s139_s13 + $0x8] sm:$0xff]  ;;  %v150_v2 = vld [vmem:[%s139_s13 + $0x10] sm:$0xff] }
  0x12   : > { %v156_v3 = vadd.f32 %v149_v1, %v148_v0  ;;  %v151_v4 = vld [vmem:[%s139_s13 + $0x18] sm:$0xff]  ;;  %v152_v6 = vld [vmem:[%s139_s13 + $0x20] sm:$0xff]  ;;  %v153_v8 = vld [vmem:[%s139_s13 + $0x28] sm:$0xff] }
  0x13   : > { %v154_v10 = vld [vmem:[%s139_s13 + $0x30] sm:$0xff]  ;;  %v155_v12 = vld [vmem:[%s139_s13 + $0x38] sm:$0xff] }
  0x14   : > { %v157_v5 = vadd.f32 %v156_v3, %v150_v2 }
  0x16   : > { %v158_v7 = vadd.f32 %v157_v5, %v151_v4 }
  0x18   : > { %v159_v9 = vadd.f32 %v158_v7, %v152_v6 }
  0x1a   : > { %v160_v11 = vadd.f32 %v159_v9, %v153_v8 }
  0x1c   : > { %v161_v13 = vadd.f32 %v160_v11, %v154_v10 }
  0x1e   : > { %v162_v14 = vadd.f32 %v161_v13, %v155_v12 }
  0x20   : > { %v163_v15 = vrot.slane %v162_v14, 4 }
  0x22   : > { %v164_v16 = vadd.f32 %v163_v15, %v162_v14 }
  0x24   : > { %v165_v17 = vrot.slane %v164_v16, 2 }
  0x26   : > { %v166_v18 = vadd.f32 %v165_v17, %v164_v16 }
  0x28   : > { %v167_v19 = vrot.slane %v166_v18, 1 }
  0x2a   : > { %v168_v20 = vadd.f32 %v167_v19, %v166_v18 }
  0x2c   : > { %v170_v21 = vmul.f32 0.015625, %v168_v20 }
  0x2e   : > { %v171_v22 = vsub.f32 %v148_v0, %v170_v21  ;;  %v172_v23 = vsub.f32 %v149_v1, %v170_v21  ;;  %v173_v24 = vsub.f32 %v150_v2, %v170_v21  ;;  %v174_v25 = vsub.f32 %v151_v4, %v170_v21 }
  0x2f   : > { %v175_v26 = vsub.f32 %v152_v6, %v170_v21  ;;  %v176_v30 = vsub.f32 %v153_v8, %v170_v21  ;;  %v177_v33 = vsub.f32 %v154_v10, %v170_v21  ;;  %v178_v36 = vsub.f32 %v155_v12, %v170_v21 }
  0x30   : > { %v179_v27 = vmul.f32 %v171_v22, %v171_v22  ;;  %v180_v28 = vmul.f32 %v172_v23, %v172_v23  ;;  %v181_v29 = vmul.f32 %v173_v24, %v173_v24  ;;  %v182_v31 = vmul.f32 %v174_v25, %v174_v25 }
  0x31   : > { %v183_v34 = vmul.f32 %v175_v26, %v175_v26  ;;  %v184_v37 = vmul.f32 %v176_v30, %v176_v30  ;;  %v185_v39 = vmul.f32 %v177_v33, %v177_v33  ;;  %v186_v41 = vmul.f32 %v178_v36, %v178_v36 }
  0x32   : > { %v187_v32 = vadd.f32 %v180_v28, %v179_v27 }
  0x34   : > { %v188_v35 = vadd.f32 %v187_v32, %v181_v29 }
  0x36   : > { %v189_v38 = vadd.f32 %v188_v35, %v182_v31 }
  0x38   : > { %v190_v40 = vadd.f32 %v189_v38, %v183_v34 }
  0x3a   : > { %v191_v42 = vadd.f32 %v190_v40, %v184_v37 }
  0x3c   : > { %v192_v43 = vadd.f32 %v191_v42, %v185_v39 }
  0x3e   : > { %v193_v44 = vadd.f32 %v192_v43, %v186_v41 }
  0x40   : > { %v194_v45 = vrot.slane %v193_v44, 4 }
  0x42   : > { %v195_v46 = vadd.f32 %v194_v45, %v193_v44 }
  0x44   : > { %v196_v47 = vrot.slane %v195_v46, 2 }
  0x46   : > { %v197_v48 = vadd.f32 %v196_v47, %v195_v46 }
  0x48   : > { %v198_v49 = vrot.slane %v197_v48, 1 }
  0x4a   : > { %v199_v50 = vadd.f32 %v198_v49, %v197_v48 }
  0x4c   : > { %v200_v51 = vmul.f32 0.015625, %v199_v50 }
  0x4e   : > { %v201_v52 = vadd.f32 1e-05, %v200_v51 }
  0x50   : > { %347 = vrsqrt.f32 %v201_v52 }
  0x5a   : > { %v348_v53 = vpop.eup %347 }
  0x5b   : > { %v203_v54 = vmul.f32 %v348_v53, %v171_v22  ;;  %v204_v55 = vmul.f32 %v348_v53, %v172_v23  ;;  %v205_v56 = vmul.f32 %v348_v53, %v173_v24  ;;  %v206_v57 = vmul.f32 %v348_v53, %v174_v25 }
  0x5c   : > { %v207_v58 = vmul.f32 %v348_v53, %v175_v26  ;;  %v208_v59 = vmul.f32 %v348_v53, %v176_v30  ;;  %v209_v60 = vmul.f32 %v348_v53, %v177_v33  ;;  %v210_v61 = vmul.f32 %v348_v53, %v178_v36 }
  0x5d   : > { %v211_v62 = vmax.f32 %v203_v54, 0.0  ;;  %v212_v63 = vmax.f32 %v204_v55, 0.0  ;;  %v213_v0 = vmax.f32 %v205_v56, 0.0  ;;  %v214_v1 = vmax.f32 %v206_v57, 0.0 }
  0x5e   : > { %v215_v2 = vmax.f32 %v207_v58, 0.0  ;;  %v216_v3 = vmax.f32 %v208_v59, 0.0  ;;  %v217_v4 = vmax.f32 %v209_v60, 0.0  ;;  %v218_v5 = vmax.f32 %v210_v61, 0.0 }
  0x5f   : > { %219 = vst [vmem:[%s147_s16] sm:$0xff] %v211_v62  ;;  %220 = vst [vmem:[%s147_s16 + $0x8] sm:$0xff] %v212_v63 }
  0x60   : > { %221 = vst [vmem:[%s147_s16 + $0x10] sm:$0xff] %v213_v0  ;;  %222 = vst [vmem:[%s147_s16 + $0x18] sm:$0xff] %v214_v1 }
  0x61   : > { %223 = vst [vmem:[%s147_s16 + $0x20] sm:$0xff] %v215_v2  ;;  %224 = vst [vmem:[%s147_s16 + $0x28] sm:$0xff] %v216_v3 }
  0x62   : > { %225 = vst [vmem:[%s147_s16 + $0x30] sm:$0xff] %v217_v4  ;;  %226 = vst [vmem:[%s147_s16 + $0x38] sm:$0xff] %v218_v5 }
  0x63 PF: > { %s11_s8 = sadd.s32 1, %s371_s8   ;;  %s425_s6 = smov %s367_s7 }
  0x64   : > { %p8_p5 = scmp.ge.s32.totalorder %s11_s8, 4   ;;  %s426_s7 = smov %s428_s9 }
  0x66   :  { %10 = sbr.rel (!%p8_p5) target bundleno = 2 (0x2), region = 54 }

// kernel: generator_forward.23
= control target key start
LH: loop header
LB: loop body
LE: loop exit
PB: predicated region body
PF: predicated region fallthrough
CT: control target
= control target key end

     0   :  { %s869_s12 = smov 0   ;;  %s871_s13 = smov 0   ;;  %s988_s0 = inlined_call_operand.vmem [shape: bf16[32,1152], index: 0, kind: input, shape index: {}]   ;;  %s989_s1 = inlined_call_operand.vmem [shape: bf16[1152,256], index: 1, kind: input, shape index: {}]   ;;  %s990_s2 = inlined_call_operand.vmem [shape: f32[1,256], index: 2, kind: input, shape index: {}]   ;;  %s991_s3 = inlined_call_operand.vmem [shape: f32[32,256], index: 3, kind: output, shape index: {}]  }
   0x1   :  { %s873_s14 = smov 0   ;;  %s875_s15 = smov 0  }
   0x2   :  { %s877_s16 = smov 0  }
   0x3 LB: > { %s25_s17 = sadd.s32 1, %s841_s15  ;;  %p48_p1 = scmp.ne.s32.totalorder %s833_s13, %s829_s12  ;;  %s845_s16 = sphi %s877_s16, %s13_s16   ;;  %s841_s15 = sphi %s875_s15, %s995_s15   ;;  %s837_s14 = sphi %s873_s14, %s994_s14   ;;  %s833_s13 = sphi %s871_s13, %s993_s13   ;;  %s829_s12 = sphi %s869_s12, %s992_s12  }
   0x4   : > { %p26_p0 = scmp.ge.s32.totalorder %s25_s17, 9  ;;  %p49_p2 = scmp.eq.s32.totalorder %s845_s16, 0 }
   0x5   : > { %s41_s19 = sadd.s32 1, %s833_s13  ;;  %p690_p5 = scmp.ge.s32.totalorder %s845_s16, 9 }
   0x6   : > { %s997_s17 = smov (%p26_p0, %s25_s17), 0  ;;  %p50_p3 = por %p49_p2, %p48_p1 }
   0x7   : > { %s37_s18 = ssub.s32 %s841_s15, %s997_s17  ;;  %164 = sbr.rel (%p690_p5) target bundleno = 21 (0x15), region = 20 }
   0x8   : > { %p39_p4 = scmp.eq.s32.totalorder %s37_s18, 0 }
   0xa   : > { %s904_s20 = scalar_select %p39_p4, %s833_s13, %s41_s19  }
   0xe   : > { %167 = sbr.rel (!%p50_p3) target bundleno = 21 (0x15), region = 24  ;;  %s169_s21 = sand.u32 (%p50_p3), 1, %s833_s13  }
   0xf   : > { %s692_s22 = sshll.u32 (%p50_p3), %s841_s15, 2  ;;  %s691_s23 = sshll.u32 (%p50_p3), %s169_s21, 4 }
  0x10   : > { %s176_s26 = scalar_lea.vmem (%p50_p3), %s988_s0, %s692_s22  ;;  %s171_s27 = scalar_lea.vmem (%p50_p3), [#allocation3], %s691_s23 }
  0x11   : > { %v192_v0 = vld [vmem:[%s176_s26] sm:$0xf] (%p50_p3)  ;;  %v194_v1 = vld [vmem:[%s176_s26 + $0x24] sm:$0xf] (%p50_p3)  ;;  %v196_v2 = vld [vmem:[%s176_s26 + $0x48] sm:$0xf] (%p50_p3) }
  0x12   : > { %193 = vst [vmem:[%s171_s27] sm:$0xf] (%p50_p3), %v192_v0  ;;  %195 = vst [vmem:[%s171_s27 + $0x4] sm:$0xf] (%p50_p3), %v194_v1  ;;  %v198_v3 = vld [vmem:[%s176_s26 + $0x6c] sm:$0xf] (%p50_p3) }
  0x13   : > { %197 = vst [vmem:[%s171_s27 + $0x8] sm:$0xf] (%p50_p3), %v196_v2  ;;  %199 = vst [vmem:[%s171_s27 + $0xc] sm:$0xf] (%p50_p3), %v198_v3 }
  0x15 PF: > { %p693_p6 = scmp.ge.s32.totalorder %s845_s16, 1  ;;  %p244_p7 = scmp.lt.s32.totalorder %s845_s16, 10 }
  0x17   : > { %p245_p8 = pnand %p693_p6, %p244_p7 }
  0x18   : > { %s251_s28 = sand.u32 (!%p245_p8), 1, %s829_s12   ;;  %s695_s29 = sshll.u32 (!%p245_p8), %s837_s14, 4 }
  0x19   : > { %248 = sbr.rel (%p245_p8) target bundleno = 302 (0x12e), region = 69  ;;  %s916_s30 = sshll.u32 (!%p245_p8), %s251_s28, 4 }
  0x1a   : > { %p296_p9 = scmp.lt.s32.totalorder (!%p245_p8), %s695_s29, 143  ;;  %s253_s8 = scalar_lea.vmem (!%p245_p8), [#allocation3], %s916_s30 }
  0x1b   : > { %p698_p10 = scmp.ne.s32.totalorder (!%p245_p8), %s837_s14, 0 }
  0x20   : > { %s999_s29 = smov (!%p296_p9, %s695_s29), 143  ;;  %327 = sbr.rel (%p698_p10) target bundleno = 39 (0x27), region = 77 }
  0x21   : > { %s722_s4 = sshll.u32 %s999_s29, 3  ;;  %v847_v4 = vmov (!%p698_p10), 0.0  }
  0x22   : > { %s921_s7 = scalar_lea.vmem %s989_s1, %s722_s4  ;;  %328 = vst [vmem:[#allocation2] sm:$0xff] (!%p698_p10), %v847_v4  ;;  %329 = vst [vmem:[#allocation2 + $0x8] sm:$0xff] (!%p698_p10), %v847_v4 }
  0x23   : > { %330 = vst [vmem:[#allocation2 + $0x10] sm:$0xff] (!%p698_p10), %v847_v4  ;;  %331 = vst [vmem:[#allocation2 + $0x18] sm:$0xff] (!%p698_p10), %v847_v4 }
  0x24   : > { %332 = vst [vmem:[#allocation2 + $0x20] sm:$0xff] (!%p698_p10), %v847_v4  ;;  %333 = vst [vmem:[#allocation2 + $0x28] sm:$0xff] (!%p698_p10), %v847_v4 }
  0x25   : > { %334 = vst [vmem:[#allocation2 + $0x30] sm:$0xff] (!%p698_p10), %v847_v4  ;;  %335 = vst [vmem:[#allocation2 + $0x38] sm:$0xff] (!%p698_p10), %v847_v4 }
  0x27 PF: > { %v781_v5 = vld [vmem:[%s921_s7 + $0x4] ss:$8 sps:$4 sm:$0xff]   ;;  %v783_v6 = vld [vmem:[%s921_s7] ss:$8 sps:$4 sm:$0xff]   ;;  %v848_v7 = vmov 0   ;;  %p717_p11 = scmp.ne.s32.totalorder %s837_s14, 8 }
  0x28   : > { %488 = vmatprep.mubr.bf16.mxu0 %v848_v7  ;;  %498 = vmatprep.mubr.bf16.mxu1 %v848_v7  ;;  %v784_v8 = vld [vmem:[%s921_s7 + $0x14] ss:$8 sps:$4 sm:$0xff]   ;;  %v786_v9 = vld [vmem:[%s921_s7 + $0x10] ss:$8 sps:$4 sm:$0xff]   ;;  %v787_v10 = vld [vmem:[%s921_s7 + $0x24] ss:$8 sps:$4 sm:$0xff]   ;;  %v539_v48 = vlaneseq (!%p717_p11) }
  0x29   : > { %456 = vmatprep.subr.bf16.mxu0 %v781_v5  ;;  %723 = vmatprep.subr.bf16.mxu1 %v781_v5  ;;  %v789_v11 = vld [vmem:[%s921_s7 + $0x20] ss:$8 sps:$4 sm:$0xff]   ;;  %v790_v12 = vld [vmem:[%s921_s7 + $0x34] ss:$8 sps:$4 sm:$0xff]   ;;  %v792_v13 = vld [vmem:[%s921_s7 + $0x30] ss:$8 sps:$4 sm:$0xff]  }
  0x2a   : > { %457 = vmatpush1.bf16.msra.mxu0 %v783_v6  ;;  %731 = vmatpush1.bf16.msra.mxu1 %v783_v6  ;;  %v793_v14 = vld [vmem:[%s921_s7 + $0x44] ss:$8 sps:$4 sm:$0xff]   ;;  %v795_v15 = vld [vmem:[%s921_s7 + $0x40] ss:$8 sps:$4 sm:$0xff]   ;;  %v796_v16 = vld [vmem:[%s921_s7 + $0x54] ss:$8 sps:$4 sm:$0xff]  }
  0x2b   : > { %458 = vmatprep.subr.bf16.mxu0 %v784_v8  ;;  %724 = vmatprep.subr.bf16.mxu1 %v784_v8  ;;  %v798_v17 = vld [vmem:[%s921_s7 + $0x50] ss:$8 sps:$4 sm:$0xff]   ;;  %v799_v18 = vld [vmem:[%s921_s7 + $0x64] ss:$8 sps:$4 sm:$0xff]   ;;  %v801_v19 = vld [vmem:[%s921_s7 + $0x60] ss:$8 sps:$4 sm:$0xff]  }
  0x2c   : > { %v802_v20 = vld [vmem:[%s921_s7 + $0x74] ss:$8 sps:$4 sm:$0xff]   ;;  %v804_v21 = vld [vmem:[%s921_s7 + $0x70] ss:$8 sps:$4 sm:$0xff]   ;;  %v336_v24 = vld [vmem:[#allocation2] sm:$0xff]  ;;  %v540_v49 = vshrl.u32 (!%p717_p11), %v539_v48, 7 }
  0x2d   : > { %v805_v22 = vld [vmem:[%s253_s8] sm:$0xff]   ;;  %v806_v23 = vld [vmem:[%s253_s8 + $0x8] sm:$0xff]  }
  0x2e   : > { %459 = vmatpush1.bf16.msra.mxu0 %v786_v9  ;;  %732 = vmatpush1.bf16.msra.mxu1 %v786_v9  ;;  %v340_v25 = vld [vmem:[#allocation2 + $0x20] sm:$0xff]  ;;  %v337_v26 = vld [vmem:[#allocation2 + $0x8] sm:$0xff]  ;;  %v338_v30 = vld [vmem:[#allocation2 + $0x10] sm:$0xff]  ;;  %v541_v52 = vsub.s32 (!%p717_p11), 0, %v540_v49  ;;  %v545_v54 = vsub.s32 (!%p717_p11), 1, %v540_v49 }
  0x2f   : > { %460 = vmatprep.subr.bf16.mxu0 %v787_v10  ;;  %725 = vmatprep.subr.bf16.mxu1 %v787_v10  ;;  %v341_v27 = vld [vmem:[#allocation2 + $0x28] sm:$0xff]  ;;  %v342_v31 = vld [vmem:[#allocation2 + $0x30] sm:$0xff]  ;;  %v339_v36 = vld [vmem:[#allocation2 + $0x18] sm:$0xff] }
  0x30   : > { %v343_v37 = vld [vmem:[#allocation2 + $0x38] sm:$0xff]  ;;  %v537_v50 = vld [vmem:[%s990_s2] sm:$0x3] (!%p717_p11) }
  0x31   : > { %v542_v58 = vrot.slane (!%p717_p11), %v537_v50, %v541_v52  ;;  %v546_v59 = vrot.slane (!%p717_p11), %v537_v50, %v545_v54 }
  0x32   : > { %461 = vmatpush1.bf16.msra.mxu0 %v789_v11  ;;  %733 = vmatpush1.bf16.msra.mxu1 %v789_v11 }
  0x33   : > { %462 = vmatprep.subr.bf16.mxu0 %v790_v12  ;;  %726 = vmatprep.subr.bf16.mxu1 %v790_v12 }
  0x36   : > { %463 = vmatpush1.bf16.msra.mxu0 %v792_v13  ;;  %734 = vmatpush1.bf16.msra.mxu1 %v792_v13 }
  0x37   : > { %464 = vmatprep.subr.bf16.mxu0 %v793_v14  ;;  %727 = vmatprep.subr.bf16.mxu1 %v793_v14 }
  0x3a   : > { %465 = vmatpush1.bf16.msra.mxu0 %v795_v15  ;;  %735 = vmatpush1.bf16.msra.mxu1 %v795_v15 }
  0x3b   : > { %466 = vmatprep.subr.bf16.mxu0 %v796_v16  ;;  %728 = vmatprep.subr.bf16.mxu1 %v796_v16 }
  0x3e   : > { %467 = vmatpush1.bf16.msra.mxu0 %v798_v17  ;;  %736 = vmatpush1.bf16.msra.mxu1 %v798_v17 }
  0x3f   : > { %468 = vmatprep.subr.bf16.mxu0 %v799_v18  ;;  %729 = vmatprep.subr.bf16.mxu1 %v799_v18 }
  0x42   : > { %469 = vmatpush1.bf16.msra.mxu0 %v801_v19  ;;  %737 = vmatpush1.bf16.msra.mxu1 %v801_v19 }
  0x43   : > { %470 = vmatprep.subr.bf16.mxu0 %v802_v20  ;;  %730 = vmatprep.subr.bf16.mxu1 %v802_v20 }
  0x46   : > { %471 = vmatpush1.bf16.msra.mxu0 %v804_v21  ;;  %738 = vmatpush1.bf16.msra.mxu1 %v804_v21 }
  0x49   : > { %489 = vmatmul.mubr.bf16.vlgmr.msra.gmra.mrb[0].mxu0 %v805_v22  ;;  %499 = vmatmul.mubr.bf16.vlgmr.msra.gmra.mrb[0].mxu1 %v806_v23 }
 0x11c   : > { %v490_v28 = vpop.f32.mrb[0].mxu0  ;;  %v500_v29 = vpop.f32.mrb[0].mxu1  ;;  %528 = sbr.rel (%p717_p11) target bundleno = 302 (0x12e), region = 81 }
 0x11d   : > { %v509_v32 = vadd.f32 %v490_v28, %v336_v24  ;;  %v513_v33 = vadd.f32 %v500_v29, %v340_v25  ;;  %v492_v34 = vpop.f32.mrb[1].mxu0  ;;  %v502_v35 = vpop.f32.mrb[1].mxu1 }
 0x11e   : > { %v510_v38 = vadd.f32 %v492_v34, %v337_v26  ;;  %v514_v39 = vadd.f32 %v502_v35, %v341_v27  ;;  %v494_v40 = vpop.f32.mrb[2].mxu0  ;;  %v504_v41 = vpop.f32.mrb[2].mxu1 }
 0x11f   : > { %517 = vst [vmem:[#allocation2] sm:$0xff] %v509_v32  ;;  %521 = vst [vmem:[#allocation2 + $0x20] sm:$0xff] %v513_v33  ;;  %v511_v42 = vadd.f32 %v494_v40, %v338_v30  ;;  %v515_v43 = vadd.f32 %v504_v41, %v342_v31  ;;  %v496_v44 = vpop.f32.mrb[3].mxu0  ;;  %v506_v45 = vpop.f32.mrb[3].mxu1 }
 0x120   : > { %518 = vst [vmem:[#allocation2 + $0x8] sm:$0xff] %v510_v38  ;;  %522 = vst [vmem:[#allocation2 + $0x28] sm:$0xff] %v514_v39  ;;  %v512_v46 = vadd.f32 %v496_v44, %v339_v36  ;;  %v516_v47 = vadd.f32 %v506_v45, %v343_v37 }
 0x121   : > { %519 = vst [vmem:[#allocation2 + $0x10] sm:$0xff] %v511_v42  ;;  %523 = vst [vmem:[#allocation2 + $0x30] sm:$0xff] %v515_v43 }
 0x122   : > { %520 = vst [vmem:[#allocation2 + $0x18] sm:$0xff] %v512_v46  ;;  %524 = vst [vmem:[#allocation2 + $0x38] sm:$0xff] %v516_v47 }
 0x126   : > { %v529_v51 = vld [vmem:[#allocation2] sm:$0xff] }
 0x127   : > { %v530_v53 = vld [vmem:[#allocation2 + $0x8] sm:$0xff]  ;;  %v533_v57 = vld [vmem:[#allocation2 + $0x20] sm:$0xff]  ;;  %v549_v63 = vadd.f32 %v542_v58, %v529_v51 }
 0x128   : > { %v531_v55 = vld [vmem:[#allocation2 + $0x10] sm:$0xff]  ;;  %v534_v60 = vld [vmem:[#allocation2 + $0x28] sm:$0xff]  ;;  %v550_v0 = vadd.f32 %v546_v59, %v530_v53  ;;  %v553_v3 = vadd.f32 %v542_v58, %v533_v57 }
 0x129   : > { %v532_v56 = vld [vmem:[#allocation2 + $0x18] sm:$0xff]  ;;  %v535_v61 = vld [vmem:[#allocation2 + $0x30] sm:$0xff]  ;;  %v551_v1 = vadd.f32 %v542_v58, %v531_v55  ;;  %v554_v4 = vadd.f32 %v546_v59, %v534_v60  ;;  %557 = vst [vmem:[%s991_s3] sm:$0xff] %v549_v63 }
 0x12a   : > { %v536_v62 = vld [vmem:[#allocation2 + $0x38] sm:$0xff]  ;;  %v552_v2 = vadd.f32 %v546_v59, %v532_v56  ;;  %v555_v5 = vadd.f32 %v542_v58, %v535_v61  ;;  %558 = vst [vmem:[%s991_s3 + $0x8] sm:$0xff] %v550_v0  ;;  %561 = vst [vmem:[%s991_s3 + $0x20] sm:$0xff] %v553_v3 }
 0x12b   : > { %v556_v6 = vadd.f32 %v546_v59, %v536_v62  ;;  %559 = vst [vmem:[%s991_s3 + $0x10] sm:$0xff] %v551_v1  ;;  %562 = vst [vmem:[%s991_s3 + $0x28] sm:$0xff] %v554_v4 }
 0x12c   : > { %560 = vst [vmem:[%s991_s3 + $0x18] sm:$0xff] %v552_v2  ;;  %563 = vst [vmem:[%s991_s3 + $0x30] sm:$0xff] %v555_v5 }
 0x12d   : > { %564 = vst [vmem:[%s991_s3 + $0x38] sm:$0xff] %v556_v6 }
 0x12e PF: > { %s13_s16 = sadd.s32 1, %s845_s16   ;;  %s992_s12 = smov %s833_s13 }
 0x12f   : > { %p10_p12 = scmp.ge.s32.totalorder %s13_s16, 11   ;;  %s993_s13 = smov %s904_s20 }
 0x130   : > { %s994_s14 = smov %s841_s15  ;;  %s995_s15 = smov %s997_s17 }
 0x131   :  { %12 = sbr.rel (!%p10_p12) target bundleno = 3 (0x3), region = 122 }

// kernel: generator_forward.24
= control target key start
LH: loop header
LB: loop body
LE: loop exit
PB: predicated region body
PF: predicated region fallthrough
CT: control target
= control target key end

     0   :  { %s456_s6 = smov 0   ;;  %s458_s7 = smov 0   ;;  %s556_s0 = inlined_call_operand.vmem [shape: f32[2,16,256], index: 0, kind: input, shape index: {}]   ;;  %s557_s1 = inlined_call_operand.vmem [shape: f32[2,16,256], index: 1, kind: output, shape index: {}]  }
   0x1   :  { %s460_s8 = smov 0   ;;  %s462_s9 = smov 0  }
   0x2   :  { %s464_s10 = smov 0   ;;  %s466_s11 = smov 0  }
   0x3   :  { %s468_s12 = smov 0  }
   0x4 LB: > { %s20_s13 = sadd.s32 1, %s436_s10  ;;  %s23_s14 = sadd.s32 1, %s440_s11  ;;  %s444_s12 = sphi %s468_s12, %s11_s12   ;;  %s440_s11 = sphi %s466_s11, %s564_s11   ;;  %s436_s10 = sphi %s464_s10, %s563_s10   ;;  %s432_s9 = sphi %s462_s9, %s562_s9   ;;  %s428_s8 = sphi %s460_s8, %s561_s8   ;;  %s424_s7 = sphi %s458_s7, %s560_s7   ;;  %s420_s6 = sphi %s456_s6, %s559_s6  }
   0x5   : > { %p21_p0 = scmp.ge.s32.totalorder %s20_s13, 2  ;;  %s317_s15 = sadd.s32 4294967295, %s444_s12  }
   0x6   : > { %p39_p1 = scmp.ne.s32.totalorder %s424_s7, %s420_s6  ;;  %p40_p2 = scmp.eq.s32.totalorder %s444_s12, 0 }
   0x7   : > { %s566_s13 = smov (%p21_p0, %s20_s13), 0  ;;  %s568_s14 = smov (!%p21_p0, %s23_s14), %s440_s11 }
   0x8   : > { %p25_p3 = scmp.ge.s32.totalorder %s568_s14, 2  ;;  %p71_p4 = scmp.eq.s32.totalorder %s317_s15, 3 }
   0x9   : > { %s28_s16 = ssub.s32 %s436_s10, %s566_s13  ;;  %p41_p5 = por %p40_p2, %p39_p1 }
   0xa   : > { %s570_s14 = smov (%p25_p3, %s568_s14), 0  ;;  %p504_p6 = por %p71_p4, %p39_p1 }
   0xb   : > { %s27_s18 = ssub.s32 %s440_s11, %s570_s14  ;;  %s32_s20 = sadd.s32 1, %s424_s7 }
   0xc   : > { %s29_s19 = sor.u32 %s28_s16, %s27_s18  ;;  %p320_p8 = scmp.ge.s32.totalorder %s444_s12, 4 }
   0xd   : > { %p30_p7 = scmp.eq.s32.totalorder %s29_s19, 0 }
   0xe   : > { %93 = sbr.rel (%p320_p8) target bundleno = 28 (0x1c), region = 16 }
   0xf   : > { %s512_s21 = scalar_select %p30_p7, %s424_s7, %s32_s20  }
  0x15   : > { %96 = sbr.rel (!%p41_p5) target bundleno = 28 (0x1c), region = 20  ;;  %s98_s22 = sand.u32 (%p41_p5), 1, %s424_s7  }
  0x16   : > { %s322_s23 = sshll.u32 (%p41_p5), %s440_s11, 2  ;;  %s321_s24 = sshll.u32 (%p41_p5), %s98_s22, 4 }
  0x17   : > { %s102_s25 = sadd.s32 (%p41_p5), %s436_s10, %s322_s23  ;;  %s100_s30 = scalar_lea.vmem (%p41_p5), [#allocation2], %s321_s24 }
  0x18   : > { %s323_s26 = sshll.u32 (%p41_p5), %s102_s25, 3 }
  0x19   : > { %s104_s29 = scalar_lea.vmem (%p41_p5), %s556_s0, %s323_s26 }
  0x1a   : > { %v134_v0 = vld [vmem:[%s104_s29] sm:$0xff] (%p41_p5)  ;;  %v136_v1 = vld [vmem:[%s104_s29 + $0x10] sm:$0xff] (%p41_p5) }
  0x1b   : > { %135 = vst [vmem:[%s100_s30] sm:$0xff] (%p41_p5), %v134_v0  ;;  %137 = vst [vmem:[%s100_s30 + $0x8] sm:$0xff] (%p41_p5), %v136_v1 }
  0x1c PF: > { %p324_p9 = scmp.ge.s32.totalorder %s444_s12, 1  ;;  %p142_p10 = scmp.lt.s32.totalorder %s444_s12, 5 }
  0x1e   : > { %p143_p11 = pnand %p324_p9, %p142_p10 }
  0x1f   : > { %s149_s2 = sand.u32 (!%p143_p11), 1, %s420_s6  }
  0x20   : > { %146 = sbr.rel (%p143_p11) target bundleno = 97 (0x61), region = 58  ;;  %s524_s3 = sshll.u32 (!%p143_p11), %s149_s2, 4 }
  0x21   : > { %s151_s4 = scalar_lea.vmem (!%p143_p11), [#allocation2], %s524_s3  ;;  %s166_s5 = scalar_lea.vmem (!%p143_p11), [#allocation3], %s524_s3 }
  0x22   : > { %v167_v2 = vld [vmem:[%s151_s4] sm:$0xff] (!%p143_p11)  ;;  %v168_v3 = vld [vmem:[%s151_s4 + $0x8] sm:$0xff] (!%p143_p11) }
  0x23   : > { %v169_v4 = vadd.f32 (!%p143_p11), %v168_v3, %v167_v2 }
  0x25   : > { %v170_v5 = vrot.slane (!%p143_p11), %v169_v4, 4 }
  0x27   : > { %v171_v6 = vadd.f32 %v170_v5, %v169_v4  ;;  %s328_s6 = sshll.u32 (%p504_p6), %s432_s9, 2 }
  0x28   : > { %s206_s15 = sadd.s32 (%p504_p6), %s428_s8, %s328_s6 }
  0x29   : > { %v172_v7 = vrot.slane %v171_v6, 2  ;;  %s329_s16 = sshll.u32 (%p504_p6), %s206_s15, 3 }
  0x2a   : > { %s208_s20 = scalar_lea.vmem (%p504_p6), %s557_s1, %s329_s16 }
  0x2b   : > { %v173_v8 = vadd.f32 %v172_v7, %v171_v6 }
  0x2d   : > { %v174_v9 = vrot.slane %v173_v8, 1 }
  0x2f   : > { %v175_v10 = vadd.f32 %v174_v9, %v173_v8 }
  0x31   : > { %v177_v11 = vmul.f32 0.0625, %v175_v10 }
  0x33   : > { %v178_v12 = vsub.f32 %v167_v2, %v177_v11  ;;  %v179_v13 = vsub.f32 %v168_v3, %v177_v11 }
  0x35   : > { %v180_v14 = vmul.f32 %v178_v12, %v178_v12  ;;  %v181_v15 = vmul.f32 %v179_v13, %v179_v13 }
  0x37   : > { %v182_v16 = vadd.f32 %v181_v15, %v180_v14 }
  0x39   : > { %v183_v17 = vrot.slane %v182_v16, 4 }
  0x3b   : > { %v184_v18 = vadd.f32 %v183_v17, %v182_v16 }
  0x3d   : > { %v185_v19 = vrot.slane %v184_v18, 2 }
  0x3f   : > { %v186_v20 = vadd.f32 %v185_v19, %v184_v18 }
  0x41   : > { %v187_v21 = vrot.slane %v186_v20, 1 }
  0x43   : > { %v188_v22 = vadd.f32 %v187_v21, %v186_v20 }
  0x45   : > { %v189_v23 = vmul.f32 0.0625, %v188_v22 }
  0x47   : > { %v190_v24 = vadd.f32 1e-05, %v189_v23 }
  0x49   : > { %388 = vrsqrt.f32 %v190_v24 }
  0x52   : > { %204 = sbr.rel (!%p504_p6) target bundleno = 97 (0x61), region = 66 }
  0x53   : > { %v389_v25 = vpop.eup %388 }
  0x54   : > { %v192_v26 = vmul.f32 %v389_v25, %v178_v12  ;;  %v193_v27 = vmul.f32 %v389_v25, %v179_v13 }
  0x56   : > { %v194_v28 = vmax.f32 %v192_v26, 0.0  ;;  %v195_v29 = vmax.f32 %v193_v27, 0.0 }
  0x58   : > { %196 = vst [vmem:[%s166_s5] sm:$0xff] %v194_v28  ;;  %197 = vst [vmem:[%s166_s5 + $0x8] sm:$0xff] %v195_v29 }
  0x5f   : > { %v238_v30 = vld [vmem:[%s166_s5] sm:$0xff]  ;;  %v240_v31 = vld [vmem:[%s166_s5 + $0x8] sm:$0xff] }
  0x60   : > { %239 = vst [vmem:[%s208_s20] sm:$0xff] %v238_v30  ;;  %241 = vst [vmem:[%s208_s20 + $0x10] sm:$0xff] %v240_v31 }
  0x61 PF: > { %s11_s12 = sadd.s32 1, %s444_s12   ;;  %s559_s6 = smov %s424_s7 }
  0x62   : > { %p8_p12 = scmp.ge.s32.totalorder %s11_s12, 6   ;;  %s560_s7 = smov %s512_s21 }
  0x63   : > { %s561_s8 = smov %s436_s10  ;;  %s562_s9 = smov %s440_s11 }
  0x64   : > { %s563_s10 = smov %s566_s13  ;;  %s564_s11 = smov %s570_s14 }
  0x65   :  { %10 = sbr.rel (!%p8_p12) target bundleno = 4 (0x4), region = 135 }

// kernel: generator_forward.25
= control target key start
LH: loop header
LB: loop body
LE: loop exit
PB: predicated region body
PF: predicated region fallthrough
CT: control target
= control target key end

     0   :  { %s1030_s12 = smov 0   ;;  %s1032_s13 = smov 0   ;;  %s1164_s0 = inlined_call_operand.vmem [shape: bf16[32,2304], index: 0, kind: input, shape index: {}]   ;;  %s1165_s1 = inlined_call_operand.vmem [shape: bf16[2304,256], index: 1, kind: input, shape index: {}]   ;;  %s1166_s2 = inlined_call_operand.vmem [shape: f32[1,256], index: 2, kind: input, shape index: {}]   ;;  %s1167_s3 = inlined_call_operand.vmem [shape: f32[32,256], index: 3, kind: output, shape index: {}]  }
   0x1   :  { %s1034_s14 = smov 0   ;;  %s1036_s15 = smov 0  }
   0x2   :  { %s1038_s16 = smov 0  }
   0x3 LB: > { %s25_s17 = sadd.s32 1, %s1003_s15  ;;  %p48_p1 = scmp.ne.s32.totalorder %s995_s13, %s991_s12  ;;  %s1007_s16 = sphi %s1038_s16, %s13_s16   ;;  %s1003_s15 = sphi %s1036_s15, %s1171_s15   ;;  %s999_s14 = sphi %s1034_s14, %s1170_s14   ;;  %s995_s13 = sphi %s1032_s13, %s1169_s13   ;;  %s991_s12 = sphi %s1030_s12, %s1168_s12  }
   0x4   : > { %p26_p0 = scmp.ge.s32.totalorder %s25_s17, 9  ;;  %p49_p2 = scmp.eq.s32.totalorder %s1007_s16, 0 }
   0x5   : > { %s41_s19 = sadd.s32 1, %s995_s13  ;;  %p789_p5 = scmp.ge.s32.totalorder %s1007_s16, 9 }
   0x6   : > { %s1173_s17 = smov (%p26_p0, %s25_s17), 0  ;;  %p50_p3 = por %p49_p2, %p48_p1 }
   0x7   : > { %s37_s18 = ssub.s32 %s1003_s15, %s1173_s17  ;;  %164 = sbr.rel (%p789_p5) target bundleno = 21 (0x15), region = 20 }
   0x8   : > { %p39_p4 = scmp.eq.s32.totalorder %s37_s18, 0 }
   0xa   : > { %s1065_s20 = scalar_select %p39_p4, %s995_s13, %s41_s19  }
   0xe   : > { %167 = sbr.rel (!%p50_p3) target bundleno = 21 (0x15), region = 24  ;;  %s169_s21 = sand.u32 (%p50_p3), 1, %s995_s13  }
   0xf   : > { %s840_s22 = sshll.u32 (%p50_p3), %s1003_s15, 3  ;;  %s790_s23 = sshll.u32 (%p50_p3), %s169_s21, 5 }
  0x10   : > { %s177_s26 = scalar_lea.vmem (%p50_p3), %s1164_s0, %s840_s22  ;;  %s171_s27 = scalar_lea.vmem (%p50_p3), [#allocation3], %s790_s23 }
  0x11   : > { %v211_v0 = vld [vmem:[%s177_s26] sm:$0xff] (%p50_p3)  ;;  %v213_v1 = vld [vmem:[%s177_s26 + $0x48] sm:$0xff] (%p50_p3)  ;;  %v215_v2 = vld [vmem:[%s177_s26 + $0x90] sm:$0xff] (%p50_p3) }
  0x12   : > { %212 = vst [vmem:[%s171_s27] sm:$0xff] (%p50_p3), %v211_v0  ;;  %214 = vst [vmem:[%s171_s27 + $0x8] sm:$0xff] (%p50_p3), %v213_v1  ;;  %v217_v3 = vld [vmem:[%s177_s26 + $0xd8] sm:$0xff] (%p50_p3) }
  0x13   : > { %216 = vst [vmem:[%s171_s27 + $0x10] sm:$0xff] (%p50_p3), %v215_v2  ;;  %218 = vst [vmem:[%s171_s27 + $0x18] sm:$0xff] (%p50_p3), %v217_v3 }
  0x15 PF: > { %p793_p6 = scmp.ge.s32.totalorder %s1007_s16, 1  ;;  %p238_p7 = scmp.lt.s32.totalorder %s1007_s16, 10 }
  0x17   : > { %p239_p8 = pnand %p793_p6, %p238_p7 }
  0x18   : > { %s245_s28 = sand.u32 (!%p239_p8), 1, %s991_s12   ;;  %s795_s29 = sshll.u32 (!%p239_p8), %s999_s14, 5 }
  0x19   : > { %242 = sbr.rel (%p239_p8) target bundleno = 333 (0x14d), region = 66  ;;  %s794_s30 = sshll.u32 (!%p239_p8), %s245_s28, 5 }
  0x1a   : > { %p291_p9 = scmp.lt.s32.totalorder (!%p239_p8), %s795_s29, 287  ;;  %s1082_s8 = scalar_lea.vmem (!%p239_p8), [#allocation3], %s794_s30 }
  0x1b   : > { %p798_p10 = scmp.ne.s32.totalorder (!%p239_p8), %s999_s14, 0 }
  0x20   : > { %s1175_s29 = smov (!%p291_p9, %s795_s29), 287  ;;  %321 = sbr.rel (%p798_p10) target bundleno = 39 (0x27), region = 74 }
  0x21   : > { %s841_s4 = sshll.u32 %s1175_s29, 3  ;;  %v1009_v4 = vmov (!%p798_p10), 0.0  }
  0x22   : > { %s1080_s7 = scalar_lea.vmem %s1165_s1, %s841_s4  ;;  %322 = vst [vmem:[#allocation2] sm:$0xff] (!%p798_p10), %v1009_v4  ;;  %323 = vst [vmem:[#allocation2 + $0x8] sm:$0xff] (!%p798_p10), %v1009_v4 }
  0x23   : > { %324 = vst [vmem:[#allocation2 + $0x10] sm:$0xff] (!%p798_p10), %v1009_v4  ;;  %325 = vst [vmem:[#allocation2 + $0x18] sm:$0xff] (!%p798_p10), %v1009_v4 }
  0x24   : > { %326 = vst [vmem:[#allocation2 + $0x20] sm:$0xff] (!%p798_p10), %v1009_v4  ;;  %327 = vst [vmem:[#allocation2 + $0x28] sm:$0xff] (!%p798_p10), %v1009_v4 }
  0x25   : > { %328 = vst [vmem:[#allocation2 + $0x30] sm:$0xff] (!%p798_p10), %v1009_v4  ;;  %329 = vst [vmem:[#allocation2 + $0x38] sm:$0xff] (!%p798_p10), %v1009_v4 }
  0x27 PF: > { %v915_v5 = vld [vmem:[%s1080_s7 + $0x4] ss:$8 sps:$4 sm:$0xff]   ;;  %v917_v6 = vld [vmem:[%s1080_s7] ss:$8 sps:$4 sm:$0xff]   ;;  %v918_v7 = vld [vmem:[%s1080_s7 + $0x14] ss:$8 sps:$4 sm:$0xff]  }
  0x28   : > { %554 = vmatprep.subr.bf16.mxu0 %v915_v5  ;;  %842 = vmatprep.subr.bf16.mxu1 %v915_v5  ;;  %v920_v8 = vld [vmem:[%s1080_s7 + $0x10] ss:$8 sps:$4 sm:$0xff]   ;;  %v921_v9 = vld [vmem:[%s1080_s7 + $0x24] ss:$8 sps:$4 sm:$0xff]   ;;  %v923_v10 = vld [vmem:[%s1080_s7 + $0x20] ss:$8 sps:$4 sm:$0xff]  }
  0x29   : > { %555 = vmatpush1.bf16.msra.mxu0 %v917_v6  ;;  %858 = vmatpush1.bf16.msra.mxu1 %v917_v6  ;;  %v924_v11 = vld [vmem:[%s1080_s7 + $0x34] ss:$8 sps:$4 sm:$0xff]   ;;  %v926_v12 = vld [vmem:[%s1080_s7 + $0x30] ss:$8 sps:$4 sm:$0xff]   ;;  %v927_v13 = vld [vmem:[%s1080_s7 + $0x44] ss:$8 sps:$4 sm:$0xff]  }
  0x2a   : > { %556 = vmatprep.subr.bf16.mxu0 %v918_v7  ;;  %843 = vmatprep.subr.bf16.mxu1 %v918_v7  ;;  %v929_v14 = vld [vmem:[%s1080_s7 + $0x40] ss:$8 sps:$4 sm:$0xff]   ;;  %v930_v15 = vld [vmem:[%s1080_s7 + $0x54] ss:$8 sps:$4 sm:$0xff]   ;;  %v932_v16 = vld [vmem:[%s1080_s7 + $0x50] ss:$8 sps:$4 sm:$0xff]  }
  0x2b   : > { %v933_v17 = vld [vmem:[%s1080_s7 + $0x64] ss:$8 sps:$4 sm:$0xff]   ;;  %v935_v19 = vld [vmem:[%s1080_s7 + $0x60] ss:$8 sps:$4 sm:$0xff]   ;;  %v968_v20 = vld [vmem:[%s1082_s8 + $0x14] ss:$8 sps:$4 sm:$0xff]  }
  0x2c   : > { %v965_v18 = vld [vmem:[%s1082_s8 + $0x4] ss:$8 sps:$4 sm:$0xff]   ;;  %v936_v21 = vld [vmem:[%s1080_s7 + $0x74] ss:$8 sps:$4 sm:$0xff]   ;;  %596 = vmatprep.mubr.bf16.mxu1 %v968_v20  ;;  %v938_v22 = vld [vmem:[%s1080_s7 + $0x70] ss:$8 sps:$4 sm:$0xff]  }
  0x2d   : > { %557 = vmatpush1.bf16.msra.mxu0 %v920_v8  ;;  %859 = vmatpush1.bf16.msra.mxu1 %v920_v8  ;;  %v939_v23 = vld [vmem:[%s1080_s7 + $0x84] ss:$8 sps:$4 sm:$0xff]   ;;  %v941_v24 = vld [vmem:[%s1080_s7 + $0x80] ss:$8 sps:$4 sm:$0xff]   ;;  %v942_v25 = vld [vmem:[%s1080_s7 + $0x94] ss:$8 sps:$4 sm:$0xff]  }
  0x2e   : > { %558 = vmatprep.subr.bf16.mxu0 %v921_v9  ;;  %844 = vmatprep.subr.bf16.mxu1 %v921_v9  ;;  %v944_v26 = vld [vmem:[%s1080_s7 + $0x90] ss:$8 sps:$4 sm:$0xff]   ;;  %v945_v27 = vld [vmem:[%s1080_s7 + $0xa4] ss:$8 sps:$4 sm:$0xff]   ;;  %v947_v28 = vld [vmem:[%s1080_s7 + $0xa0] ss:$8 sps:$4 sm:$0xff]  }
  0x2f   : > { %586 = vmatprep.mubr.bf16.mxu0 %v965_v18  ;;  %v948_v29 = vld [vmem:[%s1080_s7 + $0xb4] ss:$8 sps:$4 sm:$0xff]   ;;  %v950_v30 = vld [vmem:[%s1080_s7 + $0xb0] ss:$8 sps:$4 sm:$0xff]   ;;  %v951_v31 = vld [vmem:[%s1080_s7 + $0xc4] ss:$8 sps:$4 sm:$0xff]  }
  0x30   : > { %v953_v32 = vld [vmem:[%s1080_s7 + $0xc0] ss:$8 sps:$4 sm:$0xff]   ;;  %v954_v33 = vld [vmem:[%s1080_s7 + $0xd4] ss:$8 sps:$4 sm:$0xff]   ;;  %v956_v34 = vld [vmem:[%s1080_s7 + $0xd0] ss:$8 sps:$4 sm:$0xff]  }
  0x31   : > { %559 = vmatpush1.bf16.msra.mxu0 %v923_v10  ;;  %860 = vmatpush1.bf16.msra.mxu1 %v923_v10  ;;  %v957_v35 = vld [vmem:[%s1080_s7 + $0xe4] ss:$8 sps:$4 sm:$0xff]   ;;  %v959_v36 = vld [vmem:[%s1080_s7 + $0xe0] ss:$8 sps:$4 sm:$0xff]   ;;  %v960_v37 = vld [vmem:[%s1080_s7 + $0xf4] ss:$8 sps:$4 sm:$0xff]  }
  0x32   : > { %560 = vmatprep.subr.bf16.mxu0 %v924_v11  ;;  %845 = vmatprep.subr.bf16.mxu1 %v924_v11  ;;  %v962_v38 = vld [vmem:[%s1080_s7 + $0xf0] ss:$8 sps:$4 sm:$0xff]   ;;  %v963_v39 = vld [vmem:[%s1082_s8] ss:$8 sps:$4 sm:$0xff]   ;;  %p835_p11 = scmp.ne.s32.totalorder %s999_s14, 8 }
  0x33   : > { %v966_v40 = vld [vmem:[%s1082_s8 + $0x10] ss:$8 sps:$4 sm:$0xff]   ;;  %v330_v41 = vld [vmem:[#allocation2] sm:$0xff]  ;;  %v331_v43 = vld [vmem:[#allocation2 + $0x8] sm:$0xff]  ;;  %v637_v1 = vlaneseq (!%p835_p11) }
  0x34   : > { %v334_v42 = vld [vmem:[#allocation2 + $0x20] sm:$0xff]  ;;  %v335_v44 = vld [vmem:[#allocation2 + $0x28] sm:$0xff]  ;;  %v332_v47 = vld [vmem:[#allocation2 + $0x10] sm:$0xff] }
  0x35   : > { %561 = vmatpush1.bf16.msra.mxu0 %v926_v12  ;;  %861 = vmatpush1.bf16.msra.mxu1 %v926_v12  ;;  %v336_v48 = vld [vmem:[#allocation2 + $0x30] sm:$0xff]  ;;  %v333_v53 = vld [vmem:[#allocation2 + $0x18] sm:$0xff]  ;;  %v638_v2 = vshrl.u32 (!%p835_p11), %v637_v1, 7  ;;  %v635_v3 = vld [vmem:[%s1166_s2] sm:$0x3] (!%p835_p11) }
  0x36   : > { %562 = vmatprep.subr.bf16.mxu0 %v927_v13  ;;  %846 = vmatprep.subr.bf16.mxu1 %v927_v13  ;;  %v337_v54 = vld [vmem:[#allocation2 + $0x38] sm:$0xff] }
  0x37   : > { %v639_v5 = vsub.s32 (!%p835_p11), 0, %v638_v2  ;;  %v643_v7 = vsub.s32 (!%p835_p11), 1, %v638_v2 }
  0x39   : > { %563 = vmatpush1.bf16.msra.mxu0 %v929_v14  ;;  %862 = vmatpush1.bf16.msra.mxu1 %v929_v14  ;;  %v640_v11 = vrot.slane (!%p835_p11), %v635_v3, %v639_v5  ;;  %v644_v12 = vrot.slane (!%p835_p11), %v635_v3, %v643_v7 }
  0x3a   : > { %564 = vmatprep.subr.bf16.mxu0 %v930_v15  ;;  %847 = vmatprep.subr.bf16.mxu1 %v930_v15 }
  0x3d   : > { %565 = vmatpush1.bf16.msra.mxu0 %v932_v16  ;;  %863 = vmatpush1.bf16.msra.mxu1 %v932_v16 }
  0x3e   : > { %566 = vmatprep.subr.bf16.mxu0 %v933_v17  ;;  %848 = vmatprep.subr.bf16.mxu1 %v933_v17 }
  0x41   : > { %567 = vmatpush1.bf16.msra.mxu0 %v935_v19  ;;  %864 = vmatpush1.bf16.msra.mxu1 %v935_v19 }
  0x42   : > { %568 = vmatprep.subr.bf16.mxu0 %v936_v21  ;;  %849 = vmatprep.subr.bf16.mxu1 %v936_v21 }
  0x45   : > { %569 = vmatpush1.bf16.msra.mxu0 %v938_v22  ;;  %865 = vmatpush1.bf16.msra.mxu1 %v938_v22 }
  0x46   : > { %570 = vmatprep.subr.bf16.mxu0 %v939_v23  ;;  %850 = vmatprep.subr.bf16.mxu1 %v939_v23 }
  0x49   : > { %571 = vmatpush1.bf16.msra.mxu0 %v941_v24  ;;  %866 = vmatpush1.bf16.msra.mxu1 %v941_v24 }
  0x4a   : > { %572 = vmatprep.subr.bf16.mxu0 %v942_v25  ;;  %851 = vmatprep.subr.bf16.mxu1 %v942_v25 }
  0x4d   : > { %573 = vmatpush1.bf16.msra.mxu0 %v944_v26  ;;  %867 = vmatpush1.bf16.msra.mxu1 %v944_v26 }
  0x4e   : > { %574 = vmatprep.subr.bf16.mxu0 %v945_v27  ;;  %852 = vmatprep.subr.bf16.mxu1 %v945_v27 }
  0x51   : > { %575 = vmatpush1.bf16.msra.mxu0 %v947_v28  ;;  %868 = vmatpush1.bf16.msra.mxu1 %v947_v28 }
  0x52   : > { %576 = vmatprep.subr.bf16.mxu0 %v948_v29  ;;  %853 = vmatprep.subr.bf16.mxu1 %v948_v29 }
  0x55   : > { %577 = vmatpush1.bf16.msra.mxu0 %v950_v30  ;;  %869 = vmatpush1.bf16.msra.mxu1 %v950_v30 }
  0x56   : > { %578 = vmatprep.subr.bf16.mxu0 %v951_v31  ;;  %854 = vmatprep.subr.bf16.mxu1 %v951_v31 }
  0x59   : > { %579 = vmatpush1.bf16.msra.mxu0 %v953_v32  ;;  %870 = vmatpush1.bf16.msra.mxu1 %v953_v32 }
  0x5a   : > { %580 = vmatprep.subr.bf16.mxu0 %v954_v33  ;;  %855 = vmatprep.subr.bf16.mxu1 %v954_v33 }
  0x5d   : > { %581 = vmatpush1.bf16.msra.mxu0 %v956_v34  ;;  %871 = vmatpush1.bf16.msra.mxu1 %v956_v34 }
  0x5e   : > { %582 = vmatprep.subr.bf16.mxu0 %v957_v35  ;;  %856 = vmatprep.subr.bf16.mxu1 %v957_v35 }
  0x61   : > { %583 = vmatpush1.bf16.msra.mxu0 %v959_v36  ;;  %872 = vmatpush1.bf16.msra.mxu1 %v959_v36 }
  0x62   : > { %584 = vmatprep.subr.bf16.mxu0 %v960_v37  ;;  %857 = vmatprep.subr.bf16.mxu1 %v960_v37 }
  0x65   : > { %585 = vmatpush1.bf16.msra.mxu0 %v962_v38  ;;  %873 = vmatpush1.bf16.msra.mxu1 %v962_v38 }
  0x68   : > { %587 = vmatmul.mubr.bf16.vlgmr.msra.gmra.mrb[0].mxu0 %v963_v39  ;;  %597 = vmatmul.mubr.bf16.vlgmr.msra.gmra.mrb[0].mxu1 %v966_v40 }
 0x13b   : > { %v588_v45 = vpop.f32.mrb[0].mxu0  ;;  %v598_v46 = vpop.f32.mrb[0].mxu1  ;;  %626 = sbr.rel (%p835_p11) target bundleno = 333 (0x14d), region = 78 }
 0x13c   : > { %v607_v49 = vadd.f32 %v588_v45, %v330_v41  ;;  %v611_v50 = vadd.f32 %v598_v46, %v334_v42  ;;  %v590_v51 = vpop.f32.mrb[1].mxu0  ;;  %v600_v52 = vpop.f32.mrb[1].mxu1 }
 0x13d   : > { %v608_v55 = vadd.f32 %v590_v51, %v331_v43  ;;  %v612_v56 = vadd.f32 %v600_v52, %v335_v44  ;;  %v592_v57 = vpop.f32.mrb[2].mxu0  ;;  %v602_v58 = vpop.f32.mrb[2].mxu1 }
 0x13e   : > { %615 = vst [vmem:[#allocation2] sm:$0xff] %v607_v49  ;;  %619 = vst [vmem:[#allocation2 + $0x20] sm:$0xff] %v611_v50  ;;  %v609_v59 = vadd.f32 %v592_v57, %v332_v47  ;;  %v613_v60 = vadd.f32 %v602_v58, %v336_v48  ;;  %v594_v61 = vpop.f32.mrb[3].mxu0  ;;  %v604_v62 = vpop.f32.mrb[3].mxu1 }
 0x13f   : > { %616 = vst [vmem:[#allocation2 + $0x8] sm:$0xff] %v608_v55  ;;  %620 = vst [vmem:[#allocation2 + $0x28] sm:$0xff] %v612_v56  ;;  %v610_v63 = vadd.f32 %v594_v61, %v333_v53  ;;  %v614_v0 = vadd.f32 %v604_v62, %v337_v54 }
 0x140   : > { %617 = vst [vmem:[#allocation2 + $0x10] sm:$0xff] %v609_v59  ;;  %621 = vst [vmem:[#allocation2 + $0x30] sm:$0xff] %v613_v60 }
 0x141   : > { %618 = vst [vmem:[#allocation2 + $0x18] sm:$0xff] %v610_v63  ;;  %622 = vst [vmem:[#allocation2 + $0x38] sm:$0xff] %v614_v0 }
 0x145   : > { %v627_v4 = vld [vmem:[#allocation2] sm:$0xff] }
 0x146   : > { %v628_v6 = vld [vmem:[#allocation2 + $0x8] sm:$0xff]  ;;  %v631_v10 = vld [vmem:[#allocation2 + $0x20] sm:$0xff]  ;;  %v647_v16 = vadd.f32 %v640_v11, %v627_v4 }
 0x147   : > { %v629_v8 = vld [vmem:[#allocation2 + $0x10] sm:$0xff]  ;;  %v632_v13 = vld [vmem:[#allocation2 + $0x28] sm:$0xff]  ;;  %v648_v17 = vadd.f32 %v644_v12, %v628_v6  ;;  %v651_v20 = vadd.f32 %v640_v11, %v631_v10 }
 0x148   : > { %v630_v9 = vld [vmem:[#allocation2 + $0x18] sm:$0xff]  ;;  %v633_v14 = vld [vmem:[#allocation2 + $0x30] sm:$0xff]  ;;  %v649_v18 = vadd.f32 %v640_v11, %v629_v8  ;;  %v652_v21 = vadd.f32 %v644_v12, %v632_v13  ;;  %655 = vst [vmem:[%s1167_s3] sm:$0xff] %v647_v16 }
 0x149   : > { %v634_v15 = vld [vmem:[#allocation2 + $0x38] sm:$0xff]  ;;  %v650_v19 = vadd.f32 %v644_v12, %v630_v9  ;;  %v653_v22 = vadd.f32 %v640_v11, %v633_v14  ;;  %656 = vst [vmem:[%s1167_s3 + $0x8] sm:$0xff] %v648_v17  ;;  %659 = vst [vmem:[%s1167_s3 + $0x20] sm:$0xff] %v651_v20 }
 0x14a   : > { %v654_v23 = vadd.f32 %v644_v12, %v634_v15  ;;  %657 = vst [vmem:[%s1167_s3 + $0x10] sm:$0xff] %v649_v18  ;;  %660 = vst [vmem:[%s1167_s3 + $0x28] sm:$0xff] %v652_v21 }
 0x14b   : > { %658 = vst [vmem:[%s1167_s3 + $0x18] sm:$0xff] %v650_v19  ;;  %661 = vst [vmem:[%s1167_s3 + $0x30] sm:$0xff] %v653_v22 }
 0x14c   : > { %662 = vst [vmem:[%s1167_s3 + $0x38] sm:$0xff] %v654_v23 }
 0x14d PF: > { %s13_s16 = sadd.s32 1, %s1007_s16   ;;  %s1168_s12 = smov %s995_s13 }
 0x14e   : > { %p10_p12 = scmp.ge.s32.totalorder %s13_s16, 11   ;;  %s1169_s13 = smov %s1065_s20 }
 0x14f   : > { %s1170_s14 = smov %s1003_s15  ;;  %s1171_s15 = smov %s1173_s17 }
 0x150   :  { %12 = sbr.rel (!%p10_p12) target bundleno = 3 (0x3), region = 119 }

// kernel: generator_forward.28
= control target key start
LH: loop header
LB: loop body
LE: loop exit
PB: predicated region body
PF: predicated region fallthrough
CT: control target
= control target key end

     0   :  { %s576_s9 = smov 0   ;;  %s578_s10 = smov 0   ;;  %s691_s0 = inlined_call_operand.vmem [shape: f32[2,16,256], index: 0, kind: input, shape index: {}]   ;;  %s692_s1 = inlined_call_operand.vmem [shape: f32[2,16,256], index: 1, kind: input, shape index: {}]   ;;  %s693_s2 = inlined_call_operand.vmem [shape: f32[2,16,256], index: 2, kind: output, shape index: {}]  }
   0x1   :  { %s580_s11 = smov 0   ;;  %s582_s12 = smov 0  }
   0x2   :  { %s584_s13 = smov 0   ;;  %s586_s14 = smov 0  }
   0x3   :  { %s588_s15 = smov 0  }
   0x4 LB: > { %s21_s16 = sadd.s32 1, %s551_s13  ;;  %s24_s17 = sadd.s32 1, %s555_s14  ;;  %s559_s15 = sphi %s588_s15, %s12_s15   ;;  %s555_s14 = sphi %s586_s14, %s701_s14   ;;  %s551_s13 = sphi %s584_s13, %s700_s13   ;;  %s547_s12 = sphi %s582_s12, %s699_s12   ;;  %s543_s11 = sphi %s580_s11, %s698_s11   ;;  %s539_s10 = sphi %s578_s10, %s697_s10   ;;  %s535_s9 = sphi %s576_s9, %s696_s9  }
   0x5   : > { %p22_p0 = scmp.ge.s32.totalorder %s21_s16, 2  ;;  %s428_s18 = sadd.s32 4294967295, %s559_s15  }
   0x6   : > { %p40_p1 = scmp.ne.s32.totalorder %s539_s10, %s535_s9  ;;  %p41_p2 = scmp.eq.s32.totalorder %s559_s15, 0 }
   0x7   : > { %s703_s16 = smov (%p22_p0, %s21_s16), 0  ;;  %s705_s17 = smov (!%p22_p0, %s24_s17), %s555_s14 }
   0x8   : > { %p26_p3 = scmp.ge.s32.totalorder %s705_s17, 2  ;;  %p100_p4 = scmp.eq.s32.totalorder %s428_s18, 3 }
   0x9   : > { %s29_s19 = ssub.s32 %s551_s13, %s703_s16  ;;  %p622_p5 = por %p41_p2, %p40_p1 }
   0xa   : > { %s707_s17 = smov (%p26_p3, %s705_s17), 0  ;;  %p628_p6 = por %p100_p4, %p40_p1 }
   0xb   : > { %s28_s22 = ssub.s32 %s555_s14, %s707_s17  ;;  %s33_s24 = sadd.s32 1, %s539_s10 }
   0xc   : > { %s30_s23 = sor.u32 %s29_s19, %s28_s22  ;;  %p431_p8 = scmp.ge.s32.totalorder %s559_s15, 4 }
   0xd   : > { %p31_p7 = scmp.eq.s32.totalorder %s30_s23, 0 }
   0xe   : > { %122 = sbr.rel (%p431_p8) target bundleno = 35 (0x23), region = 16 }
   0xf   : > { %s636_s25 = scalar_select %p31_p7, %s539_s10, %s33_s24  }
  0x15   : > { %125 = sbr.rel (!%p622_p5) target bundleno = 28 (0x1c), region = 20  ;;  %s127_s26 = sand.u32 (%p622_p5), 1, %s539_s10  }
  0x16   : > { %s433_s27 = sshll.u32 (%p622_p5), %s555_s14, 2  ;;  %s432_s28 = sshll.u32 (%p622_p5), %s127_s26, 4 }
  0x17   : > { %s131_s29 = sadd.s32 (%p622_p5), %s551_s13, %s433_s27  ;;  %s129_s6 = scalar_lea.vmem (%p622_p5), [#allocation2], %s432_s28 }
  0x18   : > { %s434_s30 = sshll.u32 (%p622_p5), %s131_s29, 3 }
  0x19   : > { %s133_s5 = scalar_lea.vmem (%p622_p5), %s691_s0, %s434_s30 }
  0x1a   : > { %v163_v0 = vld [vmem:[%s133_s5] sm:$0xff] (%p622_p5)  ;;  %v165_v1 = vld [vmem:[%s133_s5 + $0x10] sm:$0xff] (%p622_p5) }
  0x1b   : > { %164 = vst [vmem:[%s129_s6] sm:$0xff] (%p622_p5), %v163_v0  ;;  %166 = vst [vmem:[%s129_s6 + $0x8] sm:$0xff] (%p622_p5), %v165_v1 }
  0x1c PF: > { %172 = sbr.rel (!%p622_p5) target bundleno = 35 (0x23), region = 58  ;;  %s174_s7 = sand.u32 (%p622_p5), 1, %s539_s10  }
  0x1d   : > { %s436_s8 = sshll.u32 (%p622_p5), %s555_s14, 2  ;;  %s435_s18 = sshll.u32 (%p622_p5), %s174_s7, 4 }
  0x1e   : > { %s178_s19 = sadd.s32 (%p622_p5), %s551_s13, %s436_s8  ;;  %s176_s27 = scalar_lea.vmem (%p622_p5), [#allocation3], %s435_s18 }
  0x1f   : > { %s437_s22 = sshll.u32 (%p622_p5), %s178_s19, 3 }
  0x20   : > { %s180_s26 = scalar_lea.vmem (%p622_p5), %s692_s1, %s437_s22 }
  0x21   : > { %v210_v2 = vld [vmem:[%s180_s26] sm:$0xff] (%p622_p5)  ;;  %v212_v3 = vld [vmem:[%s180_s26 + $0x10] sm:$0xff] (%p622_p5) }
  0x22   : > { %211 = vst [vmem:[%s176_s27] sm:$0xff] (%p622_p5), %v210_v2  ;;  %213 = vst [vmem:[%s176_s27 + $0x8] sm:$0xff] (%p622_p5), %v212_v3 }
  0x23 PF: > { %p438_p9 = scmp.ge.s32.totalorder %s559_s15, 1  ;;  %p218_p10 = scmp.lt.s32.totalorder %s559_s15, 5 }
  0x25   : > { %p219_p11 = pnand %p438_p9, %p218_p10 }
  0x26   : > { %s225_s20 = sand.u32 (!%p219_p11), 1, %s535_s9  }
  0x27   : > { %222 = sbr.rel (%p219_p11) target bundleno = 104 (0x68), region = 96  ;;  %s658_s28 = sshll.u32 (!%p219_p11), %s225_s20, 4 }
  0x28   : > { %s227_s29 = scalar_lea.vmem (!%p219_p11), [#allocation2], %s658_s28  ;;  %s234_s9 = scalar_lea.vmem (!%p219_p11), [#allocation3], %s658_s28 }
  0x29   : > { %v256_v4 = vld [vmem:[%s227_s29] sm:$0xff] (!%p219_p11)  ;;  %v257_v5 = vld [vmem:[%s227_s29 + $0x8] sm:$0xff] (!%p219_p11)  ;;  %s255_s30 = scalar_lea.vmem (!%p219_p11), [#allocation4], %s658_s28 }
  0x2a   : > { %v258_v6 = vadd.f32 (!%p219_p11), %v257_v5, %v256_v4  ;;  %v283_v28 = vld [vmem:[%s234_s9] sm:$0xff] (!%p219_p11)  ;;  %v284_v29 = vld [vmem:[%s234_s9 + $0x8] sm:$0xff] (!%p219_p11) }
  0x2c   : > { %v259_v7 = vrot.slane (!%p219_p11), %v258_v6, 4 }
  0x2e   : > { %v260_v8 = vadd.f32 %v259_v7, %v258_v6  ;;  %s443_s3 = sshll.u32 (%p628_p6), %s547_s12, 2 }
  0x2f   : > { %s297_s4 = sadd.s32 (%p628_p6), %s543_s11, %s443_s3 }
  0x30   : > { %v261_v9 = vrot.slane %v260_v8, 2  ;;  %s444_s5 = sshll.u32 (%p628_p6), %s297_s4, 3 }
  0x31   : > { %s299_s8 = scalar_lea.vmem (%p628_p6), %s693_s2, %s444_s5 }
  0x32   : > { %v262_v10 = vadd.f32 %v261_v9, %v260_v8 }
  0x34   : > { %v263_v11 = vrot.slane %v262_v10, 1 }
  0x36   : > { %v264_v12 = vadd.f32 %v263_v11, %v262_v10 }
  0x38   : > { %v266_v13 = vmul.f32 0.0625, %v264_v12 }
  0x3a   : > { %v267_v14 = vsub.f32 %v256_v4, %v266_v13  ;;  %v268_v15 = vsub.f32 %v257_v5, %v266_v13 }
  0x3c   : > { %v269_v16 = vmul.f32 %v267_v14, %v267_v14  ;;  %v270_v17 = vmul.f32 %v268_v15, %v268_v15 }
  0x3e   : > { %v271_v18 = vadd.f32 %v270_v17, %v269_v16 }
  0x40   : > { %v272_v19 = vrot.slane %v271_v18, 4 }
  0x42   : > { %v273_v20 = vadd.f32 %v272_v19, %v271_v18 }
  0x44   : > { %v274_v21 = vrot.slane %v273_v20, 2 }
  0x46   : > { %v275_v22 = vadd.f32 %v274_v21, %v273_v20 }
  0x48   : > { %v276_v23 = vrot.slane %v275_v22, 1 }
  0x4a   : > { %v277_v24 = vadd.f32 %v276_v23, %v275_v22 }
  0x4c   : > { %v278_v25 = vmul.f32 0.0625, %v277_v24 }
  0x4e   : > { %v279_v26 = vadd.f32 1e-05, %v278_v25 }
  0x50   : > { %503 = vrsqrt.f32 %v279_v26 }
  0x59   : > { %295 = sbr.rel (!%p628_p6) target bundleno = 104 (0x68), region = 108 }
  0x5a   : > { %v504_v27 = vpop.eup %503 }
  0x5b   : > { %v281_v30 = vmul.f32 %v504_v27, %v267_v14  ;;  %v282_v31 = vmul.f32 %v504_v27, %v268_v15 }
  0x5d   : > { %v285_v32 = vadd.f32 %v283_v28, %v281_v30  ;;  %v286_v33 = vadd.f32 %v284_v29, %v282_v31 }
  0x5f   : > { %287 = vst [vmem:[%s255_s30] sm:$0xff] %v285_v32  ;;  %288 = vst [vmem:[%s255_s30 + $0x8] sm:$0xff] %v286_v33 }
  0x66   : > { %v329_v34 = vld [vmem:[%s255_s30] sm:$0xff]  ;;  %v331_v35 = vld [vmem:[%s255_s30 + $0x8] sm:$0xff] }
  0x67   : > { %330 = vst [vmem:[%s299_s8] sm:$0xff] %v329_v34  ;;  %332 = vst [vmem:[%s299_s8 + $0x10] sm:$0xff] %v331_v35 }
  0x68 PF: > { %s12_s15 = sadd.s32 1, %s559_s15   ;;  %s696_s9 = smov %s539_s10 }
  0x69   : > { %p9_p12 = scmp.ge.s32.totalorder %s12_s15, 6   ;;  %s697_s10 = smov %s636_s25 }
  0x6a   : > { %s698_s11 = smov %s551_s13  ;;  %s699_s12 = smov %s555_s14 }
  0x6b   : > { %s700_s13 = smov %s703_s16  ;;  %s701_s14 = smov %s707_s17 }
  0x6c   :  { %11 = sbr.rel (!%p9_p12) target bundleno = 4 (0x4), region = 185 }

// kernel: tile.13
= control target key start
LH: loop header
LB: loop body
LE: loop exit
PB: predicated region body
PF: predicated region fallthrough
CT: control target
= control target key end

     0   :  { %s22_s0 = inlined_call_operand.vmem [shape: f32[128], index: 0, kind: input, shape index: {}]   ;;  %s23_s1 = inlined_call_operand.vmem [shape: f32[4,128], index: 1, kind: output, shape index: {}]  }
   0x1   :  { %v4_v0 = vld [vmem:[%s22_s0] ss:$0 sm:$0xff] }
   0x2   :  { %5 = vst [vmem:[%s23_s1] sm:$0xf] %v4_v0 }

// kernel: generator_forward.33
= control target key start
LH: loop header
LB: loop body
LE: loop exit
PB: predicated region body
PF: predicated region fallthrough
CT: control target
= control target key end

     0   :  { %s1588_s0 = inlined_call_operand.vmem [shape: bf16[32,1024], index: 0, kind: input, shape index: {}]   ;;  %s1589_s1 = inlined_call_operand.vmem [shape: bf16[1024,512], index: 1, kind: input, shape index: {}]   ;;  %s1590_s2 = inlined_call_operand.vmem [shape: f32[1,512], index: 2, kind: input, shape index: {}]   ;;  %s1591_s3 = inlined_call_operand.vmem [shape: f32[32,512], index: 3, kind: output, shape index: {}]  }
   0x1   :  { %1593 = sst [smem:[#allocation7_spill]] %s1588_s0 }
   0x2   :  { %1594 = sst [smem:[#allocation8_spill]] %s1589_s1 }
   0x3   :  { %s1290_s12 = smov 0   ;;  %s1292_s13 = smov 0  }
   0x4   :  { %s1294_s14 = smov 0   ;;  %s1296_s15 = smov 0  }
   0x5   :  { %s1298_s16 = smov 0   ;;  %s1300_s17 = smov 0  }
   0x6   :  { %s1302_s18 = smov 0   ;;  %s1304_s19 = smov 0  }
   0x7   :  { %s1306_s20 = smov 0   ;;  %s1308_s21 = smov 0  }
   0x8   :  { %s1310_s22 = smov 0  }
   0x9 LB: > { %s943_s23 = sadd.s32 4294967295, %s1267_s22   ;;  %s25_s24 = sadd.s32 1, %s1259_s20  ;;  %s1267_s22 = sphi %s1310_s22, %s13_s22   ;;  %s1263_s21 = sphi %s1308_s21, %s1611_s21   ;;  %s1259_s20 = sphi %s1306_s20, %s1610_s20   ;;  %s1255_s19 = sphi %s1304_s19, %s1609_s19   ;;  %s1251_s18 = sphi %s1302_s18, %s1608_s18   ;;  %s1247_s17 = sphi %s1300_s17, %s1607_s17   ;;  %s1243_s16 = sphi %s1298_s16, %s1606_s16   ;;  %s1239_s15 = sphi %s1296_s15, %s1605_s15   ;;  %s1235_s14 = sphi %s1294_s14, %s1604_s14   ;;  %s1231_s13 = sphi %s1292_s13, %s1603_s13   ;;  %s1227_s12 = sphi %s1290_s12, %s1602_s12  }
   0xa   : > { %p26_p0 = scmp.ge.s32.totalorder %s25_s24, 4  ;;  %s28_s25 = sadd.s32 1, %s1263_s21 }
   0xb   : > { %s41_s26 = sadd.s32 1, %s1247_s17  ;;  %p48_p1 = scmp.ne.s32.totalorder %s1247_s17, %s1243_s16 }
   0xc   : > { %s1613_s24 = smov (%p26_p0, %s25_s24), 0  ;;  %s1615_s25 = smov (!%p26_p0, %s28_s25), %s1263_s21 }
   0xd   : > { %s37_s27 = ssub.s32 %s1259_s20, %s1613_s24  ;;  %p49_p2 = scmp.eq.s32.totalorder %s1267_s22, 0 }
   0xe   : > { %p30_p3 = scmp.ge.s32.totalorder %s1615_s25, 2  ;;  %p39_p4 = scmp.eq.s32.totalorder %s37_s27, 0 }
   0xf   : > { %p1357_p5 = por %p49_p2, %p48_p1  ;;  %s69_s29 = sadd.s32 1, %s1239_s15 }
  0x10   : > { %s1617_s25 = smov (%p30_p3, %s1615_s25), 0  ;;  %p76_p6 = scmp.ne.s32.totalorder %s1239_s15, %s1235_s14 }
  0x11   : > { %1596 = sst [smem:[#allocation6_spill]] %s1617_s25  ;;  %s65_s4 = ssub.s32 %s1263_s21, %s1617_s25 }
  0x12   : > { %s1365_s30 = scalar_select %p39_p4, %s1247_s17, %s41_s26  }
  0x13   : > { %s66_s5 = sor.u32 %s65_s4, %s37_s27  ;;  %p121_p7 = scmp.eq.s32.totalorder %s65_s4, 0 }
  0x14   : > { %p67_p8 = scmp.eq.s32.totalorder %s66_s5, 0  ;;  %p1371_p9 = por %p76_p6, %p49_p2 }
  0x15   : > { %s123_s7 = sadd.s32 1, %s1231_s13  ;;  %p133_p10 = scmp.ne.s32.totalorder %s1231_s13, %s1227_s12 }
  0x16   : > { %s1379_s8 = scalar_select %p67_p8, %s1239_s15, %s69_s29  }
  0x17   : > { %s1382_s9 = scalar_select %p121_p7, %s1231_s13, %s123_s7  }
  0x18   : > { %p134_p11 = scmp.eq.s32.totalorder %s943_s23, 7  ;;  %p946_p13 = scmp.ge.s32.totalorder %s1267_s22, 8 }
  0x1a   : > { %p1384_p12 = por %p134_p11, %p133_p10  ;;  %156 = sbr.rel (%p946_p13) target bundleno = 73 (0x49), region = 16 }
  0x21   : > { %159 = sbr.rel (!%p1357_p5) target bundleno = 47 (0x2f), region = 20  ;;  %s161_s11 = sand.u32 (%p1357_p5), 1, %s1247_s17  }
  0x22   : > { %s1003_s26 = sshll.u32 (%p1357_p5), %s1259_s20, 3  ;;  %s947_s27 = sshll.u32 (%p1357_p5), %s161_s11, 5 }
  0x23   : > { %s1599_s0 = sld [smem:[#allocation7_spill]] (%p1357_p5)  ;;  %s163_s23 = scalar_lea.vmem (%p1357_p5), [#allocation3], %s947_s27 }
  0x29   : > { %s169_s5 = scalar_lea.vmem %s1599_s0, %s1003_s26 }
  0x2a   : > { %v203_v0 = vld [vmem:[%s169_s5] sm:$0xff] }
  0x2b   : > { %v205_v1 = vld [vmem:[%s169_s5 + $0x20] sm:$0xff]  ;;  %204 = vst [vmem:[%s163_s23] sm:$0xff] %v203_v0 }
  0x2c   : > { %v207_v2 = vld [vmem:[%s169_s5 + $0x40] sm:$0xff]  ;;  %206 = vst [vmem:[%s163_s23 + $0x8] sm:$0xff] %v205_v1 }
  0x2d   : > { %208 = vst [vmem:[%s163_s23 + $0x10] sm:$0xff] %v207_v2  ;;  %v209_v3 = vld [vmem:[%s169_s5 + $0x60] sm:$0xff] }
  0x2e   : > { %210 = vst [vmem:[%s163_s23 + $0x18] sm:$0xff] %v209_v3 }
  0x2f PF: > { %216 = sbr.rel (!%p1371_p9) target bundleno = 73 (0x49), region = 58  ;;  %s218_s28 = sand.u32 (%p1371_p9), 1, %s1239_s15  }
  0x30   : > { %s952_s7 = sshll.u32 (%p1371_p9), %s1263_s21, 1  ;;  %s950_s11 = sshll.u32 (%p1371_p9), %s218_s28, 8 }
  0x31   : > { %s1004_s26 = sshll.u32 (%p1371_p9), %s1259_s20, 7  ;;  %s1600_s1 = sld [smem:[#allocation8_spill]] (%p1371_p9) }
  0x32   : > { %s224_s29 = sadd.s32 (%p1371_p9), %s1004_s26, %s952_s7  ;;  %s1409_s6 = scalar_lea.vmem (%p1371_p9), [#allocation4], %s950_s11 }
  0x33   : > { %s954_s4 = sshll.u32 (%p1371_p9), %s224_s29, 2 }
  0x37   : > { %s1404_s25 = scalar_lea.vmem %s1600_s1, %s954_s4 }
  0x38   : > { %v316_v4 = vld [vmem:[%s1404_s25] sm:$0xff]  ;;  %v318_v5 = vld [vmem:[%s1404_s25 + $0x10] sm:$0xff] }
  0x39   : > { %v320_v6 = vld [vmem:[%s1404_s25 + $0x20] sm:$0xff]  ;;  %317 = vst [vmem:[%s1409_s6] sm:$0xff] %v316_v4  ;;  %319 = vst [vmem:[%s1409_s6 + $0x8] sm:$0xff] %v318_v5  ;;  %v322_v7 = vld [vmem:[%s1404_s25 + $0x30] sm:$0xff] }
  0x3a   : > { %321 = vst [vmem:[%s1409_s6 + $0x10] sm:$0xff] %v320_v6  ;;  %v324_v8 = vld [vmem:[%s1404_s25 + $0x40] sm:$0xff]  ;;  %v326_v9 = vld [vmem:[%s1404_s25 + $0x50] sm:$0xff]  ;;  %323 = vst [vmem:[%s1409_s6 + $0x18] sm:$0xff] %v322_v7 }
  0x3b   : > { %325 = vst [vmem:[%s1409_s6 + $0x20] sm:$0xff] %v324_v8  ;;  %327 = vst [vmem:[%s1409_s6 + $0x28] sm:$0xff] %v326_v9  ;;  %v328_v10 = vld [vmem:[%s1404_s25 + $0x60] sm:$0xff]  ;;  %v330_v11 = vld [vmem:[%s1404_s25 + $0x70] sm:$0xff] }
  0x3c   : > { %v332_v12 = vld [vmem:[%s1404_s25 + $0x80] sm:$0xff]  ;;  %329 = vst [vmem:[%s1409_s6 + $0x30] sm:$0xff] %v328_v10  ;;  %331 = vst [vmem:[%s1409_s6 + $0x38] sm:$0xff] %v330_v11  ;;  %v334_v13 = vld [vmem:[%s1404_s25 + $0x90] sm:$0xff] }
  0x3d   : > { %333 = vst [vmem:[%s1409_s6 + $0x40] sm:$0xff] %v332_v12  ;;  %v336_v14 = vld [vmem:[%s1404_s25 + $0xa0] sm:$0xff]  ;;  %v338_v15 = vld [vmem:[%s1404_s25 + $0xb0] sm:$0xff]  ;;  %335 = vst [vmem:[%s1409_s6 + $0x48] sm:$0xff] %v334_v13 }
  0x3e   : > { %337 = vst [vmem:[%s1409_s6 + $0x50] sm:$0xff] %v336_v14  ;;  %339 = vst [vmem:[%s1409_s6 + $0x58] sm:$0xff] %v338_v15  ;;  %v340_v16 = vld [vmem:[%s1404_s25 + $0xc0] sm:$0xff]  ;;  %v342_v17 = vld [vmem:[%s1404_s25 + $0xd0] sm:$0xff] }
  0x3f   : > { %v344_v18 = vld [vmem:[%s1404_s25 + $0xe0] sm:$0xff]  ;;  %341 = vst [vmem:[%s1409_s6 + $0x60] sm:$0xff] %v340_v16  ;;  %343 = vst [vmem:[%s1409_s6 + $0x68] sm:$0xff] %v342_v17  ;;  %v346_v19 = vld [vmem:[%s1404_s25 + $0xf0] sm:$0xff] }
  0x40   : > { %345 = vst [vmem:[%s1409_s6 + $0x70] sm:$0xff] %v344_v18  ;;  %v348_v20 = vld [vmem:[%s1404_s25 + $0x100] sm:$0xff]  ;;  %v350_v21 = vld [vmem:[%s1404_s25 + $0x110] sm:$0xff]  ;;  %347 = vst [vmem:[%s1409_s6 + $0x78] sm:$0xff] %v346_v19 }
  0x41   : > { %349 = vst [vmem:[%s1409_s6 + $0x80] sm:$0xff] %v348_v20  ;;  %351 = vst [vmem:[%s1409_s6 + $0x88] sm:$0xff] %v350_v21  ;;  %v352_v22 = vld [vmem:[%s1404_s25 + $0x120] sm:$0xff]  ;;  %v354_v23 = vld [vmem:[%s1404_s25 + $0x130] sm:$0xff] }
  0x42   : > { %v356_v24 = vld [vmem:[%s1404_s25 + $0x140] sm:$0xff]  ;;  %353 = vst [vmem:[%s1409_s6 + $0x90] sm:$0xff] %v352_v22  ;;  %355 = vst [vmem:[%s1409_s6 + $0x98] sm:$0xff] %v354_v23  ;;  %v358_v25 = vld [vmem:[%s1404_s25 + $0x150] sm:$0xff] }
  0x43   : > { %357 = vst [vmem:[%s1409_s6 + $0xa0] sm:$0xff] %v356_v24  ;;  %v360_v26 = vld [vmem:[%s1404_s25 + $0x160] sm:$0xff]  ;;  %v362_v27 = vld [vmem:[%s1404_s25 + $0x170] sm:$0xff]  ;;  %359 = vst [vmem:[%s1409_s6 + $0xa8] sm:$0xff] %v358_v25 }
  0x44   : > { %361 = vst [vmem:[%s1409_s6 + $0xb0] sm:$0xff] %v360_v26  ;;  %363 = vst [vmem:[%s1409_s6 + $0xb8] sm:$0xff] %v362_v27  ;;  %v364_v28 = vld [vmem:[%s1404_s25 + $0x180] sm:$0xff]  ;;  %v366_v29 = vld [vmem:[%s1404_s25 + $0x190] sm:$0xff] }
  0x45   : > { %v368_v30 = vld [vmem:[%s1404_s25 + $0x1a0] sm:$0xff]  ;;  %365 = vst [vmem:[%s1409_s6 + $0xc0] sm:$0xff] %v364_v28  ;;  %367 = vst [vmem:[%s1409_s6 + $0xc8] sm:$0xff] %v366_v29  ;;  %v370_v31 = vld [vmem:[%s1404_s25 + $0x1b0] sm:$0xff] }
  0x46   : > { %369 = vst [vmem:[%s1409_s6 + $0xd0] sm:$0xff] %v368_v30  ;;  %v372_v32 = vld [vmem:[%s1404_s25 + $0x1c0] sm:$0xff]  ;;  %v374_v33 = vld [vmem:[%s1404_s25 + $0x1d0] sm:$0xff]  ;;  %371 = vst [vmem:[%s1409_s6 + $0xd8] sm:$0xff] %v370_v31 }
  0x47   : > { %373 = vst [vmem:[%s1409_s6 + $0xe0] sm:$0xff] %v372_v32  ;;  %375 = vst [vmem:[%s1409_s6 + $0xe8] sm:$0xff] %v374_v33  ;;  %v376_v34 = vld [vmem:[%s1404_s25 + $0x1e0] sm:$0xff]  ;;  %v378_v35 = vld [vmem:[%s1404_s25 + $0x1f0] sm:$0xff] }
  0x48   : > { %377 = vst [vmem:[%s1409_s6 + $0xf0] sm:$0xff] %v376_v34  ;;  %379 = vst [vmem:[%s1409_s6 + $0xf8] sm:$0xff] %v378_v35 }
  0x49 PF: > { %p955_p0 = scmp.ge.s32.totalorder %s1267_s22, 1  ;;  %p392_p1 = scmp.lt.s32.totalorder %s1267_s22, 9 }
  0x4b   : > { %p393_p2 = pnand %p955_p0, %p392_p1 }
  0x4c   : > { %s399_s0 = sand.u32 (!%p393_p2), 1, %s1243_s16   ;;  %s406_s5 = sand.u32 (!%p393_p2), 1, %s1235_s14  }
  0x4d   : > { %396 = sbr.rel (%p393_p2) target bundleno = 393 (0x189), region = 100  ;;  %s956_s23 = sshll.u32 (!%p393_p2), %s399_s0, 5 }
  0x4e   : > { %s957_s28 = sshll.u32 (!%p393_p2), %s406_s5, 8  ;;  %s433_s7 = sand.u32 (!%p393_p2), 1, %s1227_s12  }
  0x4f   : > { %s959_s25 = sshll.u32 (!%p393_p2), %s1255_s19, 1  ;;  %s958_s11 = sshll.u32 (!%p393_p2), %s433_s7, 6 }
  0x50   : > { %p441_p3 = scmp.lt.s32.totalorder (!%p393_p2), %s959_s25, 3  ;;  %s1484_s27 = scalar_lea.vmem (!%p393_p2), [#allocation3], %s956_s23 }
  0x51   : > { %s1486_s6 = scalar_lea.vmem (!%p393_p2), [#allocation4], %s957_s28  ;;  %s1488_s1 = scalar_lea.vmem (!%p393_p2), [#allocation5], %s958_s11 }
  0x52   : > { %p960_p4 = scmp.ne.s32.totalorder (!%p393_p2), %s1251_s18, 0 }
  0x54   : > { %s1619_s25 = smov (!%p441_p3, %s959_s25), 3  ;;  %450 = sbr.rel (%p960_p4) target bundleno = 91 (0x5b), region = 112 }
  0x55   : > { %s443_s4 = scalar_lea.vmem %s1590_s2, %s1619_s25  ;;  %v1269_v36 = vmov (!%p960_p4), 0.0  }
  0x56   : > { %451 = vst [vmem:[#allocation2] sm:$0xff] (!%p960_p4), %v1269_v36  ;;  %452 = vst [vmem:[#allocation2 + $0x8] sm:$0xff] (!%p960_p4), %v1269_v36 }
  0x57   : > { %453 = vst [vmem:[#allocation2 + $0x10] sm:$0xff] (!%p960_p4), %v1269_v36  ;;  %454 = vst [vmem:[#allocation2 + $0x18] sm:$0xff] (!%p960_p4), %v1269_v36 }
  0x58   : > { %455 = vst [vmem:[#allocation2 + $0x20] sm:$0xff] (!%p960_p4), %v1269_v36  ;;  %456 = vst [vmem:[#allocation2 + $0x28] sm:$0xff] (!%p960_p4), %v1269_v36 }
  0x59   : > { %457 = vst [vmem:[#allocation2 + $0x30] sm:$0xff] (!%p960_p4), %v1269_v36  ;;  %458 = vst [vmem:[#allocation2 + $0x38] sm:$0xff] (!%p960_p4), %v1269_v36 }
  0x5b PF: > { %v1127_v37 = vld [vmem:[%s1486_s6 + $0x4] ss:$8 sps:$4 sm:$0xff]   ;;  %v1129_v38 = vld [vmem:[%s1486_s6] ss:$8 sps:$4 sm:$0xff]   ;;  %v1130_v39 = vld [vmem:[%s1486_s6 + $0x14] ss:$8 sps:$4 sm:$0xff]  }
  0x5c   : > { %683 = vmatprep.subr.bf16.mxu0 %v1127_v37  ;;  %1006 = vmatprep.subr.bf16.mxu1 %v1127_v37  ;;  %v1132_v40 = vld [vmem:[%s1486_s6 + $0x10] ss:$8 sps:$4 sm:$0xff]   ;;  %v1133_v41 = vld [vmem:[%s1486_s6 + $0x24] ss:$8 sps:$4 sm:$0xff]   ;;  %v1135_v42 = vld [vmem:[%s1486_s6 + $0x20] ss:$8 sps:$4 sm:$0xff]  }
  0x5d   : > { %684 = vmatpush1.bf16.msra.mxu0 %v1129_v38  ;;  %1022 = vmatpush1.bf16.msra.mxu1 %v1129_v38  ;;  %v1136_v43 = vld [vmem:[%s1486_s6 + $0x34] ss:$8 sps:$4 sm:$0xff]   ;;  %v1138_v44 = vld [vmem:[%s1486_s6 + $0x30] ss:$8 sps:$4 sm:$0xff]   ;;  %v1139_v45 = vld [vmem:[%s1486_s6 + $0x44] ss:$8 sps:$4 sm:$0xff]  }
  0x5e   : > { %685 = vmatprep.subr.bf16.mxu0 %v1130_v39  ;;  %1007 = vmatprep.subr.bf16.mxu1 %v1130_v39  ;;  %v1141_v46 = vld [vmem:[%s1486_s6 + $0x40] ss:$8 sps:$4 sm:$0xff]   ;;  %v1142_v47 = vld [vmem:[%s1486_s6 + $0x54] ss:$8 sps:$4 sm:$0xff]   ;;  %v1144_v48 = vld [vmem:[%s1486_s6 + $0x50] ss:$8 sps:$4 sm:$0xff]  }
  0x5f   : > { %v1145_v49 = vld [vmem:[%s1486_s6 + $0x64] ss:$8 sps:$4 sm:$0xff]   ;;  %v1147_v51 = vld [vmem:[%s1486_s6 + $0x60] ss:$8 sps:$4 sm:$0xff]   ;;  %v1180_v52 = vld [vmem:[%s1484_s27 + $0x14] ss:$8 sps:$4 sm:$0xff]  }
  0x60   : > { %v1177_v50 = vld [vmem:[%s1484_s27 + $0x4] ss:$8 sps:$4 sm:$0xff]   ;;  %v1148_v53 = vld [vmem:[%s1486_s6 + $0x74] ss:$8 sps:$4 sm:$0xff]   ;;  %725 = vmatprep.mubr.bf16.mxu1 %v1180_v52  ;;  %v1150_v54 = vld [vmem:[%s1486_s6 + $0x70] ss:$8 sps:$4 sm:$0xff]  }
  0x61   : > { %686 = vmatpush1.bf16.msra.mxu0 %v1132_v40  ;;  %1023 = vmatpush1.bf16.msra.mxu1 %v1132_v40  ;;  %v1151_v55 = vld [vmem:[%s1486_s6 + $0x84] ss:$8 sps:$4 sm:$0xff]   ;;  %v1153_v56 = vld [vmem:[%s1486_s6 + $0x80] ss:$8 sps:$4 sm:$0xff]   ;;  %v1154_v57 = vld [vmem:[%s1486_s6 + $0x94] ss:$8 sps:$4 sm:$0xff]  }
  0x62   : > { %687 = vmatprep.subr.bf16.mxu0 %v1133_v41  ;;  %1008 = vmatprep.subr.bf16.mxu1 %v1133_v41  ;;  %v1156_v58 = vld [vmem:[%s1486_s6 + $0x90] ss:$8 sps:$4 sm:$0xff]   ;;  %v1157_v59 = vld [vmem:[%s1486_s6 + $0xa4] ss:$8 sps:$4 sm:$0xff]   ;;  %v1159_v60 = vld [vmem:[%s1486_s6 + $0xa0] ss:$8 sps:$4 sm:$0xff]  }
  0x63   : > { %715 = vmatprep.mubr.bf16.mxu0 %v1177_v50  ;;  %v1160_v61 = vld [vmem:[%s1486_s6 + $0xb4] ss:$8 sps:$4 sm:$0xff]   ;;  %v1162_v62 = vld [vmem:[%s1486_s6 + $0xb0] ss:$8 sps:$4 sm:$0xff]   ;;  %v1163_v63 = vld [vmem:[%s1486_s6 + $0xc4] ss:$8 sps:$4 sm:$0xff]  }
  0x64   : > { %v1165_v0 = vld [vmem:[%s1486_s6 + $0xc0] ss:$8 sps:$4 sm:$0xff]   ;;  %v1166_v1 = vld [vmem:[%s1486_s6 + $0xd4] ss:$8 sps:$4 sm:$0xff]   ;;  %v1168_v2 = vld [vmem:[%s1486_s6 + $0xd0] ss:$8 sps:$4 sm:$0xff]  }
  0x65   : > { %688 = vmatpush1.bf16.msra.mxu0 %v1135_v42  ;;  %1024 = vmatpush1.bf16.msra.mxu1 %v1135_v42  ;;  %v1169_v3 = vld [vmem:[%s1486_s6 + $0xe4] ss:$8 sps:$4 sm:$0xff]   ;;  %v1171_v4 = vld [vmem:[%s1486_s6 + $0xe0] ss:$8 sps:$4 sm:$0xff]   ;;  %v1172_v5 = vld [vmem:[%s1486_s6 + $0xf4] ss:$8 sps:$4 sm:$0xff]  }
  0x66   : > { %689 = vmatprep.subr.bf16.mxu0 %v1136_v43  ;;  %1009 = vmatprep.subr.bf16.mxu1 %v1136_v43  ;;  %v1174_v6 = vld [vmem:[%s1486_s6 + $0xf0] ss:$8 sps:$4 sm:$0xff]   ;;  %v1175_v7 = vld [vmem:[%s1484_s27] ss:$8 sps:$4 sm:$0xff]   ;;  %p997_p5 = scmp.ne.s32.totalorder %s1251_s18, 3 }
  0x67   : > { %v1178_v8 = vld [vmem:[%s1484_s27 + $0x10] ss:$8 sps:$4 sm:$0xff]   ;;  %v459_v9 = vld [vmem:[#allocation2] sm:$0xff]  ;;  %v460_v11 = vld [vmem:[#allocation2 + $0x8] sm:$0xff]  ;;  %v766_v33 = vlaneseq (!%p997_p5) }
  0x68   : > { %v463_v10 = vld [vmem:[#allocation2 + $0x20] sm:$0xff]  ;;  %v464_v12 = vld [vmem:[#allocation2 + $0x28] sm:$0xff]  ;;  %v461_v15 = vld [vmem:[#allocation2 + $0x10] sm:$0xff] }
  0x69   : > { %690 = vmatpush1.bf16.msra.mxu0 %v1138_v44  ;;  %1025 = vmatpush1.bf16.msra.mxu1 %v1138_v44  ;;  %v465_v16 = vld [vmem:[#allocation2 + $0x30] sm:$0xff]  ;;  %v462_v21 = vld [vmem:[#allocation2 + $0x18] sm:$0xff]  ;;  %v767_v34 = vshrl.u32 (!%p997_p5), %v766_v33, 7  ;;  %v764_v35 = vld [vmem:[%s443_s4] sm:$0x3] (!%p997_p5) }
  0x6a   : > { %691 = vmatprep.subr.bf16.mxu0 %v1139_v45  ;;  %1010 = vmatprep.subr.bf16.mxu1 %v1139_v45  ;;  %v466_v22 = vld [vmem:[#allocation2 + $0x38] sm:$0xff] }
  0x6b   : > { %v768_v37 = vsub.s32 (!%p997_p5), 0, %v767_v34  ;;  %v772_v39 = vsub.s32 (!%p997_p5), 1, %v767_v34 }
  0x6d   : > { %692 = vmatpush1.bf16.msra.mxu0 %v1141_v46  ;;  %1026 = vmatpush1.bf16.msra.mxu1 %v1141_v46  ;;  %v769_v43 = vrot.slane (!%p997_p5), %v764_v35, %v768_v37  ;;  %v773_v44 = vrot.slane (!%p997_p5), %v764_v35, %v772_v39 }
  0x6e   : > { %693 = vmatprep.subr.bf16.mxu0 %v1142_v47  ;;  %1011 = vmatprep.subr.bf16.mxu1 %v1142_v47 }
  0x71   : > { %694 = vmatpush1.bf16.msra.mxu0 %v1144_v48  ;;  %1027 = vmatpush1.bf16.msra.mxu1 %v1144_v48 }
  0x72   : > { %695 = vmatprep.subr.bf16.mxu0 %v1145_v49  ;;  %1012 = vmatprep.subr.bf16.mxu1 %v1145_v49 }
  0x75   : > { %696 = vmatpush1.bf16.msra.mxu0 %v1147_v51  ;;  %1028 = vmatpush1.bf16.msra.mxu1 %v1147_v51 }
  0x76   : > { %697 = vmatprep.subr.bf16.mxu0 %v1148_v53  ;;  %1013 = vmatprep.subr.bf16.mxu1 %v1148_v53 }
  0x79   : > { %698 = vmatpush1.bf16.msra.mxu0 %v1150_v54  ;;  %1029 = vmatpush1.bf16.msra.mxu1 %v1150_v54 }
  0x7a   : > { %699 = vmatprep.subr.bf16.mxu0 %v1151_v55  ;;  %1014 = vmatprep.subr.bf16.mxu1 %v1151_v55 }
  0x7d   : > { %700 = vmatpush1.bf16.msra.mxu0 %v1153_v56  ;;  %1030 = vmatpush1.bf16.msra.mxu1 %v1153_v56 }
  0x7e   : > { %701 = vmatprep.subr.bf16.mxu0 %v1154_v57  ;;  %1015 = vmatprep.subr.bf16.mxu1 %v1154_v57 }
  0x81   : > { %702 = vmatpush1.bf16.msra.mxu0 %v1156_v58  ;;  %1031 = vmatpush1.bf16.msra.mxu1 %v1156_v58 }
  0x82   : > { %703 = vmatprep.subr.bf16.mxu0 %v1157_v59  ;;  %1016 = vmatprep.subr.bf16.mxu1 %v1157_v59 }
  0x85   : > { %704 = vmatpush1.bf16.msra.mxu0 %v1159_v60  ;;  %1032 = vmatpush1.bf16.msra.mxu1 %v1159_v60 }
  0x86   : > { %705 = vmatprep.subr.bf16.mxu0 %v1160_v61  ;;  %1017 = vmatprep.subr.bf16.mxu1 %v1160_v61 }
  0x89   : > { %706 = vmatpush1.bf16.msra.mxu0 %v1162_v62  ;;  %1033 = vmatpush1.bf16.msra.mxu1 %v1162_v62 }
  0x8a   : > { %707 = vmatprep.subr.bf16.mxu0 %v1163_v63  ;;  %1018 = vmatprep.subr.bf16.mxu1 %v1163_v63 }
  0x8d   : > { %708 = vmatpush1.bf16.msra.mxu0 %v1165_v0  ;;  %1034 = vmatpush1.bf16.msra.mxu1 %v1165_v0 }
  0x8e   : > { %709 = vmatprep.subr.bf16.mxu0 %v1166_v1  ;;  %1019 = vmatprep.subr.bf16.mxu1 %v1166_v1 }
  0x91   : > { %710 = vmatpush1.bf16.msra.mxu0 %v1168_v2  ;;  %1035 = vmatpush1.bf16.msra.mxu1 %v1168_v2 }
  0x92   : > { %711 = vmatprep.subr.bf16.mxu0 %v1169_v3  ;;  %1020 = vmatprep.subr.bf16.mxu1 %v1169_v3 }
  0x95   : > { %712 = vmatpush1.bf16.msra.mxu0 %v1171_v4  ;;  %1036 = vmatpush1.bf16.msra.mxu1 %v1171_v4 }
  0x96   : > { %713 = vmatprep.subr.bf16.mxu0 %v1172_v5  ;;  %1021 = vmatprep.subr.bf16.mxu1 %v1172_v5 }
  0x99   : > { %714 = vmatpush1.bf16.msra.mxu0 %v1174_v6  ;;  %1037 = vmatpush1.bf16.msra.mxu1 %v1174_v6 }
  0x9c   : > { %716 = vmatmul.mubr.bf16.vlgmr.msra.gmra.mrb[0].mxu0 %v1175_v7  ;;  %726 = vmatmul.mubr.bf16.vlgmr.msra.gmra.mrb[0].mxu1 %v1178_v8 }
 0x16f   : > { %v717_v13 = vpop.f32.mrb[0].mxu0  ;;  %v727_v14 = vpop.f32.mrb[0].mxu1  ;;  %755 = sbr.rel (%p997_p5) target bundleno = 385 (0x181), region = 116 }
 0x170   : > { %v736_v17 = vadd.f32 %v717_v13, %v459_v9  ;;  %v740_v18 = vadd.f32 %v727_v14, %v463_v10  ;;  %v719_v19 = vpop.f32.mrb[1].mxu0  ;;  %v729_v20 = vpop.f32.mrb[1].mxu1 }
 0x171   : > { %v737_v23 = vadd.f32 %v719_v19, %v460_v11  ;;  %v741_v24 = vadd.f32 %v729_v20, %v464_v12  ;;  %v721_v25 = vpop.f32.mrb[2].mxu0  ;;  %v731_v26 = vpop.f32.mrb[2].mxu1 }
 0x172   : > { %744 = vst [vmem:[#allocation2] sm:$0xff] %v736_v17  ;;  %748 = vst [vmem:[#allocation2 + $0x20] sm:$0xff] %v740_v18  ;;  %v738_v27 = vadd.f32 %v721_v25, %v461_v15  ;;  %v742_v28 = vadd.f32 %v731_v26, %v465_v16  ;;  %v723_v29 = vpop.f32.mrb[3].mxu0  ;;  %v733_v30 = vpop.f32.mrb[3].mxu1 }
 0x173   : > { %745 = vst [vmem:[#allocation2 + $0x8] sm:$0xff] %v737_v23  ;;  %749 = vst [vmem:[#allocation2 + $0x28] sm:$0xff] %v741_v24  ;;  %v739_v31 = vadd.f32 %v723_v29, %v462_v21  ;;  %v743_v32 = vadd.f32 %v733_v30, %v466_v22 }
 0x174   : > { %746 = vst [vmem:[#allocation2 + $0x10] sm:$0xff] %v738_v27  ;;  %750 = vst [vmem:[#allocation2 + $0x30] sm:$0xff] %v742_v28 }
 0x175   : > { %747 = vst [vmem:[#allocation2 + $0x18] sm:$0xff] %v739_v31  ;;  %751 = vst [vmem:[#allocation2 + $0x38] sm:$0xff] %v743_v32 }
 0x179   : > { %v756_v36 = vld [vmem:[#allocation2] sm:$0xff] }
 0x17a   : > { %v757_v38 = vld [vmem:[#allocation2 + $0x8] sm:$0xff]  ;;  %v760_v42 = vld [vmem:[#allocation2 + $0x20] sm:$0xff]  ;;  %v776_v48 = vadd.f32 %v769_v43, %v756_v36 }
 0x17b   : > { %v758_v40 = vld [vmem:[#allocation2 + $0x10] sm:$0xff]  ;;  %v761_v45 = vld [vmem:[#allocation2 + $0x28] sm:$0xff]  ;;  %v777_v49 = vadd.f32 %v773_v44, %v757_v38  ;;  %v780_v52 = vadd.f32 %v769_v43, %v760_v42 }
 0x17c   : > { %v759_v41 = vld [vmem:[#allocation2 + $0x18] sm:$0xff]  ;;  %v762_v46 = vld [vmem:[#allocation2 + $0x30] sm:$0xff]  ;;  %v778_v50 = vadd.f32 %v769_v43, %v758_v40  ;;  %v781_v53 = vadd.f32 %v773_v44, %v761_v45  ;;  %784 = vst [vmem:[%s1488_s1] sm:$0xff] %v776_v48 }
 0x17d   : > { %v763_v47 = vld [vmem:[#allocation2 + $0x38] sm:$0xff]  ;;  %v779_v51 = vadd.f32 %v773_v44, %v759_v41  ;;  %v782_v54 = vadd.f32 %v769_v43, %v762_v46  ;;  %785 = vst [vmem:[%s1488_s1 + $0x8] sm:$0xff] %v777_v49  ;;  %788 = vst [vmem:[%s1488_s1 + $0x20] sm:$0xff] %v780_v52 }
 0x17e   : > { %v783_v55 = vadd.f32 %v773_v44, %v763_v47  ;;  %786 = vst [vmem:[%s1488_s1 + $0x10] sm:$0xff] %v778_v50  ;;  %789 = vst [vmem:[%s1488_s1 + $0x28] sm:$0xff] %v781_v53 }
 0x17f   : > { %787 = vst [vmem:[%s1488_s1 + $0x18] sm:$0xff] %v779_v51  ;;  %790 = vst [vmem:[%s1488_s1 + $0x30] sm:$0xff] %v782_v54 }
 0x180   : > { %791 = vst [vmem:[%s1488_s1 + $0x38] sm:$0xff] %v783_v55 }
 0x181 PF: > { %798 = sbr.rel (!%p1384_p12) target bundleno = 393 (0x189), region = 120  ;;  %s1005_s16 = sshll.u32 (%p1384_p12), %s1255_s19, 4 }
 0x182   : > { %s804_s5 = scalar_lea.vmem (%p1384_p12), %s1591_s3, %s1005_s16 }
 0x183   : > { %v817_v56 = vld [vmem:[%s1488_s1] sm:$0xff] (%p1384_p12) }
 0x184   : > { %v819_v57 = vld [vmem:[%s1488_s1 + $0x8] sm:$0xff] (%p1384_p12)  ;;  %v825_v60 = vld [vmem:[%s1488_s1 + $0x20] sm:$0xff] (%p1384_p12)  ;;  %818 = vst [vmem:[%s804_s5] sm:$0xff] (%p1384_p12), %v817_v56 }
 0x185   : > { %v821_v58 = vld [vmem:[%s1488_s1 + $0x10] sm:$0xff] (%p1384_p12)  ;;  %v827_v61 = vld [vmem:[%s1488_s1 + $0x28] sm:$0xff] (%p1384_p12)  ;;  %820 = vst [vmem:[%s804_s5 + $0x8] sm:$0xff] (%p1384_p12), %v819_v57  ;;  %826 = vst [vmem:[%s804_s5 + $0x40] sm:$0xff] (%p1384_p12), %v825_v60 }
 0x186   : > { %v823_v59 = vld [vmem:[%s1488_s1 + $0x18] sm:$0xff] (%p1384_p12)  ;;  %822 = vst [vmem:[%s804_s5 + $0x20] sm:$0xff] (%p1384_p12), %v821_v58  ;;  %828 = vst [vmem:[%s804_s5 + $0x48] sm:$0xff] (%p1384_p12), %v827_v61  ;;  %v829_v62 = vld [vmem:[%s1488_s1 + $0x30] sm:$0xff] (%p1384_p12) }
 0x187   : > { %824 = vst [vmem:[%s804_s5 + $0x28] sm:$0xff] (%p1384_p12), %v823_v59  ;;  %v831_v63 = vld [vmem:[%s1488_s1 + $0x38] sm:$0xff] (%p1384_p12)  ;;  %830 = vst [vmem:[%s804_s5 + $0x60] sm:$0xff] (%p1384_p12), %v829_v62 }
 0x188   : > { %832 = vst [vmem:[%s804_s5 + $0x68] sm:$0xff] %v831_v63 }
 0x189 PF: > { %s13_s22 = sadd.s32 1, %s1267_s22   ;;  %s1601_s10 = sld [smem:[#allocation6_spill]] }
 0x18a   : > { %p10_p6 = scmp.ge.s32.totalorder %s13_s22, 10   ;;  %s1602_s12 = smov %s1231_s13 }
 0x18b   : > { %s1603_s13 = smov %s1382_s9  ;;  %s1604_s14 = smov %s1239_s15 }
 0x18c   : > { %s1605_s15 = smov %s1379_s8  ;;  %s1606_s16 = smov %s1247_s17 }
 0x18d   : > { %s1607_s17 = smov %s1365_s30  ;;  %s1608_s18 = smov %s1259_s20 }
 0x18e   : > { %s1609_s19 = smov %s1263_s21  ;;  %s1610_s20 = smov %s1613_s24 }
 0x18f   : > { %s1611_s21 = smov %s1601_s10  ;;  %12 = sbr.rel (!%p10_p6) target bundleno = 9 (0x9), region = 185 }

// kernel: tile.18
= control target key start
LH: loop header
LB: loop body
LE: loop exit
PB: predicated region body
PF: predicated region fallthrough
CT: control target
= control target key end

     0   :  { %s22_s0 = inlined_call_operand.vmem [shape: f32[64], index: 0, kind: input, shape index: {}]   ;;  %s23_s1 = inlined_call_operand.vmem [shape: f32[4,64], index: 1, kind: output, shape index: {}]  }
   0x1   :  { %v4_v0 = vld [vmem:[%s22_s0] ss:$0 sm:$0xff] }
   0x2   :  { %5 = vst [vmem:[%s23_s1] sm:$0xf] %v4_v0 }

// kernel: generator_forward.35
= control target key start
LH: loop header
LB: loop body
LE: loop exit
PB: predicated region body
PF: predicated region fallthrough
CT: control target
= control target key end

     0   :  { %s1408_s12 = smov 0   ;;  %s1410_s13 = smov 0   ;;  %s1680_s0 = inlined_call_operand.vmem [shape: bf16[128,512], index: 0, kind: input, shape index: {}]   ;;  %s1681_s1 = inlined_call_operand.vmem [shape: bf16[512,256], index: 1, kind: input, shape index: {}]   ;;  %s1682_s2 = inlined_call_operand.vmem [shape: f32[1,256], index: 2, kind: input, shape index: {}]   ;;  %s1683_s3 = inlined_call_operand.vmem [shape: f32[128,256], index: 3, kind: output, shape index: {}]  }
   0x1   :  { %s1412_s14 = smov 0   ;;  %s1414_s15 = smov 0  }
   0x2   :  { %s1416_s16 = smov 0  }
   0x3 LB: > { %s25_s17 = sadd.s32 1, %s1381_s15  ;;  %p48_p1 = scmp.ne.s32.totalorder %s1373_s13, %s1369_s12  ;;  %s1385_s16 = sphi %s1416_s16, %s13_s16   ;;  %s1381_s15 = sphi %s1414_s15, %s1687_s15   ;;  %s1377_s14 = sphi %s1412_s14, %s1686_s14   ;;  %s1373_s13 = sphi %s1410_s13, %s1685_s13   ;;  %s1369_s12 = sphi %s1408_s12, %s1684_s12  }
   0x4   : > { %p26_p0 = scmp.ge.s32.totalorder %s25_s17, 2  ;;  %p49_p2 = scmp.eq.s32.totalorder %s1385_s16, 0 }
   0x5   : > { %s41_s19 = sadd.s32 1, %s1373_s13  ;;  %p1137_p5 = scmp.ge.s32.totalorder %s1385_s16, 2 }
   0x6   : > { %s1689_s17 = smov (%p26_p0, %s25_s17), 0  ;;  %p50_p3 = por %p49_p2, %p48_p1 }
   0x7   : > { %s37_s18 = ssub.s32 %s1381_s15, %s1689_s17  ;;  %164 = sbr.rel (%p1137_p5) target bundleno = 26 (0x1a), region = 20 }
   0x8   : > { %p39_p4 = scmp.eq.s32.totalorder %s37_s18, 0 }
   0xa   : > { %s1443_s20 = scalar_select %p39_p4, %s1373_s13, %s41_s19  }
   0xe   : > { %167 = sbr.rel (!%p50_p3) target bundleno = 26 (0x1a), region = 24  ;;  %s169_s21 = sand.u32 (%p50_p3), 1, %s1373_s13  }
   0xf   : > { %s1200_s22 = sshll.u32 (%p50_p3), %s1381_s15, 3  ;;  %s1138_s23 = sshll.u32 (%p50_p3), %s169_s21, 7 }
  0x10   : > { %s1451_s26 = scalar_lea.vmem (%p50_p3), %s1680_s0, %s1200_s22  ;;  %s171_s27 = scalar_lea.vmem (%p50_p3), [#allocation3], %s1138_s23 }
  0x11   : > { %v235_v0 = vld [vmem:[%s1451_s26] sm:$0xff] (%p50_p3)  ;;  %v237_v1 = vld [vmem:[%s1451_s26 + $0x10] sm:$0xff] (%p50_p3) }
  0x12   : > { %v239_v2 = vld [vmem:[%s1451_s26 + $0x20] sm:$0xff] (%p50_p3)  ;;  %236 = vst [vmem:[%s171_s27] sm:$0xff] (%p50_p3), %v235_v0  ;;  %238 = vst [vmem:[%s171_s27 + $0x8] sm:$0xff] (%p50_p3), %v237_v1  ;;  %v241_v3 = vld [vmem:[%s1451_s26 + $0x30] sm:$0xff] (%p50_p3) }
  0x13   : > { %240 = vst [vmem:[%s171_s27 + $0x10] sm:$0xff] (%p50_p3), %v239_v2  ;;  %v243_v4 = vld [vmem:[%s1451_s26 + $0x40] sm:$0xff] (%p50_p3)  ;;  %v245_v5 = vld [vmem:[%s1451_s26 + $0x50] sm:$0xff] (%p50_p3)  ;;  %242 = vst [vmem:[%s171_s27 + $0x18] sm:$0xff] (%p50_p3), %v241_v3 }
  0x14   : > { %244 = vst [vmem:[%s171_s27 + $0x20] sm:$0xff] (%p50_p3), %v243_v4  ;;  %246 = vst [vmem:[%s171_s27 + $0x28] sm:$0xff] (%p50_p3), %v245_v5  ;;  %v247_v6 = vld [vmem:[%s1451_s26 + $0x60] sm:$0xff] (%p50_p3)  ;;  %v249_v7 = vld [vmem:[%s1451_s26 + $0x70] sm:$0xff] (%p50_p3) }
  0x15   : > { %v251_v8 = vld [vmem:[%s1451_s26 + $0x80] sm:$0xff]  ;;  %248 = vst [vmem:[%s171_s27 + $0x30] sm:$0xff] %v247_v6  ;;  %250 = vst [vmem:[%s171_s27 + $0x38] sm:$0xff] %v249_v7  ;;  %v253_v9 = vld [vmem:[%s1451_s26 + $0x90] sm:$0xff] }
  0x16   : > { %252 = vst [vmem:[%s171_s27 + $0x40] sm:$0xff] %v251_v8  ;;  %v255_v10 = vld [vmem:[%s1451_s26 + $0xa0] sm:$0xff]  ;;  %v257_v11 = vld [vmem:[%s1451_s26 + $0xb0] sm:$0xff]  ;;  %254 = vst [vmem:[%s171_s27 + $0x48] sm:$0xff] %v253_v9 }
  0x17   : > { %256 = vst [vmem:[%s171_s27 + $0x50] sm:$0xff] %v255_v10  ;;  %258 = vst [vmem:[%s171_s27 + $0x58] sm:$0xff] %v257_v11  ;;  %v259_v12 = vld [vmem:[%s1451_s26 + $0xc0] sm:$0xff]  ;;  %v261_v13 = vld [vmem:[%s1451_s26 + $0xd0] sm:$0xff] }
  0x18   : > { %v263_v14 = vld [vmem:[%s1451_s26 + $0xe0] sm:$0xff]  ;;  %260 = vst [vmem:[%s171_s27 + $0x60] sm:$0xff] %v259_v12  ;;  %262 = vst [vmem:[%s171_s27 + $0x68] sm:$0xff] %v261_v13  ;;  %v265_v15 = vld [vmem:[%s1451_s26 + $0xf0] sm:$0xff] }
  0x19   : > { %264 = vst [vmem:[%s171_s27 + $0x70] sm:$0xff] %v263_v14  ;;  %266 = vst [vmem:[%s171_s27 + $0x78] sm:$0xff] %v265_v15 }
  0x1a PF: > { %p1141_p6 = scmp.ge.s32.totalorder %s1385_s16, 1  ;;  %p286_p7 = scmp.lt.s32.totalorder %s1385_s16, 3 }
  0x1c   : > { %p287_p8 = pnand %p1141_p6, %p286_p7 }
  0x1d   : > { %s293_s28 = sand.u32 (!%p287_p8), 1, %s1369_s12   ;;  %s1143_s29 = sshll.u32 (!%p287_p8), %s1377_s14, 5 }
  0x1e   : > { %290 = sbr.rel (%p287_p8) target bundleno = 374 (0x176), region = 66  ;;  %s1142_s30 = sshll.u32 (!%p287_p8), %s293_s28, 7 }
  0x1f   : > { %p339_p9 = scmp.lt.s32.totalorder (!%p287_p8), %s1143_s29, 63  ;;  %s1478_s8 = scalar_lea.vmem (!%p287_p8), [#allocation3], %s1142_s30 }
  0x20   : > { %p1146_p10 = scmp.ne.s32.totalorder (!%p287_p8), %s1377_s14, 0 }
  0x25   : > { %s1691_s29 = smov (!%p339_p9, %s1143_s29), 63  ;;  %369 = sbr.rel (%p1146_p10) target bundleno = 55 (0x37), region = 74 }
  0x26   : > { %s1201_s4 = sshll.u32 %s1691_s29, 3  ;;  %v1387_v16 = vmov (!%p1146_p10), 0.0  }
  0x27   : > { %s1476_s7 = scalar_lea.vmem %s1681_s1, %s1201_s4  ;;  %370 = vst [vmem:[#allocation2] sm:$0xff] (!%p1146_p10), %v1387_v16  ;;  %371 = vst [vmem:[#allocation2 + $0x8] sm:$0xff] (!%p1146_p10), %v1387_v16 }
  0x28   : > { %372 = vst [vmem:[#allocation2 + $0x10] sm:$0xff] (!%p1146_p10), %v1387_v16  ;;  %373 = vst [vmem:[#allocation2 + $0x18] sm:$0xff] (!%p1146_p10), %v1387_v16 }
  0x29   : > { %374 = vst [vmem:[#allocation2 + $0x20] sm:$0xff] (!%p1146_p10), %v1387_v16  ;;  %375 = vst [vmem:[#allocation2 + $0x28] sm:$0xff] (!%p1146_p10), %v1387_v16 }
  0x2a   : > { %376 = vst [vmem:[#allocation2 + $0x30] sm:$0xff] (!%p1146_p10), %v1387_v16  ;;  %377 = vst [vmem:[#allocation2 + $0x38] sm:$0xff] (!%p1146_p10), %v1387_v16 }
  0x2b   : > { %378 = vst [vmem:[#allocation2 + $0x40] sm:$0xff] (!%p1146_p10), %v1387_v16  ;;  %379 = vst [vmem:[#allocation2 + $0x48] sm:$0xff] (!%p1146_p10), %v1387_v16 }
  0x2c   : > { %380 = vst [vmem:[#allocation2 + $0x50] sm:$0xff] %v1387_v16  ;;  %381 = vst [vmem:[#allocation2 + $0x58] sm:$0xff] %v1387_v16 }
  0x2d   : > { %382 = vst [vmem:[#allocation2 + $0x60] sm:$0xff] %v1387_v16  ;;  %383 = vst [vmem:[#allocation2 + $0x68] sm:$0xff] %v1387_v16 }
  0x2e   : > { %384 = vst [vmem:[#allocation2 + $0x70] sm:$0xff] %v1387_v16  ;;  %385 = vst [vmem:[#allocation2 + $0x78] sm:$0xff] %v1387_v16 }
  0x2f   : > { %386 = vst [vmem:[#allocation2 + $0x80] sm:$0xff] %v1387_v16  ;;  %387 = vst [vmem:[#allocation2 + $0x88] sm:$0xff] %v1387_v16 }
  0x30   : > { %388 = vst [vmem:[#allocation2 + $0x90] sm:$0xff] %v1387_v16  ;;  %389 = vst [vmem:[#allocation2 + $0x98] sm:$0xff] %v1387_v16 }
  0x31   : > { %390 = vst [vmem:[#allocation2 + $0xa0] sm:$0xff] %v1387_v16  ;;  %391 = vst [vmem:[#allocation2 + $0xa8] sm:$0xff] %v1387_v16 }
  0x32   : > { %392 = vst [vmem:[#allocation2 + $0xb0] sm:$0xff] %v1387_v16  ;;  %393 = vst [vmem:[#allocation2 + $0xb8] sm:$0xff] %v1387_v16 }
  0x33   : > { %394 = vst [vmem:[#allocation2 + $0xc0] sm:$0xff] %v1387_v16  ;;  %395 = vst [vmem:[#allocation2 + $0xc8] sm:$0xff] %v1387_v16 }
  0x34   : > { %396 = vst [vmem:[#allocation2 + $0xd0] sm:$0xff] %v1387_v16  ;;  %397 = vst [vmem:[#allocation2 + $0xd8] sm:$0xff] %v1387_v16 }
  0x35   : > { %398 = vst [vmem:[#allocation2 + $0xe0] sm:$0xff] %v1387_v16  ;;  %399 = vst [vmem:[#allocation2 + $0xe8] sm:$0xff] %v1387_v16 }
  0x36   : > { %400 = vst [vmem:[#allocation2 + $0xf0] sm:$0xff] %v1387_v16  ;;  %401 = vst [vmem:[#allocation2 + $0xf8] sm:$0xff] %v1387_v16 }
  0x37 PF: > { %v1275_v17 = vld [vmem:[%s1476_s7 + $0x4] ss:$8 sps:$4 sm:$0xff]   ;;  %v1277_v18 = vld [vmem:[%s1476_s7] ss:$8 sps:$4 sm:$0xff]   ;;  %v1278_v19 = vld [vmem:[%s1476_s7 + $0x14] ss:$8 sps:$4 sm:$0xff]  }
  0x38   : > { %722 = vmatprep.subr.bf16.mxu0 %v1275_v17  ;;  %1202 = vmatprep.subr.bf16.mxu1 %v1275_v17  ;;  %v1280_v20 = vld [vmem:[%s1476_s7 + $0x10] ss:$8 sps:$4 sm:$0xff]   ;;  %v1281_v21 = vld [vmem:[%s1476_s7 + $0x24] ss:$8 sps:$4 sm:$0xff]   ;;  %v1283_v22 = vld [vmem:[%s1476_s7 + $0x20] ss:$8 sps:$4 sm:$0xff]  }
  0x39   : > { %723 = vmatpush1.bf16.msra.mxu0 %v1277_v18  ;;  %1218 = vmatpush1.bf16.msra.mxu1 %v1277_v18  ;;  %v1284_v23 = vld [vmem:[%s1476_s7 + $0x34] ss:$8 sps:$4 sm:$0xff]   ;;  %v1286_v24 = vld [vmem:[%s1476_s7 + $0x30] ss:$8 sps:$4 sm:$0xff]   ;;  %v1287_v25 = vld [vmem:[%s1476_s7 + $0x44] ss:$8 sps:$4 sm:$0xff]  }
  0x3a   : > { %724 = vmatprep.subr.bf16.mxu0 %v1278_v19  ;;  %1203 = vmatprep.subr.bf16.mxu1 %v1278_v19  ;;  %v1289_v26 = vld [vmem:[%s1476_s7 + $0x40] ss:$8 sps:$4 sm:$0xff]   ;;  %v1290_v27 = vld [vmem:[%s1476_s7 + $0x54] ss:$8 sps:$4 sm:$0xff]   ;;  %v1292_v28 = vld [vmem:[%s1476_s7 + $0x50] ss:$8 sps:$4 sm:$0xff]  }
  0x3b   : > { %v1293_v29 = vld [vmem:[%s1476_s7 + $0x64] ss:$8 sps:$4 sm:$0xff]   ;;  %v1295_v31 = vld [vmem:[%s1476_s7 + $0x60] ss:$8 sps:$4 sm:$0xff]   ;;  %v1296_v33 = vld [vmem:[%s1476_s7 + $0x74] ss:$8 sps:$4 sm:$0xff]  }
  0x3c   : > { %v1325_v30 = vld [vmem:[%s1478_s8 + $0x4] ss:$8 sps:$4 sm:$0xff]   ;;  %v1298_v34 = vld [vmem:[%s1476_s7 + $0x70] ss:$8 sps:$4 sm:$0xff]   ;;  %v1301_v36 = vld [vmem:[%s1476_s7 + $0x80] ss:$8 sps:$4 sm:$0xff]  }
  0x3d   : > { %725 = vmatpush1.bf16.msra.mxu0 %v1280_v20  ;;  %1219 = vmatpush1.bf16.msra.mxu1 %v1280_v20  ;;  %v1328_v32 = vld [vmem:[%s1478_s8 + $0x44] ss:$8 sps:$4 sm:$0xff]   ;;  %v1302_v37 = vld [vmem:[%s1476_s7 + $0x94] ss:$8 sps:$4 sm:$0xff]   ;;  %v1304_v38 = vld [vmem:[%s1476_s7 + $0x90] ss:$8 sps:$4 sm:$0xff]  }
  0x3e   : > { %726 = vmatprep.subr.bf16.mxu0 %v1281_v21  ;;  %1204 = vmatprep.subr.bf16.mxu1 %v1281_v21  ;;  %v1299_v35 = vld [vmem:[%s1476_s7 + $0x84] ss:$8 sps:$4 sm:$0xff]   ;;  %v1307_v40 = vld [vmem:[%s1476_s7 + $0xa0] ss:$8 sps:$4 sm:$0xff]   ;;  %v1308_v41 = vld [vmem:[%s1476_s7 + $0xb4] ss:$8 sps:$4 sm:$0xff]  }
  0x3f   : > { %754 = vmatprep.mubr.bf16.mxu0 %v1325_v30  ;;  %794 = vmatprep.mubr.bf16.mxu1 %v1328_v32  ;;  %v1305_v39 = vld [vmem:[%s1476_s7 + $0xa4] ss:$8 sps:$4 sm:$0xff]   ;;  %v1310_v42 = vld [vmem:[%s1476_s7 + $0xb0] ss:$8 sps:$4 sm:$0xff]   ;;  %v1313_v44 = vld [vmem:[%s1476_s7 + $0xc0] ss:$8 sps:$4 sm:$0xff]  }
  0x40   : > { %v1311_v43 = vld [vmem:[%s1476_s7 + $0xc4] ss:$8 sps:$4 sm:$0xff]   ;;  %v1314_v45 = vld [vmem:[%s1476_s7 + $0xd4] ss:$8 sps:$4 sm:$0xff]   ;;  %v1316_v46 = vld [vmem:[%s1476_s7 + $0xd0] ss:$8 sps:$4 sm:$0xff]  }
  0x41   : > { %727 = vmatpush1.bf16.msra.mxu0 %v1283_v22  ;;  %1220 = vmatpush1.bf16.msra.mxu1 %v1283_v22  ;;  %v1317_v47 = vld [vmem:[%s1476_s7 + $0xe4] ss:$8 sps:$4 sm:$0xff]   ;;  %v1319_v48 = vld [vmem:[%s1476_s7 + $0xe0] ss:$8 sps:$4 sm:$0xff]   ;;  %v1320_v49 = vld [vmem:[%s1476_s7 + $0xf4] ss:$8 sps:$4 sm:$0xff]  }
  0x42   : > { %728 = vmatprep.subr.bf16.mxu0 %v1284_v23  ;;  %1205 = vmatprep.subr.bf16.mxu1 %v1284_v23  ;;  %v1322_v50 = vld [vmem:[%s1476_s7 + $0xf0] ss:$8 sps:$4 sm:$0xff]   ;;  %v1323_v51 = vld [vmem:[%s1478_s8] ss:$8 sps:$4 sm:$0xff]   ;;  %v1329_v53 = vld [vmem:[%s1478_s8 + $0x14] ss:$8 sps:$4 sm:$0xff]  }
  0x43   : > { %v1326_v52 = vld [vmem:[%s1478_s8 + $0x40] ss:$8 sps:$4 sm:$0xff]   ;;  %v1331_v54 = vld [vmem:[%s1478_s8 + $0x54] ss:$8 sps:$4 sm:$0xff]   ;;  %v1333_v55 = vld [vmem:[%s1478_s8 + $0x10] ss:$8 sps:$4 sm:$0xff]  }
  0x44   : > { %v1334_v56 = vld [vmem:[%s1478_s8 + $0x50] ss:$8 sps:$4 sm:$0xff]   ;;  %v1335_v57 = vld [vmem:[%s1478_s8 + $0x24] ss:$8 sps:$4 sm:$0xff]   ;;  %v1339_v59 = vld [vmem:[%s1478_s8 + $0x20] ss:$8 sps:$4 sm:$0xff]  }
  0x45   : > { %729 = vmatpush1.bf16.msra.mxu0 %v1286_v24  ;;  %1221 = vmatpush1.bf16.msra.mxu1 %v1286_v24  ;;  %v1337_v58 = vld [vmem:[%s1478_s8 + $0x64] ss:$8 sps:$4 sm:$0xff]   ;;  %v1340_v60 = vld [vmem:[%s1478_s8 + $0x60] ss:$8 sps:$4 sm:$0xff]   ;;  %v1341_v61 = vld [vmem:[%s1478_s8 + $0x34] ss:$8 sps:$4 sm:$0xff]  }
  0x46   : > { %730 = vmatprep.subr.bf16.mxu0 %v1287_v25  ;;  %1206 = vmatprep.subr.bf16.mxu1 %v1287_v25  ;;  %v1343_v62 = vld [vmem:[%s1478_s8 + $0x74] ss:$8 sps:$4 sm:$0xff]   ;;  %v1345_v63 = vld [vmem:[%s1478_s8 + $0x30] ss:$8 sps:$4 sm:$0xff]   ;;  %v402_v1 = vld [vmem:[#allocation2] sm:$0xff]  ;;  %p1195_p11 = scmp.ne.s32.totalorder %s1377_s14, 1 }
  0x47   : > { %v1346_v0 = vld [vmem:[%s1478_s8 + $0x70] ss:$8 sps:$4 sm:$0xff]   ;;  %v418_v2 = vld [vmem:[#allocation2 + $0x80] sm:$0xff]  ;;  %v403_v3 = vld [vmem:[#allocation2 + $0x8] sm:$0xff] }
  0x48   : > { %v419_v4 = vld [vmem:[#allocation2 + $0x88] sm:$0xff]  ;;  %v404_v7 = vld [vmem:[#allocation2 + $0x10] sm:$0xff]  ;;  %v405_v13 = vld [vmem:[#allocation2 + $0x18] sm:$0xff] }
  0x49   : > { %731 = vmatpush1.bf16.msra.mxu0 %v1289_v26  ;;  %1222 = vmatpush1.bf16.msra.mxu1 %v1289_v26  ;;  %v420_v8 = vld [vmem:[#allocation2 + $0x90] sm:$0xff]  ;;  %v421_v14 = vld [vmem:[#allocation2 + $0x98] sm:$0xff]  ;;  %v406_v25 = vld [vmem:[#allocation2 + $0x20] sm:$0xff] }
  0x4a   : > { %732 = vmatprep.subr.bf16.mxu0 %v1290_v27  ;;  %1207 = vmatprep.subr.bf16.mxu1 %v1290_v27  ;;  %v422_v26 = vld [vmem:[#allocation2 + $0xa0] sm:$0xff]  ;;  %v407_v27 = vld [vmem:[#allocation2 + $0x28] sm:$0xff]  ;;  %v424_v32 = vld [vmem:[#allocation2 + $0xb0] sm:$0xff] }
  0x4d   : > { %733 = vmatpush1.bf16.msra.mxu0 %v1292_v28  ;;  %1223 = vmatpush1.bf16.msra.mxu1 %v1292_v28  ;;  %v423_v28 = vld [vmem:[#allocation2 + $0xa8] sm:$0xff] }
  0x4e   : > { %734 = vmatprep.subr.bf16.mxu0 %v1293_v29  ;;  %1208 = vmatprep.subr.bf16.mxu1 %v1293_v29 }
  0x51   : > { %735 = vmatpush1.bf16.msra.mxu0 %v1295_v31  ;;  %1224 = vmatpush1.bf16.msra.mxu1 %v1295_v31  ;;  %v408_v31 = vld [vmem:[#allocation2 + $0x30] sm:$0xff] }
  0x52   : > { %736 = vmatprep.subr.bf16.mxu0 %v1296_v33  ;;  %1209 = vmatprep.subr.bf16.mxu1 %v1296_v33 }
  0x55   : > { %737 = vmatpush1.bf16.msra.mxu0 %v1298_v34  ;;  %1225 = vmatpush1.bf16.msra.mxu1 %v1298_v34 }
  0x56   : > { %738 = vmatprep.subr.bf16.mxu0 %v1299_v35  ;;  %1210 = vmatprep.subr.bf16.mxu1 %v1299_v35 }
  0x59   : > { %739 = vmatpush1.bf16.msra.mxu0 %v1301_v36  ;;  %1226 = vmatpush1.bf16.msra.mxu1 %v1301_v36 }
  0x5a   : > { %740 = vmatprep.subr.bf16.mxu0 %v1302_v37  ;;  %1211 = vmatprep.subr.bf16.mxu1 %v1302_v37  ;;  %v409_v37 = vld [vmem:[#allocation2 + $0x38] sm:$0xff] }
  0x5d   : > { %741 = vmatpush1.bf16.msra.mxu0 %v1304_v38  ;;  %1227 = vmatpush1.bf16.msra.mxu1 %v1304_v38  ;;  %v425_v38 = vld [vmem:[#allocation2 + $0xb8] sm:$0xff] }
  0x5e   : > { %742 = vmatprep.subr.bf16.mxu0 %v1305_v39  ;;  %1212 = vmatprep.subr.bf16.mxu1 %v1305_v39 }
  0x61   : > { %743 = vmatpush1.bf16.msra.mxu0 %v1307_v40  ;;  %1228 = vmatpush1.bf16.msra.mxu1 %v1307_v40 }
  0x62   : > { %744 = vmatprep.subr.bf16.mxu0 %v1308_v41  ;;  %1213 = vmatprep.subr.bf16.mxu1 %v1308_v41 }
  0x65   : > { %745 = vmatpush1.bf16.msra.mxu0 %v1310_v42  ;;  %1229 = vmatpush1.bf16.msra.mxu1 %v1310_v42 }
  0x66   : > { %746 = vmatprep.subr.bf16.mxu0 %v1311_v43  ;;  %1214 = vmatprep.subr.bf16.mxu1 %v1311_v43 }
  0x69   : > { %747 = vmatpush1.bf16.msra.mxu0 %v1313_v44  ;;  %1230 = vmatpush1.bf16.msra.mxu1 %v1313_v44 }
  0x6a   : > { %748 = vmatprep.subr.bf16.mxu0 %v1314_v45  ;;  %1215 = vmatprep.subr.bf16.mxu1 %v1314_v45 }
  0x6d   : > { %749 = vmatpush1.bf16.msra.mxu0 %v1316_v46  ;;  %1231 = vmatpush1.bf16.msra.mxu1 %v1316_v46 }
  0x6e   : > { %750 = vmatprep.subr.bf16.mxu0 %v1317_v47  ;;  %1216 = vmatprep.subr.bf16.mxu1 %v1317_v47 }
  0x71   : > { %751 = vmatpush1.bf16.msra.mxu0 %v1319_v48  ;;  %1232 = vmatpush1.bf16.msra.mxu1 %v1319_v48 }
  0x72   : > { %752 = vmatprep.subr.bf16.mxu0 %v1320_v49  ;;  %1217 = vmatprep.subr.bf16.mxu1 %v1320_v49  ;;  %v410_v49 = vld [vmem:[#allocation2 + $0x40] sm:$0xff] }
  0x75   : > { %753 = vmatpush1.bf16.msra.mxu0 %v1322_v50  ;;  %1233 = vmatpush1.bf16.msra.mxu1 %v1322_v50  ;;  %v426_v50 = vld [vmem:[#allocation2 + $0xc0] sm:$0xff] }
  0x78   : > { %755 = vmatmul.mubr.bf16.vlgmr.msra.gmra.mrb[0].mxu0 %v1323_v51  ;;  %795 = vmatmul.mubr.bf16.vlgmr.msra.gmra.mrb[0].mxu1 %v1326_v52  ;;  %v411_v51 = vld [vmem:[#allocation2 + $0x48] sm:$0xff] }
  0x79   : > { %764 = vmatprep.mubr.bf16.mxu0 %v1329_v53  ;;  %804 = vmatprep.mubr.bf16.mxu1 %v1331_v54  ;;  %v427_v52 = vld [vmem:[#allocation2 + $0xc8] sm:$0xff] }
  0x80   : > { %765 = vmatmul.mubr.bf16.gmra.mrb[4].mxu0 %v1333_v55  ;;  %805 = vmatmul.mubr.bf16.gmra.mrb[4].mxu1 %v1334_v56  ;;  %v412_v55 = vld [vmem:[#allocation2 + $0x50] sm:$0xff] }
  0x81   : > { %774 = vmatprep.mubr.bf16.mxu0 %v1335_v57  ;;  %814 = vmatprep.mubr.bf16.mxu1 %v1337_v58  ;;  %v428_v56 = vld [vmem:[#allocation2 + $0xd0] sm:$0xff] }
  0x88   : > { %775 = vmatmul.mubr.bf16.gmra.mrb[8].mxu0 %v1339_v59  ;;  %815 = vmatmul.mubr.bf16.gmra.mrb[8].mxu1 %v1340_v60 }
  0x89   : > { %784 = vmatprep.mubr.bf16.mxu0 %v1341_v61  ;;  %824 = vmatprep.mubr.bf16.mxu1 %v1343_v62  ;;  %v413_v61 = vld [vmem:[#allocation2 + $0x58] sm:$0xff] }
  0x8a   : > { %v429_v62 = vld [vmem:[#allocation2 + $0xd8] sm:$0xff] }
  0x90   : > { %785 = vmatmul.mubr.bf16.gmra.mrb[12].mxu0 %v1345_v63  ;;  %825 = vmatmul.mubr.bf16.gmra.mrb[12].mxu1 %v1346_v0 }
 0x14b   : > { %v756_v5 = vpop.f32.mrb[0].mxu0  ;;  %v796_v6 = vpop.f32.mrb[0].mxu1 }
 0x14c   : > { %v835_v9 = vadd.f32 %v756_v5, %v402_v1  ;;  %v851_v10 = vadd.f32 %v796_v6, %v418_v2  ;;  %v758_v11 = vpop.f32.mrb[1].mxu0  ;;  %v798_v12 = vpop.f32.mrb[1].mxu1 }
 0x14d   : > { %v836_v15 = vadd.f32 %v758_v11, %v403_v3  ;;  %v852_v16 = vadd.f32 %v798_v12, %v419_v4  ;;  %v760_v17 = vpop.f32.mrb[2].mxu0  ;;  %v800_v18 = vpop.f32.mrb[2].mxu1  ;;  %v415_v11 = vld [vmem:[#allocation2 + $0x68] sm:$0xff] }
 0x14e   : > { %867 = vst [vmem:[#allocation2] sm:$0xff] %v835_v9  ;;  %883 = vst [vmem:[#allocation2 + $0x80] sm:$0xff] %v851_v10  ;;  %v837_v19 = vadd.f32 %v760_v17, %v404_v7  ;;  %v853_v20 = vadd.f32 %v800_v18, %v420_v8  ;;  %v762_v21 = vpop.f32.mrb[3].mxu0  ;;  %v802_v22 = vpop.f32.mrb[3].mxu1  ;;  %v414_v9 = vld [vmem:[#allocation2 + $0x60] sm:$0xff]  ;;  %v431_v12 = vld [vmem:[#allocation2 + $0xe8] sm:$0xff] }
 0x14f   : > { %868 = vst [vmem:[#allocation2 + $0x8] sm:$0xff] %v836_v15  ;;  %884 = vst [vmem:[#allocation2 + $0x88] sm:$0xff] %v852_v16  ;;  %v838_v23 = vadd.f32 %v762_v21, %v405_v13  ;;  %v854_v24 = vadd.f32 %v802_v22, %v421_v14  ;;  %v430_v10 = vld [vmem:[#allocation2 + $0xe0] sm:$0xff]  ;;  %v416_v15 = vld [vmem:[#allocation2 + $0x70] sm:$0xff] }
 0x150   : > { %869 = vst [vmem:[#allocation2 + $0x10] sm:$0xff] %v837_v19  ;;  %885 = vst [vmem:[#allocation2 + $0x90] sm:$0xff] %v853_v20  ;;  %v432_v16 = vld [vmem:[#allocation2 + $0xf0] sm:$0xff]  ;;  %v417_v21 = vld [vmem:[#allocation2 + $0x78] sm:$0xff] }
 0x151   : > { %870 = vst [vmem:[#allocation2 + $0x18] sm:$0xff] %v838_v23  ;;  %886 = vst [vmem:[#allocation2 + $0x98] sm:$0xff] %v854_v24  ;;  %v433_v22 = vld [vmem:[#allocation2 + $0xf8] sm:$0xff] }
 0x153   : > { %v766_v29 = vpop.f32.mrb[4].mxu0  ;;  %v806_v30 = vpop.f32.mrb[4].mxu1 }
 0x154   : > { %v839_v33 = vadd.f32 %v766_v29, %v406_v25  ;;  %v855_v34 = vadd.f32 %v806_v30, %v422_v26  ;;  %v768_v35 = vpop.f32.mrb[5].mxu0  ;;  %v808_v36 = vpop.f32.mrb[5].mxu1 }
 0x155   : > { %v840_v39 = vadd.f32 %v768_v35, %v407_v27  ;;  %v856_v40 = vadd.f32 %v808_v36, %v423_v28  ;;  %v770_v41 = vpop.f32.mrb[6].mxu0  ;;  %v810_v42 = vpop.f32.mrb[6].mxu1  ;;  %v903_v36 = vld [vmem:[#allocation2] sm:$0xff] (!%p1195_p11) }
 0x156   : > { %871 = vst [vmem:[#allocation2 + $0x20] sm:$0xff] %v839_v33  ;;  %887 = vst [vmem:[#allocation2 + $0xa0] sm:$0xff] %v855_v34  ;;  %v841_v43 = vadd.f32 %v770_v41, %v408_v31  ;;  %v857_v44 = vadd.f32 %v810_v42, %v424_v32  ;;  %v772_v45 = vpop.f32.mrb[7].mxu0  ;;  %v812_v46 = vpop.f32.mrb[7].mxu1  ;;  %v937_v33 = vlaneseq (!%p1195_p11)  ;;  %v935_v34 = vld [vmem:[%s1682_s2] sm:$0x3] (!%p1195_p11) }
 0x157   : > { %872 = vst [vmem:[#allocation2 + $0x28] sm:$0xff] %v840_v39  ;;  %888 = vst [vmem:[#allocation2 + $0xa8] sm:$0xff] %v856_v40  ;;  %v842_v47 = vadd.f32 %v772_v45, %v409_v37  ;;  %v858_v48 = vadd.f32 %v812_v46, %v425_v38  ;;  %v904_v37 = vld [vmem:[#allocation2 + $0x8] sm:$0xff] (!%p1195_p11)  ;;  %v905_v38 = vld [vmem:[#allocation2 + $0x10] sm:$0xff] (!%p1195_p11) }
 0x158   : > { %873 = vst [vmem:[#allocation2 + $0x30] sm:$0xff] %v841_v43  ;;  %889 = vst [vmem:[#allocation2 + $0xb0] sm:$0xff] %v857_v44  ;;  %v938_v35 = vshrl.u32 (!%p1195_p11), %v937_v33, 7  ;;  %v906_v39 = vld [vmem:[#allocation2 + $0x18] sm:$0xff] (!%p1195_p11) }
 0x159   : > { %874 = vst [vmem:[#allocation2 + $0x38] sm:$0xff] %v842_v47  ;;  %890 = vst [vmem:[#allocation2 + $0xb8] sm:$0xff] %v858_v48 }
 0x15a   : > { %v939_v40 = vsub.s32 (!%p1195_p11), 0, %v938_v35  ;;  %v943_v41 = vsub.s32 (!%p1195_p11), 1, %v938_v35 }
 0x15b   : > { %v776_v53 = vpop.f32.mrb[8].mxu0  ;;  %v816_v54 = vpop.f32.mrb[8].mxu1 }
 0x15c   : > { %v843_v57 = vadd.f32 %v776_v53, %v410_v49  ;;  %v859_v58 = vadd.f32 %v816_v54, %v426_v50  ;;  %v778_v59 = vpop.f32.mrb[9].mxu0  ;;  %v818_v60 = vpop.f32.mrb[9].mxu1  ;;  %v1533_v49 = vrot.slane (!%p1195_p11), %v935_v34, %v939_v40  ;;  %v1535_v50 = vrot.slane (!%p1195_p11), %v935_v34, %v943_v41 }
 0x15d   : > { %v844_v63 = vadd.f32 %v778_v59, %v411_v51  ;;  %v860_v0 = vadd.f32 %v818_v60, %v427_v52  ;;  %v780_v1 = vpop.f32.mrb[10].mxu0  ;;  %v820_v2 = vpop.f32.mrb[10].mxu1  ;;  %v907_v42 = vld [vmem:[#allocation2 + $0x20] sm:$0xff] (!%p1195_p11) }
 0x15e   : > { %875 = vst [vmem:[#allocation2 + $0x40] sm:$0xff] %v843_v57  ;;  %891 = vst [vmem:[#allocation2 + $0xc0] sm:$0xff] %v859_v58  ;;  %v845_v3 = vadd.f32 %v780_v1, %v412_v55  ;;  %v861_v4 = vadd.f32 %v820_v2, %v428_v56  ;;  %v782_v5 = vpop.f32.mrb[11].mxu0  ;;  %v822_v6 = vpop.f32.mrb[11].mxu1  ;;  %v908_v43 = vld [vmem:[#allocation2 + $0x28] sm:$0xff] (!%p1195_p11)  ;;  %v919_v56 = vld [vmem:[#allocation2 + $0x80] sm:$0xff] (!%p1195_p11)  ;;  %v947_v57 = vadd.f32 (!%p1195_p11), %v1533_v49, %v903_v36 }
 0x15f   : > { %876 = vst [vmem:[#allocation2 + $0x48] sm:$0xff] %v844_v63  ;;  %892 = vst [vmem:[#allocation2 + $0xc8] sm:$0xff] %v860_v0  ;;  %v846_v7 = vadd.f32 %v782_v5, %v413_v61  ;;  %v862_v8 = vadd.f32 %v822_v6, %v429_v62  ;;  %v909_v44 = vld [vmem:[#allocation2 + $0x30] sm:$0xff] (!%p1195_p11)  ;;  %v948_v58 = vadd.f32 (!%p1195_p11), %v1535_v50, %v904_v37  ;;  %v920_v61 = vld [vmem:[#allocation2 + $0x88] sm:$0xff] (!%p1195_p11) }
 0x160   : > { %877 = vst [vmem:[#allocation2 + $0x50] sm:$0xff] %v845_v3  ;;  %893 = vst [vmem:[#allocation2 + $0xd0] sm:$0xff] %v861_v4  ;;  %v910_v45 = vld [vmem:[#allocation2 + $0x38] sm:$0xff] (!%p1195_p11)  ;;  %v949_v59 = vadd.f32 (!%p1195_p11), %v1533_v49, %v905_v38  ;;  %v950_v60 = vadd.f32 (!%p1195_p11), %v1535_v50, %v906_v39  ;;  %v921_v62 = vld [vmem:[#allocation2 + $0x90] sm:$0xff] (!%p1195_p11)  ;;  %v951_v0 = vadd.f32 (!%p1195_p11), %v1533_v49, %v907_v42 }
 0x161   : > { %878 = vst [vmem:[#allocation2 + $0x58] sm:$0xff] %v846_v7  ;;  %894 = vst [vmem:[#allocation2 + $0xd8] sm:$0xff] %v862_v8  ;;  %v922_v63 = vld [vmem:[#allocation2 + $0x98] sm:$0xff] (!%p1195_p11)  ;;  %v952_v1 = vadd.f32 (!%p1195_p11), %v1535_v50, %v908_v43  ;;  %v953_v2 = vadd.f32 (!%p1195_p11), %v1533_v49, %v909_v44  ;;  %v954_v3 = vadd.f32 (!%p1195_p11), %v1535_v50, %v910_v45  ;;  %v923_v4 = vld [vmem:[#allocation2 + $0xa0] sm:$0xff] (!%p1195_p11) }
 0x162   : > { %v924_v5 = vld [vmem:[#allocation2 + $0xa8] sm:$0xff] (!%p1195_p11)  ;;  %v925_v6 = vld [vmem:[#allocation2 + $0xb0] sm:$0xff] (!%p1195_p11)  ;;  %979 = vst [vmem:[%s1683_s3] sm:$0xff] (!%p1195_p11), %v947_v57  ;;  %980 = vst [vmem:[%s1683_s3 + $0x8] sm:$0xff] (!%p1195_p11), %v948_v58 }
 0x163   : > { %v786_v13 = vpop.f32.mrb[12].mxu0  ;;  %v826_v14 = vpop.f32.mrb[12].mxu1  ;;  %902 = sbr.rel (%p1195_p11) target bundleno = 374 (0x176), region = 78  ;;  %981 = vst [vmem:[%s1683_s3 + $0x10] sm:$0xff] (!%p1195_p11), %v949_v59  ;;  %982 = vst [vmem:[%s1683_s3 + $0x18] sm:$0xff] (!%p1195_p11), %v950_v60 }
 0x164   : > { %v847_v17 = vadd.f32 %v786_v13, %v414_v9  ;;  %v863_v18 = vadd.f32 %v826_v14, %v430_v10  ;;  %v788_v19 = vpop.f32.mrb[13].mxu0  ;;  %v828_v20 = vpop.f32.mrb[13].mxu1  ;;  %983 = vst [vmem:[%s1683_s3 + $0x20] sm:$0xff] (!%p1195_p11), %v951_v0  ;;  %984 = vst [vmem:[%s1683_s3 + $0x28] sm:$0xff] (!%p1195_p11), %v952_v1 }
 0x165   : > { %v848_v23 = vadd.f32 %v788_v19, %v415_v11  ;;  %v864_v24 = vadd.f32 %v828_v20, %v431_v12  ;;  %v790_v25 = vpop.f32.mrb[14].mxu0  ;;  %v830_v26 = vpop.f32.mrb[14].mxu1  ;;  %v911_v46 = vld [vmem:[#allocation2 + $0x40] sm:$0xff] (!%p1195_p11)  ;;  %v926_v11 = vld [vmem:[#allocation2 + $0xb8] sm:$0xff] (!%p1195_p11)  ;;  %985 = vst [vmem:[%s1683_s3 + $0x30] sm:$0xff] (!%p1195_p11), %v953_v2  ;;  %986 = vst [vmem:[%s1683_s3 + $0x38] sm:$0xff] (!%p1195_p11), %v954_v3 }
 0x166   : > { %879 = vst [vmem:[#allocation2 + $0x60] sm:$0xff] %v847_v17  ;;  %895 = vst [vmem:[#allocation2 + $0xe0] sm:$0xff] %v863_v18  ;;  %v849_v27 = vadd.f32 %v790_v25, %v416_v15  ;;  %v865_v28 = vadd.f32 %v830_v26, %v432_v16  ;;  %v792_v29 = vpop.f32.mrb[15].mxu0  ;;  %v832_v30 = vpop.f32.mrb[15].mxu1  ;;  %v912_v47 = vld [vmem:[#allocation2 + $0x48] sm:$0xff] (!%p1195_p11)  ;;  %v955_v7 = vadd.f32 (!%p1195_p11), %v1533_v49, %v911_v46  ;;  %v927_v12 = vld [vmem:[#allocation2 + $0xc0] sm:$0xff] (!%p1195_p11) }
 0x167   : > { %880 = vst [vmem:[#allocation2 + $0x68] sm:$0xff] %v848_v23  ;;  %896 = vst [vmem:[#allocation2 + $0xe8] sm:$0xff] %v864_v24  ;;  %v850_v31 = vadd.f32 %v792_v29, %v417_v21  ;;  %v866_v32 = vadd.f32 %v832_v30, %v433_v22  ;;  %v913_v48 = vld [vmem:[#allocation2 + $0x50] sm:$0xff] (!%p1195_p11)  ;;  %v956_v8 = vadd.f32 (!%p1195_p11), %v1535_v50, %v912_v47  ;;  %v928_v13 = vld [vmem:[#allocation2 + $0xc8] sm:$0xff] (!%p1195_p11) }
 0x168   : > { %881 = vst [vmem:[#allocation2 + $0x70] sm:$0xff] %v849_v27  ;;  %897 = vst [vmem:[#allocation2 + $0xf0] sm:$0xff] %v865_v28  ;;  %v914_v51 = vld [vmem:[#allocation2 + $0x58] sm:$0xff] (!%p1195_p11)  ;;  %v957_v9 = vadd.f32 (!%p1195_p11), %v1533_v49, %v913_v48  ;;  %v929_v18 = vld [vmem:[#allocation2 + $0xd0] sm:$0xff] (!%p1195_p11)  ;;  %v963_v21 = vadd.f32 (!%p1195_p11), %v1533_v49, %v919_v56  ;;  %v964_v22 = vadd.f32 (!%p1195_p11), %v1535_v50, %v920_v61 }
 0x169   : > { %882 = vst [vmem:[#allocation2 + $0x78] sm:$0xff] %v850_v31  ;;  %898 = vst [vmem:[#allocation2 + $0xf8] sm:$0xff] %v866_v32  ;;  %v958_v10 = vadd.f32 (!%p1195_p11), %v1535_v50, %v914_v51  ;;  %v930_v19 = vld [vmem:[#allocation2 + $0xd8] sm:$0xff] (!%p1195_p11)  ;;  %v965_v23 = vadd.f32 (!%p1195_p11), %v1533_v49, %v921_v62  ;;  %v966_v24 = vadd.f32 (!%p1195_p11), %v1535_v50, %v922_v63 }
 0x16a   : > { %987 = vst [vmem:[%s1683_s3 + $0x40] sm:$0xff] %v955_v7  ;;  %988 = vst [vmem:[%s1683_s3 + $0x48] sm:$0xff] %v956_v8  ;;  %v967_v28 = vadd.f32 %v1533_v49, %v923_v4  ;;  %v968_v29 = vadd.f32 %v1535_v50, %v924_v5  ;;  %v969_v30 = vadd.f32 %v1533_v49, %v925_v6 }
 0x16b   : > { %989 = vst [vmem:[%s1683_s3 + $0x50] sm:$0xff] %v957_v9  ;;  %990 = vst [vmem:[%s1683_s3 + $0x58] sm:$0xff] %v958_v10  ;;  %v970_v31 = vadd.f32 %v1535_v50, %v926_v11  ;;  %v971_v32 = vadd.f32 %v1533_v49, %v927_v12  ;;  %v972_v33 = vadd.f32 %v1535_v50, %v928_v13 }
 0x16c   : > { %995 = vst [vmem:[%s1683_s3 + $0x80] sm:$0xff] %v963_v21  ;;  %996 = vst [vmem:[%s1683_s3 + $0x88] sm:$0xff] %v964_v22  ;;  %v973_v34 = vadd.f32 %v1533_v49, %v929_v18  ;;  %v974_v35 = vadd.f32 %v1535_v50, %v930_v19 }
 0x16d   : > { %v915_v52 = vld [vmem:[#allocation2 + $0x60] sm:$0xff]  ;;  %997 = vst [vmem:[%s1683_s3 + $0x90] sm:$0xff] %v965_v23  ;;  %998 = vst [vmem:[%s1683_s3 + $0x98] sm:$0xff] %v966_v24 }
 0x16e   : > { %v916_v53 = vld [vmem:[#allocation2 + $0x68] sm:$0xff]  ;;  %v959_v14 = vadd.f32 %v1533_v49, %v915_v52  ;;  %v931_v20 = vld [vmem:[#allocation2 + $0xe0] sm:$0xff]  ;;  %999 = vst [vmem:[%s1683_s3 + $0xa0] sm:$0xff] %v967_v28  ;;  %1000 = vst [vmem:[%s1683_s3 + $0xa8] sm:$0xff] %v968_v29 }
 0x16f   : > { %v917_v54 = vld [vmem:[#allocation2 + $0x70] sm:$0xff]  ;;  %v960_v15 = vadd.f32 %v1535_v50, %v916_v53  ;;  %v932_v25 = vld [vmem:[#allocation2 + $0xe8] sm:$0xff]  ;;  %1001 = vst [vmem:[%s1683_s3 + $0xb0] sm:$0xff] %v969_v30  ;;  %1002 = vst [vmem:[%s1683_s3 + $0xb8] sm:$0xff] %v970_v31  ;;  %v975_v36 = vadd.f32 %v1533_v49, %v931_v20 }
 0x170   : > { %v918_v55 = vld [vmem:[#allocation2 + $0x78] sm:$0xff]  ;;  %v961_v16 = vadd.f32 %v1533_v49, %v917_v54  ;;  %v933_v26 = vld [vmem:[#allocation2 + $0xf0] sm:$0xff]  ;;  %991 = vst [vmem:[%s1683_s3 + $0x60] sm:$0xff] %v959_v14  ;;  %v976_v37 = vadd.f32 %v1535_v50, %v932_v25  ;;  %1003 = vst [vmem:[%s1683_s3 + $0xc0] sm:$0xff] %v971_v32 }
 0x171   : > { %v962_v17 = vadd.f32 %v1535_v50, %v918_v55  ;;  %v934_v27 = vld [vmem:[#allocation2 + $0xf8] sm:$0xff]  ;;  %992 = vst [vmem:[%s1683_s3 + $0x68] sm:$0xff] %v960_v15  ;;  %v977_v38 = vadd.f32 %v1533_v49, %v933_v26  ;;  %1004 = vst [vmem:[%s1683_s3 + $0xc8] sm:$0xff] %v972_v33 }
 0x172   : > { %993 = vst [vmem:[%s1683_s3 + $0x70] sm:$0xff] %v961_v16  ;;  %v978_v39 = vadd.f32 %v1535_v50, %v934_v27  ;;  %1005 = vst [vmem:[%s1683_s3 + $0xd0] sm:$0xff] %v973_v34 }
 0x173   : > { %994 = vst [vmem:[%s1683_s3 + $0x78] sm:$0xff] %v962_v17  ;;  %1006 = vst [vmem:[%s1683_s3 + $0xd8] sm:$0xff] %v974_v35 }
 0x174   : > { %1007 = vst [vmem:[%s1683_s3 + $0xe0] sm:$0xff] %v975_v36  ;;  %1008 = vst [vmem:[%s1683_s3 + $0xe8] sm:$0xff] %v976_v37 }
 0x175   : > { %1009 = vst [vmem:[%s1683_s3 + $0xf0] sm:$0xff] %v977_v38  ;;  %1010 = vst [vmem:[%s1683_s3 + $0xf8] sm:$0xff] %v978_v39 }
 0x176 PF: > { %s13_s16 = sadd.s32 1, %s1385_s16   ;;  %s1684_s12 = smov %s1373_s13 }
 0x177   : > { %p10_p12 = scmp.ge.s32.totalorder %s13_s16, 4   ;;  %s1685_s13 = smov %s1443_s20 }
 0x178   : > { %s1686_s14 = smov %s1381_s15  ;;  %s1687_s15 = smov %s1689_s17 }
 0x179   :  { %12 = sbr.rel (!%p10_p12) target bundleno = 3 (0x3), region = 119 }

// kernel: generator_forward.37
= control target key start
LH: loop header
LB: loop body
LE: loop exit
PB: predicated region body
PF: predicated region fallthrough
CT: control target
= control target key end

     0   :  { %s1513_s12 = smov 0   ;;  %s1515_s13 = smov 0   ;;  %s1774_s0 = inlined_call_operand.vmem [shape: bf16[512,3200], index: 0, kind: input, shape index: {}]   ;;  %s1775_s1 = inlined_call_operand.vmem [shape: bf16[3200,128], index: 1, kind: input, shape index: {}]   ;;  %s1776_s2 = inlined_call_operand.vmem [shape: f32[1,128], index: 2, kind: input, shape index: {}]   ;;  %s1777_s3 = inlined_call_operand.vmem [shape: f32[512,128], index: 3, kind: output, shape index: {}]  }
   0x1   :  { %s1517_s14 = smov 0   ;;  %s1519_s15 = smov 0  }
   0x2   :  { %s1521_s16 = smov 0   ;;  %s1523_s17 = smov 0  }
   0x3   :  { %s1525_s18 = smov 0  }
   0x4 LB: > { %s25_s19 = sadd.s32 1, %s1482_s16  ;;  %s32_s20 = sadd.s32 1, %s1486_s17  ;;  %s1490_s18 = sphi %s1525_s18, %s13_s18   ;;  %s1486_s17 = sphi %s1523_s17, %s1783_s17   ;;  %s1482_s16 = sphi %s1521_s16, %s1782_s16   ;;  %s1478_s15 = sphi %s1519_s15, %s1781_s15   ;;  %s1474_s14 = sphi %s1517_s14, %s1780_s14   ;;  %s1470_s13 = sphi %s1515_s13, %s1779_s13   ;;  %s1466_s12 = sphi %s1513_s12, %s1778_s12  }
   0x5   : > { %p26_p0 = scmp.ge.s32.totalorder %s25_s19, 25  ;;  %p48_p1 = scmp.ne.s32.totalorder %s1470_s13, %s1466_s12 }
   0x6   : > { %p49_p2 = scmp.eq.s32.totalorder %s1490_s18, 0  ;;  %s41_s24 = sadd.s32 1, %s1470_s13 }
   0x7   : > { %s1785_s19 = smov (%p26_p0, %s25_s19), 0  ;;  %s1787_s20 = smov (!%p26_p0, %s32_s20), %s1486_s17 }
   0x8   : > { %p50_p3 = por %p49_p2, %p48_p1  ;;  %p34_p4 = scmp.ge.s32.totalorder %s1787_s20, 2 }
   0x9   : > { %s37_s21 = ssub.s32 %s1482_s16, %s1785_s19  ;;  %p1162_p6 = scmp.ge.s32.totalorder %s1490_s18, 50 }
   0xa   : > { %s1789_s20 = smov (%p34_p4, %s1787_s20), 0 }
   0xb   : > { %s36_s22 = ssub.s32 %s1486_s17, %s1789_s20  ;;  %162 = sbr.rel (%p1162_p6) target bundleno = 46 (0x2e), region = 20 }
   0xc   : > { %s38_s23 = sor.u32 %s37_s21, %s36_s22 }
   0xd   : > { %p39_p5 = scmp.eq.s32.totalorder %s38_s23, 0 }
   0xf   : > { %s1564_s25 = scalar_select %p39_p5, %s1470_s13, %s41_s24  }
  0x12   : > { %165 = sbr.rel (!%p50_p3) target bundleno = 46 (0x2e), region = 24  ;;  %s167_s26 = sand.u32 (%p50_p3), 1, %s1470_s13  }
  0x13   : > { %s1290_s27 = smul.u32 (%p50_p3), 800, %s1486_s17  ;;  %s1163_s28 = sshll.u32 (%p50_p3), %s167_s26, 7 }
  0x14   : > { %s1578_s7 = scalar_lea.vmem (%p50_p3), [#allocation3], %s1163_s28 }
  0x15   : > { %s172_s29 = sadd.s32 (%p50_p3), %s1482_s16, %s1290_s27 }
  0x16   : > { %s1166_s30 = sshll.u32 (%p50_p3), %s172_s29, 2 }
  0x17   : > { %s1573_s6 = scalar_lea.vmem (%p50_p3), %s1774_s0, %s1166_s30 }
  0x18   : > { %v190_v0 = vld [vmem:[%s1573_s6] sm:$0xf] (%p50_p3)  ;;  %v192_v1 = vld [vmem:[%s1573_s6 + $0x64] sm:$0xf] (%p50_p3)  ;;  %v194_v2 = vld [vmem:[%s1573_s6 + $0xc8] sm:$0xf] (%p50_p3) }
  0x19   : > { %191 = vst [vmem:[%s1578_s7] sm:$0xf] %v190_v0  ;;  %193 = vst [vmem:[%s1578_s7 + $0x4] sm:$0xf] %v192_v1  ;;  %v196_v3 = vld [vmem:[%s1573_s6 + $0x12c] sm:$0xf] }
  0x1a   : > { %195 = vst [vmem:[%s1578_s7 + $0x8] sm:$0xf] %v194_v2  ;;  %v198_v4 = vld [vmem:[%s1573_s6 + $0x190] sm:$0xf]  ;;  %v200_v5 = vld [vmem:[%s1573_s6 + $0x1f4] sm:$0xf] }
  0x1b   : > { %197 = vst [vmem:[%s1578_s7 + $0xc] sm:$0xf] %v196_v3  ;;  %199 = vst [vmem:[%s1578_s7 + $0x10] sm:$0xf] %v198_v4  ;;  %v202_v6 = vld [vmem:[%s1573_s6 + $0x258] sm:$0xf] }
  0x1c   : > { %201 = vst [vmem:[%s1578_s7 + $0x14] sm:$0xf] %v200_v5  ;;  %v204_v7 = vld [vmem:[%s1573_s6 + $0x2bc] sm:$0xf]  ;;  %v206_v8 = vld [vmem:[%s1573_s6 + $0x320] sm:$0xf] }
  0x1d   : > { %203 = vst [vmem:[%s1578_s7 + $0x18] sm:$0xf] %v202_v6  ;;  %205 = vst [vmem:[%s1578_s7 + $0x1c] sm:$0xf] %v204_v7  ;;  %v208_v9 = vld [vmem:[%s1573_s6 + $0x384] sm:$0xf] }
  0x1e   : > { %207 = vst [vmem:[%s1578_s7 + $0x20] sm:$0xf] %v206_v8  ;;  %v210_v10 = vld [vmem:[%s1573_s6 + $0x3e8] sm:$0xf]  ;;  %v212_v11 = vld [vmem:[%s1573_s6 + $0x44c] sm:$0xf] }
  0x1f   : > { %209 = vst [vmem:[%s1578_s7 + $0x24] sm:$0xf] %v208_v9  ;;  %211 = vst [vmem:[%s1578_s7 + $0x28] sm:$0xf] %v210_v10  ;;  %v214_v12 = vld [vmem:[%s1573_s6 + $0x4b0] sm:$0xf] }
  0x20   : > { %213 = vst [vmem:[%s1578_s7 + $0x2c] sm:$0xf] %v212_v11  ;;  %v216_v13 = vld [vmem:[%s1573_s6 + $0x514] sm:$0xf]  ;;  %v218_v14 = vld [vmem:[%s1573_s6 + $0x578] sm:$0xf] }
  0x21   : > { %215 = vst [vmem:[%s1578_s7 + $0x30] sm:$0xf] %v214_v12  ;;  %217 = vst [vmem:[%s1578_s7 + $0x34] sm:$0xf] %v216_v13  ;;  %v220_v15 = vld [vmem:[%s1573_s6 + $0x5dc] sm:$0xf] }
  0x22   : > { %219 = vst [vmem:[%s1578_s7 + $0x38] sm:$0xf] %v218_v14  ;;  %v222_v16 = vld [vmem:[%s1573_s6 + $0x640] sm:$0xf]  ;;  %v224_v17 = vld [vmem:[%s1573_s6 + $0x6a4] sm:$0xf] }
  0x23   : > { %221 = vst [vmem:[%s1578_s7 + $0x3c] sm:$0xf] %v220_v15  ;;  %223 = vst [vmem:[%s1578_s7 + $0x40] sm:$0xf] %v222_v16  ;;  %v226_v18 = vld [vmem:[%s1573_s6 + $0x708] sm:$0xf] }
  0x24   : > { %225 = vst [vmem:[%s1578_s7 + $0x44] sm:$0xf] %v224_v17  ;;  %v228_v19 = vld [vmem:[%s1573_s6 + $0x76c] sm:$0xf]  ;;  %v230_v20 = vld [vmem:[%s1573_s6 + $0x7d0] sm:$0xf] }
  0x25   : > { %227 = vst [vmem:[%s1578_s7 + $0x48] sm:$0xf] %v226_v18  ;;  %229 = vst [vmem:[%s1578_s7 + $0x4c] sm:$0xf] %v228_v19  ;;  %v232_v21 = vld [vmem:[%s1573_s6 + $0x834] sm:$0xf] }
  0x26   : > { %231 = vst [vmem:[%s1578_s7 + $0x50] sm:$0xf] %v230_v20  ;;  %v234_v22 = vld [vmem:[%s1573_s6 + $0x898] sm:$0xf]  ;;  %v236_v23 = vld [vmem:[%s1573_s6 + $0x8fc] sm:$0xf] }
  0x27   : > { %233 = vst [vmem:[%s1578_s7 + $0x54] sm:$0xf] %v232_v21  ;;  %235 = vst [vmem:[%s1578_s7 + $0x58] sm:$0xf] %v234_v22  ;;  %v238_v24 = vld [vmem:[%s1573_s6 + $0x960] sm:$0xf] }
  0x28   : > { %237 = vst [vmem:[%s1578_s7 + $0x5c] sm:$0xf] %v236_v23  ;;  %v240_v25 = vld [vmem:[%s1573_s6 + $0x9c4] sm:$0xf]  ;;  %v242_v26 = vld [vmem:[%s1573_s6 + $0xa28] sm:$0xf] }
  0x29   : > { %239 = vst [vmem:[%s1578_s7 + $0x60] sm:$0xf] %v238_v24  ;;  %241 = vst [vmem:[%s1578_s7 + $0x64] sm:$0xf] %v240_v25  ;;  %v244_v27 = vld [vmem:[%s1573_s6 + $0xa8c] sm:$0xf] }
  0x2a   : > { %243 = vst [vmem:[%s1578_s7 + $0x68] sm:$0xf] %v242_v26  ;;  %v246_v28 = vld [vmem:[%s1573_s6 + $0xaf0] sm:$0xf]  ;;  %v248_v29 = vld [vmem:[%s1573_s6 + $0xb54] sm:$0xf] }
  0x2b   : > { %245 = vst [vmem:[%s1578_s7 + $0x6c] sm:$0xf] %v244_v27  ;;  %247 = vst [vmem:[%s1578_s7 + $0x70] sm:$0xf] %v246_v28  ;;  %v250_v30 = vld [vmem:[%s1573_s6 + $0xbb8] sm:$0xf] }
  0x2c   : > { %249 = vst [vmem:[%s1578_s7 + $0x74] sm:$0xf] %v248_v29  ;;  %v252_v31 = vld [vmem:[%s1573_s6 + $0xc1c] sm:$0xf]  ;;  %251 = vst [vmem:[%s1578_s7 + $0x78] sm:$0xf] %v250_v30 }
  0x2d   : > { %253 = vst [vmem:[%s1578_s7 + $0x7c] sm:$0xf] %v252_v31 }
  0x2e PF: > { %p1167_p7 = scmp.ge.s32.totalorder %s1490_s18, 1  ;;  %p351_p8 = scmp.lt.s32.totalorder %s1490_s18, 51 }
  0x30   : > { %p352_p9 = pnand %p1167_p7, %p351_p8 }
  0x31   : > { %s358_s8 = sand.u32 (!%p352_p9), 1, %s1466_s12   ;;  %s1169_s9 = sshll.u32 (!%p352_p9), %s1474_s14, 4 }
  0x32   : > { %355 = sbr.rel (%p352_p9) target bundleno = 389 (0x185), region = 69  ;;  %s1168_s10 = sshll.u32 (!%p352_p9), %s358_s8, 7 }
  0x33   : > { %p397_p10 = scmp.lt.s32.totalorder (!%p352_p9), %s1169_s9, 399  ;;  %s1171_s11 = sshll.u32 (!%p352_p9), %s1478_s15, 5 }
  0x34   : > { %p409_p11 = scmp.lt.s32.totalorder (!%p352_p9), %s1171_s11, 63  ;;  %s1656_s12 = scalar_lea.vmem (!%p352_p9), [#allocation3], %s1168_s10 }
  0x35   : > { %p1173_p12 = scmp.ne.s32.totalorder (!%p352_p9), %s1474_s14, 0 }
  0x39   : > { %s1791_s9 = smov (!%p397_p10, %s1169_s9), 399  ;;  %s1793_s11 = smov (!%p409_p11, %s1171_s11), 63 }
  0x3a   : > { %s1170_s21 = sshll.u32 %s1791_s9, 2  ;;  %s1172_s26 = sshll.u32 %s1793_s11, 3  ;;  %v1492_v32 = vmov (!%p1173_p12), 0.0  }
  0x3b   : > { %s1649_s24 = scalar_lea.vmem %s1775_s1, %s1170_s21  ;;  %s1654_s29 = scalar_lea.vmem %s1777_s3, %s1172_s26  ;;  %422 = vst [vmem:[#allocation2] sm:$0xff] (!%p1173_p12), %v1492_v32  ;;  %423 = vst [vmem:[#allocation2 + $0x8] sm:$0xff] (!%p1173_p12), %v1492_v32 }
  0x3c   : > { %421 = sbr.rel (%p1173_p12) target bundleno = 75 (0x4b), region = 77  ;;  %424 = vst [vmem:[#allocation2 + $0x10] sm:$0xff] (!%p1173_p12), %v1492_v32  ;;  %425 = vst [vmem:[#allocation2 + $0x18] sm:$0xff] (!%p1173_p12), %v1492_v32 }
  0x3d   : > { %426 = vst [vmem:[#allocation2 + $0x20] sm:$0xff] (!%p1173_p12), %v1492_v32  ;;  %427 = vst [vmem:[#allocation2 + $0x28] sm:$0xff] (!%p1173_p12), %v1492_v32 }
  0x3e   : > { %428 = vst [vmem:[#allocation2 + $0x30] sm:$0xff] (!%p1173_p12), %v1492_v32  ;;  %429 = vst [vmem:[#allocation2 + $0x38] sm:$0xff] (!%p1173_p12), %v1492_v32 }
  0x3f   : > { %430 = vst [vmem:[#allocation2 + $0x40] sm:$0xff] (!%p1173_p12), %v1492_v32  ;;  %431 = vst [vmem:[#allocation2 + $0x48] sm:$0xff] (!%p1173_p12), %v1492_v32 }
  0x40   : > { %432 = vst [vmem:[#allocation2 + $0x50] sm:$0xff] (!%p1173_p12), %v1492_v32  ;;  %433 = vst [vmem:[#allocation2 + $0x58] sm:$0xff] (!%p1173_p12), %v1492_v32 }
  0x41   : > { %434 = vst [vmem:[#allocation2 + $0x60] sm:$0xff] (!%p1173_p12), %v1492_v32  ;;  %435 = vst [vmem:[#allocation2 + $0x68] sm:$0xff] (!%p1173_p12), %v1492_v32 }
  0x42   : > { %436 = vst [vmem:[#allocation2 + $0x70] sm:$0xff] (!%p1173_p12), %v1492_v32  ;;  %437 = vst [vmem:[#allocation2 + $0x78] sm:$0xff] (!%p1173_p12), %v1492_v32 }
  0x43   : > { %438 = vst [vmem:[#allocation2 + $0x80] sm:$0xff] %v1492_v32  ;;  %439 = vst [vmem:[#allocation2 + $0x88] sm:$0xff] %v1492_v32 }
  0x44   : > { %440 = vst [vmem:[#allocation2 + $0x90] sm:$0xff] %v1492_v32  ;;  %441 = vst [vmem:[#allocation2 + $0x98] sm:$0xff] %v1492_v32 }
  0x45   : > { %442 = vst [vmem:[#allocation2 + $0xa0] sm:$0xff] %v1492_v32  ;;  %443 = vst [vmem:[#allocation2 + $0xa8] sm:$0xff] %v1492_v32 }
  0x46   : > { %444 = vst [vmem:[#allocation2 + $0xb0] sm:$0xff] %v1492_v32  ;;  %445 = vst [vmem:[#allocation2 + $0xb8] sm:$0xff] %v1492_v32 }
  0x47   : > { %446 = vst [vmem:[#allocation2 + $0xc0] sm:$0xff] %v1492_v32  ;;  %447 = vst [vmem:[#allocation2 + $0xc8] sm:$0xff] %v1492_v32 }
  0x48   : > { %448 = vst [vmem:[#allocation2 + $0xd0] sm:$0xff] %v1492_v32  ;;  %449 = vst [vmem:[#allocation2 + $0xd8] sm:$0xff] %v1492_v32 }
  0x49   : > { %450 = vst [vmem:[#allocation2 + $0xe0] sm:$0xff] %v1492_v32  ;;  %451 = vst [vmem:[#allocation2 + $0xe8] sm:$0xff] %v1492_v32 }
  0x4a   : > { %452 = vst [vmem:[#allocation2 + $0xf0] sm:$0xff] %v1492_v32  ;;  %453 = vst [vmem:[#allocation2 + $0xf8] sm:$0xff] %v1492_v32 }
  0x4b PF: > { %v1348_v33 = vld [vmem:[%s1649_s24] sm:$0xff]   ;;  %v1349_v34 = vld [vmem:[%s1649_s24 + $0x8] sm:$0xff]   ;;  %v1350_v35 = vld [vmem:[%s1649_s24 + $0x10] sm:$0xff]   ;;  %p1198_p13 = scmp.ne.s32.totalorder %s1474_s14, 24 }
  0x4c   : > { %1226 = vmatprep.subr.bf16.mxu0 %v1348_v33  ;;  %1274 = vmatprep.subr.bf16.mxu1 %v1348_v33  ;;  %v1351_v36 = vld [vmem:[%s1649_s24 + $0x18] sm:$0xff]   ;;  %v1356_v37 = vld [vmem:[%s1656_s12] sm:$0xff]   ;;  %v1353_v40 = vld [vmem:[%s1649_s24 + $0x28] sm:$0xff]  }
  0x4d   : > { %1227 = vmatpush3.bf16.msra.mxu0 %v1348_v33  ;;  %1282 = vmatpush3.bf16.msra.mxu1 %v1348_v33  ;;  %v1357_v38 = vld [vmem:[%s1656_s12 + $0x40] sm:$0xff]   ;;  %v1354_v41 = vld [vmem:[%s1649_s24 + $0x30] sm:$0xff]   ;;  %v1355_v42 = vld [vmem:[%s1649_s24 + $0x38] sm:$0xff]  }
  0x4e   : > { %1228 = vmatprep.subr.bf16.mxu0 %v1349_v34  ;;  %1275 = vmatprep.subr.bf16.mxu1 %v1349_v34  ;;  %v1352_v39 = vld [vmem:[%s1649_s24 + $0x20] sm:$0xff]   ;;  %v1358_v43 = vld [vmem:[%s1656_s12 + $0x8] sm:$0xff]   ;;  %v1360_v45 = vld [vmem:[%s1656_s12 + $0x10] sm:$0xff]  }
  0x4f   : > { %1242 = vmatprep.mubr.bf16.mxu0 %v1356_v37  ;;  %1258 = vmatprep.mubr.bf16.mxu1 %v1357_v38  ;;  %v1359_v44 = vld [vmem:[%s1656_s12 + $0x48] sm:$0xff]   ;;  %v1361_v46 = vld [vmem:[%s1656_s12 + $0x50] sm:$0xff]   ;;  %v1362_v47 = vld [vmem:[%s1656_s12 + $0x18] sm:$0xff]  }
  0x50   : > { %v1363_v48 = vld [vmem:[%s1656_s12 + $0x58] sm:$0xff]   ;;  %v1364_v49 = vld [vmem:[%s1656_s12 + $0x20] sm:$0xff]   ;;  %v1366_v51 = vld [vmem:[%s1656_s12 + $0x28] sm:$0xff]  }
  0x51   : > { %1229 = vmatpush3.bf16.msra.mxu0 %v1349_v34  ;;  %1283 = vmatpush3.bf16.msra.mxu1 %v1349_v34  ;;  %v1365_v50 = vld [vmem:[%s1656_s12 + $0x60] sm:$0xff]   ;;  %v1367_v52 = vld [vmem:[%s1656_s12 + $0x68] sm:$0xff]   ;;  %v1368_v53 = vld [vmem:[%s1656_s12 + $0x30] sm:$0xff]  }
  0x52   : > { %1230 = vmatprep.subr.bf16.mxu0 %v1350_v35  ;;  %1276 = vmatprep.subr.bf16.mxu1 %v1350_v35  ;;  %v1369_v54 = vld [vmem:[%s1656_s12 + $0x70] sm:$0xff]   ;;  %v1370_v55 = vld [vmem:[%s1656_s12 + $0x38] sm:$0xff]   ;;  %v454_v59 = vld [vmem:[#allocation2] sm:$0xff] }
  0x53   : > { %v1371_v56 = vld [vmem:[%s1656_s12 + $0x78] sm:$0xff]   ;;  %v456_v57 = vld [vmem:[#allocation2 + $0x10] sm:$0xff]  ;;  %v470_v60 = vld [vmem:[#allocation2 + $0x80] sm:$0xff] }
  0x54   : > { %v472_v58 = vld [vmem:[#allocation2 + $0x90] sm:$0xff]  ;;  %v457_v63 = vld [vmem:[#allocation2 + $0x18] sm:$0xff]  ;;  %v455_v5 = vld [vmem:[#allocation2 + $0x8] sm:$0xff] }
  0x55   : > { %1231 = vmatpush3.bf16.msra.mxu0 %v1350_v35  ;;  %1284 = vmatpush3.bf16.msra.mxu1 %v1350_v35  ;;  %v473_v0 = vld [vmem:[#allocation2 + $0x98] sm:$0xff]  ;;  %v471_v6 = vld [vmem:[#allocation2 + $0x88] sm:$0xff]  ;;  %v460_v17 = vld [vmem:[#allocation2 + $0x30] sm:$0xff] }
  0x56   : > { %1232 = vmatprep.subr.bf16.mxu0 %v1351_v36  ;;  %1277 = vmatprep.subr.bf16.mxu1 %v1351_v36  ;;  %v476_v18 = vld [vmem:[#allocation2 + $0xb0] sm:$0xff]  ;;  %v458_v19 = vld [vmem:[#allocation2 + $0x20] sm:$0xff]  ;;  %v461_v23 = vld [vmem:[#allocation2 + $0x38] sm:$0xff] }
  0x57   : > { %v474_v20 = vld [vmem:[#allocation2 + $0xa0] sm:$0xff]  ;;  %v477_v24 = vld [vmem:[#allocation2 + $0xb8] sm:$0xff]  ;;  %v459_v29 = vld [vmem:[#allocation2 + $0x28] sm:$0xff] }
  0x58   : > { %v475_v30 = vld [vmem:[#allocation2 + $0xa8] sm:$0xff] }
  0x59   : > { %1233 = vmatpush3.bf16.msra.mxu0 %v1351_v36  ;;  %1285 = vmatpush3.bf16.msra.mxu1 %v1351_v36 }
  0x5a   : > { %1234 = vmatprep.subr.bf16.mxu0 %v1352_v39  ;;  %1278 = vmatprep.subr.bf16.mxu1 %v1352_v39 }
  0x5d   : > { %1235 = vmatpush3.bf16.msra.mxu0 %v1352_v39  ;;  %1286 = vmatpush3.bf16.msra.mxu1 %v1352_v39 }
  0x5e   : > { %1236 = vmatprep.subr.bf16.mxu0 %v1353_v40  ;;  %1279 = vmatprep.subr.bf16.mxu1 %v1353_v40 }
  0x61   : > { %1237 = vmatpush3.bf16.msra.mxu0 %v1353_v40  ;;  %1287 = vmatpush3.bf16.msra.mxu1 %v1353_v40 }
  0x62   : > { %1238 = vmatprep.subr.bf16.mxu0 %v1354_v41  ;;  %1280 = vmatprep.subr.bf16.mxu1 %v1354_v41 }
  0x65   : > { %1239 = vmatpush3.bf16.msra.mxu0 %v1354_v41  ;;  %1288 = vmatpush3.bf16.msra.mxu1 %v1354_v41  ;;  %v464_v41 = vld [vmem:[#allocation2 + $0x50] sm:$0xff] }
  0x66   : > { %1240 = vmatprep.subr.bf16.mxu0 %v1355_v42  ;;  %1281 = vmatprep.subr.bf16.mxu1 %v1355_v42 }
  0x69   : > { %1241 = vmatpush3.bf16.msra.mxu0 %v1355_v42  ;;  %1289 = vmatpush3.bf16.msra.mxu1 %v1355_v42  ;;  %v480_v42 = vld [vmem:[#allocation2 + $0xd0] sm:$0xff] }
  0x6c   : > { %1243 = vmatmul.mubr.bf16.vlgmr.msra.gmra.mrb[0].mxu0 %v1358_v43  ;;  %1259 = vmatmul.mubr.bf16.vlgmr.msra.gmra.mrb[0].mxu1 %v1359_v44  ;;  %v462_v43 = vld [vmem:[#allocation2 + $0x40] sm:$0xff] }
  0x6d   : > { %1246 = vmatprep.mubr.bf16.mxu0 %v1360_v45  ;;  %1262 = vmatprep.mubr.bf16.mxu1 %v1361_v46  ;;  %v478_v44 = vld [vmem:[#allocation2 + $0xc0] sm:$0xff] }
  0x74   : > { %1247 = vmatmul.mubr.bf16.gmra.mrb[4].mxu0 %v1362_v47  ;;  %1263 = vmatmul.mubr.bf16.gmra.mrb[4].mxu1 %v1363_v48  ;;  %v465_v47 = vld [vmem:[#allocation2 + $0x58] sm:$0xff] }
  0x75   : > { %1250 = vmatprep.mubr.bf16.mxu0 %v1364_v49  ;;  %1266 = vmatprep.mubr.bf16.mxu1 %v1365_v50  ;;  %v481_v48 = vld [vmem:[#allocation2 + $0xd8] sm:$0xff] }
  0x7c   : > { %1251 = vmatmul.mubr.bf16.gmra.mrb[8].mxu0 %v1366_v51  ;;  %1267 = vmatmul.mubr.bf16.gmra.mrb[8].mxu1 %v1367_v52 }
  0x7d   : > { %1254 = vmatprep.mubr.bf16.mxu0 %v1368_v53  ;;  %1270 = vmatprep.mubr.bf16.mxu1 %v1369_v54  ;;  %v463_v53 = vld [vmem:[#allocation2 + $0x48] sm:$0xff] }
  0x7e   : > { %v479_v54 = vld [vmem:[#allocation2 + $0xc8] sm:$0xff] }
  0x84   : > { %1255 = vmatmul.mubr.bf16.gmra.mrb[12].mxu0 %v1370_v55  ;;  %1271 = vmatmul.mubr.bf16.gmra.mrb[12].mxu1 %v1371_v56 }
 0x13f   : > { %v1244_v61 = vpop.f32.mrb[0].mxu0  ;;  %v1260_v62 = vpop.f32.mrb[0].mxu1 }
 0x140   : > { %v841_v1 = vadd.f32 %v1244_v61, %v456_v57  ;;  %v857_v2 = vadd.f32 %v1260_v62, %v472_v58  ;;  %v712_v3 = vpop.f32.mrb[1].mxu0  ;;  %v776_v4 = vpop.f32.mrb[1].mxu1 }
 0x141   : > { %v839_v7 = vadd.f32 %v712_v3, %v454_v59  ;;  %v855_v8 = vadd.f32 %v776_v4, %v470_v60  ;;  %v1245_v9 = vpop.f32.mrb[2].mxu0  ;;  %v1261_v10 = vpop.f32.mrb[2].mxu1  ;;  %v466_v3 = vld [vmem:[#allocation2 + $0x60] sm:$0xff] }
 0x142   : > { %873 = vst [vmem:[#allocation2 + $0x10] sm:$0xff] %v841_v1  ;;  %889 = vst [vmem:[#allocation2 + $0x90] sm:$0xff] %v857_v2  ;;  %v842_v11 = vadd.f32 %v1245_v9, %v457_v63  ;;  %v858_v12 = vadd.f32 %v1261_v10, %v473_v0  ;;  %v715_v13 = vpop.f32.mrb[3].mxu0  ;;  %v779_v14 = vpop.f32.mrb[3].mxu1  ;;  %v468_v1 = vld [vmem:[#allocation2 + $0x70] sm:$0xff]  ;;  %v482_v4 = vld [vmem:[#allocation2 + $0xe0] sm:$0xff] }
 0x143   : > { %871 = vst [vmem:[#allocation2] sm:$0xff] %v839_v7  ;;  %887 = vst [vmem:[#allocation2 + $0x80] sm:$0xff] %v855_v8  ;;  %v840_v15 = vadd.f32 %v715_v13, %v455_v5  ;;  %v856_v16 = vadd.f32 %v779_v14, %v471_v6  ;;  %v484_v2 = vld [vmem:[#allocation2 + $0xf0] sm:$0xff]  ;;  %v469_v7 = vld [vmem:[#allocation2 + $0x78] sm:$0xff] }
 0x144   : > { %874 = vst [vmem:[#allocation2 + $0x18] sm:$0xff] %v842_v11  ;;  %890 = vst [vmem:[#allocation2 + $0x98] sm:$0xff] %v858_v12  ;;  %v485_v8 = vld [vmem:[#allocation2 + $0xf8] sm:$0xff]  ;;  %v467_v13 = vld [vmem:[#allocation2 + $0x68] sm:$0xff] }
 0x145   : > { %872 = vst [vmem:[#allocation2 + $0x8] sm:$0xff] %v840_v15  ;;  %888 = vst [vmem:[#allocation2 + $0x88] sm:$0xff] %v856_v16  ;;  %v483_v14 = vld [vmem:[#allocation2 + $0xe8] sm:$0xff] }
 0x147   : > { %v1248_v21 = vpop.f32.mrb[4].mxu0  ;;  %v1264_v22 = vpop.f32.mrb[4].mxu1 }
 0x148   : > { %v845_v25 = vadd.f32 %v1248_v21, %v460_v17  ;;  %v861_v26 = vadd.f32 %v1264_v22, %v476_v18  ;;  %v728_v27 = vpop.f32.mrb[5].mxu0  ;;  %v792_v28 = vpop.f32.mrb[5].mxu1 }
 0x149   : > { %v843_v31 = vadd.f32 %v728_v27, %v458_v19  ;;  %v859_v32 = vadd.f32 %v792_v28, %v474_v20  ;;  %v1249_v33 = vpop.f32.mrb[6].mxu0  ;;  %v1265_v34 = vpop.f32.mrb[6].mxu1 }
 0x14a   : > { %877 = vst [vmem:[#allocation2 + $0x30] sm:$0xff] %v845_v25  ;;  %893 = vst [vmem:[#allocation2 + $0xb0] sm:$0xff] %v861_v26  ;;  %v846_v35 = vadd.f32 %v1249_v33, %v461_v23  ;;  %v862_v36 = vadd.f32 %v1265_v34, %v477_v24  ;;  %v731_v37 = vpop.f32.mrb[7].mxu0  ;;  %v795_v38 = vpop.f32.mrb[7].mxu1  ;;  %v907_v25 = vld [vmem:[#allocation2] sm:$0xff] (!%p1198_p13) }
 0x14b   : > { %875 = vst [vmem:[#allocation2 + $0x20] sm:$0xff] %v843_v31  ;;  %891 = vst [vmem:[#allocation2 + $0xa0] sm:$0xff] %v859_v32  ;;  %v844_v39 = vadd.f32 %v731_v37, %v459_v29  ;;  %v860_v40 = vadd.f32 %v795_v38, %v475_v30  ;;  %v1687_v26 = vld [vmem:[%s1776_s2] ss:$0 sm:$0xff] (!%p1198_p13)  ;;  %v909_v30 = vld [vmem:[#allocation2 + $0x10] sm:$0xff] (!%p1198_p13) }
 0x14c   : > { %878 = vst [vmem:[#allocation2 + $0x38] sm:$0xff] %v846_v35  ;;  %894 = vst [vmem:[#allocation2 + $0xb8] sm:$0xff] %v862_v36  ;;  %v908_v27 = vld [vmem:[#allocation2 + $0x8] sm:$0xff] (!%p1198_p13)  ;;  %v946_v28 = vadd.f32 (!%p1198_p13), %v1687_v26, %v907_v25  ;;  %v910_v31 = vld [vmem:[#allocation2 + $0x18] sm:$0xff] (!%p1198_p13)  ;;  %v948_v33 = vadd.f32 (!%p1198_p13), %v1687_v26, %v909_v30 }
 0x14d   : > { %876 = vst [vmem:[#allocation2 + $0x28] sm:$0xff] %v844_v39  ;;  %892 = vst [vmem:[#allocation2 + $0xa8] sm:$0xff] %v860_v40  ;;  %v947_v29 = vadd.f32 (!%p1198_p13), %v1687_v26, %v908_v27  ;;  %v949_v34 = vadd.f32 (!%p1198_p13), %v1687_v26, %v910_v31 }
 0x14e   : > { %1372 = vtanh.f32 (!%p1198_p13), %v946_v28 }
 0x14f   : > { %v1252_v45 = vpop.f32.mrb[8].mxu0  ;;  %v1268_v46 = vpop.f32.mrb[8].mxu1  ;;  %1374 = vtanh.f32 (!%p1198_p13), %v947_v29 }
 0x150   : > { %v849_v49 = vadd.f32 %v1252_v45, %v464_v41  ;;  %v865_v50 = vadd.f32 %v1268_v46, %v480_v42  ;;  %v744_v51 = vpop.f32.mrb[9].mxu0  ;;  %v808_v52 = vpop.f32.mrb[9].mxu1  ;;  %1376 = vtanh.f32 (!%p1198_p13), %v948_v33 }
 0x151   : > { %v847_v55 = vadd.f32 %v744_v51, %v462_v43  ;;  %v863_v56 = vadd.f32 %v808_v52, %v478_v44  ;;  %v1253_v57 = vpop.f32.mrb[10].mxu0  ;;  %v1269_v58 = vpop.f32.mrb[10].mxu1  ;;  %v913_v36 = vld [vmem:[#allocation2 + $0x30] sm:$0xff] (!%p1198_p13)  ;;  %1378 = vtanh.f32 (!%p1198_p13), %v949_v34 }
 0x152   : > { %881 = vst [vmem:[#allocation2 + $0x50] sm:$0xff] %v849_v49  ;;  %897 = vst [vmem:[#allocation2 + $0xd0] sm:$0xff] %v865_v50  ;;  %v850_v59 = vadd.f32 %v1253_v57, %v465_v47  ;;  %v866_v60 = vadd.f32 %v1269_v58, %v481_v48  ;;  %v747_v61 = vpop.f32.mrb[11].mxu0  ;;  %v811_v62 = vpop.f32.mrb[11].mxu1  ;;  %v911_v32 = vld [vmem:[#allocation2 + $0x20] sm:$0xff] (!%p1198_p13)  ;;  %v952_v41 = vadd.f32 (!%p1198_p13), %v1687_v26, %v913_v36 }
 0x153   : > { %879 = vst [vmem:[#allocation2 + $0x40] sm:$0xff] %v847_v55  ;;  %895 = vst [vmem:[#allocation2 + $0xc0] sm:$0xff] %v863_v56  ;;  %v848_v63 = vadd.f32 %v747_v61, %v463_v53  ;;  %v864_v0 = vadd.f32 %v811_v62, %v479_v54  ;;  %v950_v37 = vadd.f32 (!%p1198_p13), %v1687_v26, %v911_v32  ;;  %v914_v38 = vld [vmem:[#allocation2 + $0x38] sm:$0xff] (!%p1198_p13)  ;;  %v923_v56 = vld [vmem:[#allocation2 + $0x80] sm:$0xff] (!%p1198_p13) }
 0x154   : > { %882 = vst [vmem:[#allocation2 + $0x58] sm:$0xff] %v850_v59  ;;  %898 = vst [vmem:[#allocation2 + $0xd8] sm:$0xff] %v866_v60  ;;  %v912_v35 = vld [vmem:[#allocation2 + $0x28] sm:$0xff] (!%p1198_p13)  ;;  %v953_v43 = vadd.f32 (!%p1198_p13), %v1687_v26, %v914_v38  ;;  %v925_v62 = vld [vmem:[#allocation2 + $0x90] sm:$0xff] (!%p1198_p13) }
 0x155   : > { %880 = vst [vmem:[#allocation2 + $0x48] sm:$0xff] %v848_v63  ;;  %896 = vst [vmem:[#allocation2 + $0xc8] sm:$0xff] %v864_v0  ;;  %v951_v39 = vadd.f32 (!%p1198_p13), %v1687_v26, %v912_v35  ;;  %1380 = vtanh.f32 (!%p1198_p13), %v950_v37  ;;  %v924_v59 = vld [vmem:[#allocation2 + $0x88] sm:$0xff] (!%p1198_p13)  ;;  %v962_v0 = vadd.f32 (!%p1198_p13), %v1687_v26, %v923_v56 }
 0x157   : > { %v1256_v5 = vpop.f32.mrb[12].mxu0  ;;  %v1272_v6 = vpop.f32.mrb[12].mxu1  ;;  %906 = sbr.rel (%p1198_p13) target bundleno = 389 (0x185), region = 81  ;;  %1382 = vtanh.f32 (!%p1198_p13), %v951_v39 }
 0x158   : > { %v853_v9 = vadd.f32 %v1256_v5, %v468_v1  ;;  %v869_v10 = vadd.f32 %v1272_v6, %v484_v2  ;;  %v760_v11 = vpop.f32.mrb[13].mxu0  ;;  %v824_v12 = vpop.f32.mrb[13].mxu1  ;;  %1384 = vtanh.f32 (!%p1198_p13), %v952_v41  ;;  %v926_v1 = vld [vmem:[#allocation2 + $0x98] sm:$0xff] (!%p1198_p13)  ;;  %v964_v6 = vadd.f32 (!%p1198_p13), %v1687_v26, %v925_v62 }
 0x159   : > { %v851_v15 = vadd.f32 %v760_v11, %v466_v3  ;;  %v867_v16 = vadd.f32 %v824_v12, %v482_v4  ;;  %v1257_v17 = vpop.f32.mrb[14].mxu0  ;;  %v1273_v18 = vpop.f32.mrb[14].mxu1  ;;  %v917_v44 = vld [vmem:[#allocation2 + $0x50] sm:$0xff] (!%p1198_p13)  ;;  %1386 = vtanh.f32 (!%p1198_p13), %v953_v43  ;;  %v963_v3 = vadd.f32 (!%p1198_p13), %v1687_v26, %v924_v59  ;;  %v927_v4 = vld [vmem:[#allocation2 + $0xa0] sm:$0xff] (!%p1198_p13) }
 0x15a   : > { %885 = vst [vmem:[#allocation2 + $0x70] sm:$0xff] %v853_v9  ;;  %901 = vst [vmem:[#allocation2 + $0xf0] sm:$0xff] %v869_v10  ;;  %v854_v19 = vadd.f32 %v1257_v17, %v469_v7  ;;  %v870_v20 = vadd.f32 %v1273_v18, %v485_v8  ;;  %v763_v21 = vpop.f32.mrb[15].mxu0  ;;  %v827_v22 = vpop.f32.mrb[15].mxu1  ;;  %v915_v40 = vld [vmem:[#allocation2 + $0x40] sm:$0xff] (!%p1198_p13)  ;;  %v956_v49 = vadd.f32 (!%p1198_p13), %v1687_v26, %v917_v44  ;;  %v928_v7 = vld [vmem:[#allocation2 + $0xa8] sm:$0xff] (!%p1198_p13) }
 0x15b   : > { %883 = vst [vmem:[#allocation2 + $0x60] sm:$0xff] %v851_v15  ;;  %899 = vst [vmem:[#allocation2 + $0xe0] sm:$0xff] %v867_v16  ;;  %v852_v23 = vadd.f32 %v763_v21, %v467_v13  ;;  %v868_v24 = vadd.f32 %v827_v22, %v483_v14  ;;  %v954_v45 = vadd.f32 (!%p1198_p13), %v1687_v26, %v915_v40  ;;  %v918_v46 = vld [vmem:[#allocation2 + $0x58] sm:$0xff] (!%p1198_p13)  ;;  %v1373_v57 = vpop.eup (!%p1198_p13), %1372  ;;  %v929_v10 = vld [vmem:[#allocation2 + $0xb0] sm:$0xff] (!%p1198_p13) }
 0x15c   : > { %886 = vst [vmem:[#allocation2 + $0x78] sm:$0xff] %v854_v19  ;;  %902 = vst [vmem:[#allocation2 + $0xf8] sm:$0xff] %v870_v20  ;;  %v916_v42 = vld [vmem:[#allocation2 + $0x48] sm:$0xff] (!%p1198_p13)  ;;  %v957_v51 = vadd.f32 (!%p1198_p13), %v1687_v26, %v918_v46  ;;  %v1375_v60 = vpop.eup (!%p1198_p13), %1374  ;;  %v965_v9 = vadd.f32 (!%p1198_p13), %v1687_v26, %v926_v1  ;;  %v966_v12 = vadd.f32 (!%p1198_p13), %v1687_v26, %v927_v4  ;;  %v930_v13 = vld [vmem:[#allocation2 + $0xb8] sm:$0xff] (!%p1198_p13) }
 0x15d   : > { %884 = vst [vmem:[#allocation2 + $0x68] sm:$0xff] %v852_v23  ;;  %900 = vst [vmem:[#allocation2 + $0xe8] sm:$0xff] %v868_v24  ;;  %v955_v47 = vadd.f32 (!%p1198_p13), %v1687_v26, %v916_v42  ;;  %1388 = vtanh.f32 (!%p1198_p13), %v954_v45  ;;  %v1377_v63 = vpop.eup (!%p1198_p13), %1376  ;;  %v967_v15 = vadd.f32 (!%p1198_p13), %v1687_v26, %v928_v7  ;;  %v931_v16 = vld [vmem:[#allocation2 + $0xc0] sm:$0xff] (!%p1198_p13)  ;;  %v968_v18 = vadd.f32 (!%p1198_p13), %v1687_v26, %v929_v10  ;;  %v932_v19 = vld [vmem:[#allocation2 + $0xc8] sm:$0xff] (!%p1198_p13) }
 0x15e   : > { %1010 = vst [vmem:[%s1654_s29] sm:$0xff] %v1373_v57  ;;  %1011 = vst [vmem:[%s1654_s29 + $0x8] sm:$0xff] %v1375_v60  ;;  %v1379_v2 = vpop.eup %1378  ;;  %v969_v21 = vadd.f32 %v1687_v26, %v930_v13  ;;  %v933_v22 = vld [vmem:[#allocation2 + $0xd0] sm:$0xff]  ;;  %v970_v24 = vadd.f32 %v1687_v26, %v931_v16  ;;  %v934_v25 = vld [vmem:[#allocation2 + $0xd8] sm:$0xff]  ;;  %v971_v28 = vadd.f32 %v1687_v26, %v932_v19 }
 0x15f   : > { %1390 = vtanh.f32 %v955_v47  ;;  %1012 = vst [vmem:[%s1654_s29 + $0x10] sm:$0xff] %v1377_v63  ;;  %v1381_v5 = vpop.eup %1380  ;;  %1013 = vst [vmem:[%s1654_s29 + $0x18] sm:$0xff] %v1379_v2  ;;  %v972_v31 = vadd.f32 %v1687_v26, %v933_v22  ;;  %v973_v34 = vadd.f32 %v1687_v26, %v934_v25 }
 0x160   : > { %1392 = vtanh.f32 %v956_v49  ;;  %1014 = vst [vmem:[%s1654_s29 + $0x20] sm:$0xff] %v1381_v5 }
 0x161   : > { %v921_v52 = vld [vmem:[#allocation2 + $0x70] sm:$0xff]  ;;  %1394 = vtanh.f32 %v957_v51  ;;  %v1383_v8 = vpop.eup %1382 }
 0x162   : > { %v919_v48 = vld [vmem:[#allocation2 + $0x60] sm:$0xff]  ;;  %v960_v58 = vadd.f32 %v1687_v26, %v921_v52  ;;  %v1385_v11 = vpop.eup %1384  ;;  %1015 = vst [vmem:[%s1654_s29 + $0x28] sm:$0xff] %v1383_v8  ;;  %v937_v35 = vld [vmem:[#allocation2 + $0xf0] sm:$0xff] }
 0x163   : > { %v958_v53 = vadd.f32 %v1687_v26, %v919_v48  ;;  %v922_v54 = vld [vmem:[#allocation2 + $0x78] sm:$0xff]  ;;  %v1387_v14 = vpop.eup %1386  ;;  %1016 = vst [vmem:[%s1654_s29 + $0x30] sm:$0xff] %v1385_v11  ;;  %v935_v29 = vld [vmem:[#allocation2 + $0xe0] sm:$0xff]  ;;  %v976_v42 = vadd.f32 %v1687_v26, %v937_v35 }
 0x164   : > { %v920_v50 = vld [vmem:[#allocation2 + $0x68] sm:$0xff]  ;;  %v961_v61 = vadd.f32 %v1687_v26, %v922_v54  ;;  %1017 = vst [vmem:[%s1654_s29 + $0x38] sm:$0xff] %v1387_v14  ;;  %v974_v37 = vadd.f32 %v1687_v26, %v935_v29  ;;  %v938_v38 = vld [vmem:[#allocation2 + $0xf8] sm:$0xff] }
 0x165   : > { %v959_v55 = vadd.f32 %v1687_v26, %v920_v50  ;;  %1396 = vtanh.f32 %v958_v53  ;;  %v936_v32 = vld [vmem:[#allocation2 + $0xe8] sm:$0xff]  ;;  %v977_v44 = vadd.f32 %v1687_v26, %v938_v38 }
 0x166   : > { %v975_v40 = vadd.f32 %v1687_v26, %v936_v32 }
 0x167   : > { %1398 = vtanh.f32 %v959_v55  ;;  %v1389_v17 = vpop.eup %1388 }
 0x168   : > { %1400 = vtanh.f32 %v960_v58  ;;  %1018 = vst [vmem:[%s1654_s29 + $0x40] sm:$0xff] %v1389_v17 }
 0x169   : > { %1402 = vtanh.f32 %v961_v61  ;;  %v1391_v20 = vpop.eup %1390 }
 0x16a   : > { %1404 = vtanh.f32 %v962_v0  ;;  %v1393_v23 = vpop.eup %1392  ;;  %1019 = vst [vmem:[%s1654_s29 + $0x48] sm:$0xff] %v1391_v20 }
 0x16b   : > { %1406 = vtanh.f32 %v963_v3  ;;  %v1395_v27 = vpop.eup %1394  ;;  %1020 = vst [vmem:[%s1654_s29 + $0x50] sm:$0xff] %v1393_v23 }
 0x16c   : > { %1408 = vtanh.f32 %v964_v6  ;;  %1021 = vst [vmem:[%s1654_s29 + $0x58] sm:$0xff] %v1395_v27 }
 0x16d   : > { %1410 = vtanh.f32 %v965_v9 }
 0x16e   : > { %1412 = vtanh.f32 %v966_v12 }
 0x16f   : > { %1414 = vtanh.f32 %v967_v15  ;;  %v1397_v30 = vpop.eup %1396 }
 0x170   : > { %1416 = vtanh.f32 %v968_v18  ;;  %1022 = vst [vmem:[%s1654_s29 + $0x60] sm:$0xff] %v1397_v30 }
 0x171   : > { %v1399_v33 = vpop.eup %1398  ;;  %1418 = vtanh.f32 %v969_v21 }
 0x172   : > { %v1401_v36 = vpop.eup %1400  ;;  %1023 = vst [vmem:[%s1654_s29 + $0x68] sm:$0xff] %v1399_v33  ;;  %1420 = vtanh.f32 %v970_v24 }
 0x173   : > { %v1403_v39 = vpop.eup %1402  ;;  %1024 = vst [vmem:[%s1654_s29 + $0x70] sm:$0xff] %v1401_v36  ;;  %1422 = vtanh.f32 %v971_v28 }
 0x174   : > { %v1405_v41 = vpop.eup %1404  ;;  %1025 = vst [vmem:[%s1654_s29 + $0x78] sm:$0xff] %v1403_v39  ;;  %1424 = vtanh.f32 %v972_v31 }
 0x175   : > { %v1407_v43 = vpop.eup %1406  ;;  %1026 = vst [vmem:[%s1654_s29 + $0x80] sm:$0xff] %v1405_v41  ;;  %1426 = vtanh.f32 %v973_v34 }
 0x176   : > { %v1409_v45 = vpop.eup %1408  ;;  %1027 = vst [vmem:[%s1654_s29 + $0x88] sm:$0xff] %v1407_v43  ;;  %1428 = vtanh.f32 %v974_v37 }
 0x177   : > { %v1411_v46 = vpop.eup %1410  ;;  %1028 = vst [vmem:[%s1654_s29 + $0x90] sm:$0xff] %v1409_v45  ;;  %1430 = vtanh.f32 %v975_v40 }
 0x178   : > { %v1413_v47 = vpop.eup %1412  ;;  %1029 = vst [vmem:[%s1654_s29 + $0x98] sm:$0xff] %v1411_v46  ;;  %1432 = vtanh.f32 %v976_v42 }
 0x179   : > { %v1415_v48 = vpop.eup %1414  ;;  %1030 = vst [vmem:[%s1654_s29 + $0xa0] sm:$0xff] %v1413_v47  ;;  %1434 = vtanh.f32 %v977_v44 }
 0x17a   : > { %v1417_v26 = vpop.eup %1416  ;;  %1031 = vst [vmem:[%s1654_s29 + $0xa8] sm:$0xff] %v1415_v48 }
 0x17b   : > { %v1419_v49 = vpop.eup %1418  ;;  %1032 = vst [vmem:[%s1654_s29 + $0xb0] sm:$0xff] %v1417_v26 }
 0x17c   : > { %v1421_v50 = vpop.eup %1420  ;;  %1033 = vst [vmem:[%s1654_s29 + $0xb8] sm:$0xff] %v1419_v49 }
 0x17d   : > { %v1423_v51 = vpop.eup %1422  ;;  %1034 = vst [vmem:[%s1654_s29 + $0xc0] sm:$0xff] %v1421_v50 }
 0x17e   : > { %v1425_v52 = vpop.eup %1424  ;;  %1035 = vst [vmem:[%s1654_s29 + $0xc8] sm:$0xff] %v1423_v51 }
 0x17f   : > { %v1427_v53 = vpop.eup %1426  ;;  %1036 = vst [vmem:[%s1654_s29 + $0xd0] sm:$0xff] %v1425_v52 }
 0x180   : > { %v1429_v54 = vpop.eup %1428  ;;  %1037 = vst [vmem:[%s1654_s29 + $0xd8] sm:$0xff] %v1427_v53 }
 0x181   : > { %v1431_v55 = vpop.eup %1430  ;;  %1038 = vst [vmem:[%s1654_s29 + $0xe0] sm:$0xff] %v1429_v54 }
 0x182   : > { %v1433_v56 = vpop.eup %1432  ;;  %1039 = vst [vmem:[%s1654_s29 + $0xe8] sm:$0xff] %v1431_v55 }
 0x183   : > { %v1435_v57 = vpop.eup %1434  ;;  %1040 = vst [vmem:[%s1654_s29 + $0xf0] sm:$0xff] %v1433_v56 }
 0x184   : > { %1041 = vst [vmem:[%s1654_s29 + $0xf8] sm:$0xff] %v1435_v57 }
 0x185 PF: > { %s13_s18 = sadd.s32 1, %s1490_s18   ;;  %s1778_s12 = smov %s1470_s13 }
 0x186   : > { %p10_p0 = scmp.ge.s32.totalorder %s13_s18, 52   ;;  %s1779_s13 = smov %s1564_s25 }
 0x187   : > { %s1780_s14 = smov %s1482_s16  ;;  %s1781_s15 = smov %s1486_s17 }
 0x188   : > { %s1782_s16 = smov %s1785_s19  ;;  %s1783_s17 = smov %s1789_s20 }
 0x189   :  { %12 = sbr.rel (!%p10_p0) target bundleno = 4 (0x4), region = 122 }

</bundles_post_ra>
